<compile_context>
chip_gen: v7x
topology: tpu7x:2x2x1
jax: 0.10.0
libtpu: 0.0.40
codegen_flags: <defaults>
</compile_context>

<pallas_src>
import functools
import math

import jax
import jax.numpy as jnp
from jax import lax
from jax.experimental import pallas as pl
from jax.experimental.pallas import tpu as pltpu

# Small, module-consistent sizes (d_model divisible by num_heads, lane-dense).
BATCH = 2
SEQ = 8
D_MODEL = 128
NUM_HEADS = 4
HEAD_DIM = D_MODEL // NUM_HEADS
FFN_HIDDEN = 256
EPS = 1e-5

# ---- packed-parameter layout (static offsets shared by wrapper & kernel) ----
# All segment widths are multiples of 128 -> every in-kernel slice is
# lane-aligned.
W_SEGS = [("wqkv", 3 * D_MODEL), ("wo1", D_MODEL), ("wkv", 2 * D_MODEL),
          ("wq", D_MODEL), ("wo2", D_MODEL), ("w1", FFN_HIDDEN)]
B_SEGS = [("bqkv", 3 * D_MODEL), ("bo1", D_MODEL), ("g1", D_MODEL),
          ("be1", D_MODEL), ("bkv", 2 * D_MODEL), ("bq", D_MODEL),
          ("bo2", D_MODEL), ("g2", D_MODEL), ("be2", D_MODEL),
          ("b1", FFN_HIDDEN), ("b2", D_MODEL), ("g3", D_MODEL),
          ("be3", D_MODEL)]


def _offsets(segs):
    off, table = 0, {}
    for name, size in segs:
        table[name] = (off, size)
        off += size
    return table, off


W_OFF, W_TOTAL = _offsets(W_SEGS)
B_OFF, B_TOTAL = _offsets(B_SEGS)


def _group_to_head_major_perm(n_groups):
    """Column permutation: per-head-interleaved projection output
    [g0_h0|g1_h0|...|g0_h1|...] (hd wide each)  ->  [g0_allheads|g1_allheads|...]
    (D wide each).  Matches the module's reshape(B,S,H,n_groups*hd) + chunk."""
    idx = []
    for g in range(n_groups):
        for h in range(NUM_HEADS):
            base = (h * n_groups + g) * HEAD_DIM
            idx.extend(range(base, base + HEAD_DIM))
    return jnp.asarray(idx, dtype=jnp.int32)


# --------------------------------- kernel -----------------------------------
def decoder_layer_kernel(*refs, has_cross_mask):
    if has_cross_mask:
        x_ref, y_ref, smask_ref, cmask_ref, w_ref, w2_ref, bias_ref, out_ref = refs
    else:
        x_ref, y_ref, smask_ref, w_ref, w2_ref, bias_ref, out_ref = refs
        cmask_ref = None

    BS, D = x_ref.shape                 # (B*S, D) flattened activations
    S = smask_ref.shape[0]
    B = BS // S
    H = NUM_HEADS
    hd = D // H
    scale = 1.0 / math.sqrt(hd)

    x = x_ref[...]                      # (BS, D) f32 encoder output
    y = y_ref[...]                      # (BS, D) f32 decoder input
    smask = smask_ref[...]              # (S, S)  f32

    def wseg(name):
        # Slice the Ref (lazy, 128-aligned) - never load the whole slab.
        off, n = W_OFF[name]
        return w_ref[:, off:off + n]                    # bf16 (D, n)

    def bseg(name):
        off, n = B_OFF[name]
        return bias_ref[:, off:off + n]                 # f32 (1, n)

    def mm(a, wb):
        # bf16 operands into the MXU, f32 accumulation.
        return lax.dot_general(
            a.astype(jnp.bfloat16), wb,
            dimension_numbers=(((1,), (0,)), ((), ())),
            preferred_element_type=jnp.float32)

    def layernorm(v, g, b):
        mean = jnp.mean(v, axis=-1, keepdims=True)
        var = jnp.mean(jnp.square(v - mean), axis=-1, keepdims=True)
        return g * ((v - mean) * lax.rsqrt(var + EPS)) + b

    def to_heads(z):
        # (BS, D) -> (B*H, S, hd); columns are already head-major.
        return z.reshape(B, S, H, hd).transpose(0, 2, 1, 3).reshape(B * H, S, hd)

    def from_heads(o):
        # (B*H, S, hd) -> (BS, D) with head-major columns (single transpose).
        return o.reshape(B, H, S, hd).transpose(0, 2, 1, 3).reshape(BS, D)

    def attention(q, k, v, mask):
        # q, k, v: (B*H, S, hd) bf16; mask: (S, S) f32 or None.
        s = jnp.einsum("hqd,hkd->hqk", q, k,
                       preferred_element_type=jnp.float32) * scale
        if mask is not None:
            s = s + mask[None, :, :]
        m = jnp.max(s, axis=-1, keepdims=True)
        e = jnp.exp(s - m)
        p = e * pl.reciprocal(jnp.sum(e, axis=-1, keepdims=True), approx=True)
        o = jnp.einsum("hqk,hkd->hqd", p.astype(jnp.bfloat16), v,
                       preferred_element_type=jnp.float32)
        return from_heads(o)

    # ---------------- self attention on y ----------------
    qkv = (mm(y, wseg("wqkv")) + bseg("bqkv")).astype(jnp.bfloat16)  # (BS, 3D)
    q = to_heads(qkv[:, 0:D])
    k = to_heads(qkv[:, D:2 * D])
    v = to_heads(qkv[:, 2 * D:3 * D])
    sa = mm(attention(q, k, v, smask), wseg("wo1")) + bseg("bo1")
    # dropout1 is identity (eval-mode semantics)
    y1 = layernorm(sa + y, bseg("g1"), bseg("be1"))

    # ---------------- cross attention: k,v from x; q from y1 ----------------
    kv = (mm(x, wseg("wkv")) + bseg("bkv")).astype(jnp.bfloat16)     # (BS, 2D)
    k = to_heads(kv[:, 0:D])
    v = to_heads(kv[:, D:2 * D])
    qq = (mm(y1, wseg("wq")) + bseg("bq")).astype(jnp.bfloat16)      # (BS, D)
    q = to_heads(qq)
    cmask = cmask_ref[...] if has_cross_mask else None
    ca = mm(attention(q, k, v, cmask), wseg("wo2")) + bseg("bo2")
    # dropout2 is identity (eval-mode semantics)
    y2 = layernorm(ca + y1, bseg("g2"), bseg("be2"))

    # ---------------- position-wise FFN ----------------
    h1 = jnp.maximum(mm(y2, wseg("w1")) + bseg("b1"), 0.0)
    ff = mm(h1, w2_ref[...]) + bseg("b2")
    # dropout3 is identity (eval-mode semantics)
    y3 = layernorm(ff + y2, bseg("g3"), bseg("be3"))

    out_ref[...] = y3.astype(out_ref.dtype)


# --------------------------------- wrapper ----------------------------------
def decoder_layer(x, y, self_mask, cross_mask, params):
    """x, y: (B, S, D) f32; self_mask: (S, S) f32 (broadcast over batch/head);
    cross_mask: (S, S) f32 or None (None == identity, the usual decoder case)."""
    B, S, D = x.shape
    BS = B * S

    # Wrapper-side column permutation: per-head-interleaved -> head-major blocks
    # [Q_allheads | K_allheads | V_allheads], [K_allheads | V_allheads].
    # (This module uses nn.Linear + reshape/chunk, i.e. the interleaved layout;
    #  the permutation below adapts it losslessly for 128-wide in-kernel slices.)
    perm3 = _group_to_head_major_perm(3)
    perm2 = _group_to_head_major_perm(2)
    w_parts = {"wqkv": params["wqkv"][:, perm3], "wo1": params["wo1"],
               "wkv": params["wkv"][:, perm2], "wq": params["wq"],
               "wo2": params["wo2"], "w1": params["w1"]}
    b_parts = {"bqkv": params["bqkv"][:, perm3], "bkv": params["bkv"][:, perm2]}

    w_slab = jnp.concatenate([w_parts[n] for n, _ in W_SEGS],
                             axis=1).astype(jnp.bfloat16)            # (D, 1280)
    w2 = params["w2"].astype(jnp.bfloat16)                           # (FFN, D)
    bias_slab = jnp.concatenate(
        [b_parts[n] if n in b_parts else params[n] for n, _ in B_SEGS],
        axis=1).astype(jnp.float32)                                  # (1, 2176)

    # Fold batch into rows: every matmul / LN sees (B*S, D) lane-dense tiles.
    x2 = x.reshape(BS, D)
    y2 = y.reshape(BS, D)

    has_cross = cross_mask is not None
    kernel = functools.partial(decoder_layer_kernel, has_cross_mask=has_cross)

    inputs = [x2, y2, self_mask]
    in_specs = [
        pl.BlockSpec((BS, D), lambda i: (0, 0)),        # x (flattened)
        pl.BlockSpec((BS, D), lambda i: (0, 0)),        # y (flattened)
        pl.BlockSpec(self_mask.shape, lambda i: (0, 0)),  # self mask, once
    ]
    if has_cross:
        inputs.append(cross_mask)
        in_specs.append(pl.BlockSpec(cross_mask.shape, lambda i: (0, 0)))
    inputs += [w_slab, w2, bias_slab]
    # NOTE(perf): at real d_model, set pipeline_mode=pl.Buffered(1) on these
    # constant-index slabs (or DMA once to scratch) for v7x VMEM headroom.
    in_specs += [
        pl.BlockSpec(w_slab.shape, lambda i: (0, 0)),   # weight slab
        pl.BlockSpec(w2.shape, lambda i: (0, 0)),       # FFN w2
        pl.BlockSpec(bias_slab.shape, lambda i: (0, 0)),  # bias / LN slab
    ]

    out = pl.pallas_call(
        kernel,
        out_shape=jax.ShapeDtypeStruct((BS, D), jnp.float32),
        grid=(1,),                                      # batch folded: 1 step
        in_specs=in_specs,
        out_specs=pl.BlockSpec((BS, D), lambda i: (0, 0)),
        compiler_params=pltpu.CompilerParams(
            dimension_semantics=("arbitrary",)),
    )(*inputs)
    return out.reshape(B, S, D)


# --------------------------- params & reference -----------------------------
def init_params(key):
    """Deterministic synthetic parameters (PyTorch-shaped, pre-transposed [in, out])."""
    ks = iter(jax.random.split(key, 16))

    def lin(fan_in, fan_out):
        bound = 1.0 / math.sqrt(fan_in)
        w = jax.random.uniform(next(ks), (fan_in, fan_out), jnp.float32, -bound, bound)
        b = jax.random.uniform(next(ks), (1, fan_out), jnp.float32, -bound, bound)
        return w, b

    ones = lambda n: jnp.ones((1, n), jnp.float32)
    zeros = lambda n: jnp.zeros((1, n), jnp.float32)

    p = {}
    p["wqkv"], p["bqkv"] = lin(D_MODEL, 3 * D_MODEL)
    p["wo1"], p["bo1"] = lin(D_MODEL, D_MODEL)
    p["g1"], p["be1"] = ones(D_MODEL), zeros(D_MODEL)
    p["wkv"], p["bkv"] = lin(D_MODEL, 2 * D_MODEL)
    p["wq"], p["bq"] = lin(D_MODEL, D_MODEL)
    p["wo2"], p["bo2"] = lin(D_MODEL, D_MODEL)
    p["g2"], p["be2"] = ones(D_MODEL), zeros(D_MODEL)
    p["w1"], p["b1"] = lin(D_MODEL, FFN_HIDDEN)
    p["w2"], p["b2"] = lin(FFN_HIDDEN, D_MODEL)
    p["g3"], p["be3"] = ones(D_MODEL), zeros(D_MODEL)
    return p


def ref_decoder(x, y, smask, cmask, p, bf16_matmul):
    """Pure-JAX reference mirroring the PyTorch forward (un-permuted weights).

    With bf16_matmul=True it also mirrors the kernel's mixed-precision policy
    (bf16 MXU operands, f32 accumulation); with False it is the pure-f32 module.
    """
    cast = (lambda a: a.astype(jnp.bfloat16)) if bf16_matmul else (lambda a: a)

    def mm(a, w):
        return lax.dot_general(cast(a), cast(w),
                               dimension_numbers=(((a.ndim - 1,), (0,)), ((), ())),
                               preferred_element_type=jnp.float32)

    def ln(v, g, b):
        m = v.mean(-1, keepdims=True)
        var = ((v - m) ** 2).mean(-1, keepdims=True)
        return g * (v - m) / jnp.sqrt(var + EPS) + b

    def attn(q, k, v, mask):
        s = jnp.einsum("bhqd,bhkd->bhqk", cast(q), cast(k),
                       preferred_element_type=jnp.float32) / math.sqrt(HEAD_DIM)
        if mask is not None:
            s = s + mask[None, None, :, :]
        a = jax.nn.softmax(s, axis=-1)
        return jnp.einsum("bhqk,bhkd->bhqd", cast(a), cast(v),
                          preferred_element_type=jnp.float32)

    B, S, D = y.shape
    qkv = mm(y, p["wqkv"]) + p["bqkv"]
    qkv = qkv.reshape(B, S, NUM_HEADS, 3 * HEAD_DIM).transpose(0, 2, 1, 3)
    q, k, v = jnp.split(qkv, 3, axis=-1)
    vals = attn(q, k, v, smask).transpose(0, 2, 1, 3).reshape(B, S, D)
    y1 = ln(mm(vals, p["wo1"]) + p["bo1"] + y, p["g1"], p["be1"])

    kv = mm(x, p["wkv"]) + p["bkv"]
    kv = kv.reshape(B, S, NUM_HEADS, 2 * HEAD_DIM).transpose(0, 2, 1, 3)
    k, v = jnp.split(kv, 2, axis=-1)
    qq = (mm(y1, p["wq"]) + p["bq"]).reshape(B, S, NUM_HEADS, HEAD_DIM).transpose(0, 2, 1, 3)
    vals = attn(qq, k, v, cmask).transpose(0, 2, 1, 3).reshape(B, S, D)
    y2 = ln(mm(vals, p["wo2"]) + p["bo2"] + y1, p["g2"], p["be2"])

    h1 = jax.nn.relu(mm(y2, p["w1"]) + p["b1"])
    ff = mm(h1, p["w2"]) + p["b2"]
    return ln(ff + y2, p["g3"], p["be3"])


# ----------------------------------- main ------------------------------------
if __name__ == "__main__":
    key = jax.random.PRNGKey(0)
    kx, ky, kp = jax.random.split(key, 3)

    x = jax.random.normal(kx, (BATCH, SEQ, D_MODEL), jnp.float32)   # encoder output
    y = jax.random.normal(ky, (BATCH, SEQ, D_MODEL), jnp.float32)   # decoder input
    # Causal self-attention mask, shared across batch & heads (PyTorch
    # permute-add broadcast semantics) -> passed once as (S, S).
    self_mask = jnp.where(jnp.arange(SEQ)[:, None] >= jnp.arange(SEQ)[None, :],
                          0.0, -1e9).astype(jnp.float32)
    cross_mask = None   # cross_attention_mask=None -> identity (no add)

    params = init_params(kp)

    out = jax.block_until_ready(decoder_layer(x, y, self_mask, cross_mask, params))
    assert out.shape == (BATCH, SEQ, D_MODEL)

    # Tight check vs. a reference that mirrors the kernel's bf16-matmul policy,
    # loose check vs. the pure-f32 PyTorch-equivalent forward.
    ref_mixed = ref_decoder(x, y, self_mask, cross_mask, params, bf16_matmul=True)
    ref_f32 = ref_decoder(x, y, self_mask, cross_mask, params, bf16_matmul=False)
    err_mixed = float(jnp.max(jnp.abs(out - ref_mixed)))
    err_f32 = float(jnp.max(jnp.abs(out - ref_f32)))
    assert jnp.allclose(out, ref_mixed, atol=2e-2, rtol=2e-2), err_mixed
    assert jnp.allclose(out, ref_f32, atol=1e-1, rtol=1e-1), err_f32

    print("KERNEL_OK")
</pallas_src>

<mosaic_0001>
module attributes {stable_mosaic.version = 11 : i64} {
  func.func @decoder_layer_kernel(%arg0: i32, %arg1: memref<16x128xf32, #tpu.memory_space<vmem>>, %arg2: memref<16x128xf32, #tpu.memory_space<vmem>>, %arg3: memref<8x8xf32, #tpu.memory_space<vmem>>, %arg4: memref<128x1280xbf16, #tpu.memory_space<vmem>>, %arg5: memref<256x128xbf16, #tpu.memory_space<vmem>>, %arg6: memref<1x2176xf32, #tpu.memory_space<vmem>>, %arg7: memref<16x128xf32, #tpu.memory_space<vmem>>) attributes {dimension_semantics = [#tpu.dimension_semantics<arbitrary>], iteration_bounds = array<i64: 1>, scalar_prefetch = 0 : i64, scratch_operands = 0 : i64, tpu.core_type = #tpu.core_type<tc>, window_params = [{pipeline_mode = #tpu.pipeline_mode<synchronous>, transform_indices = @transform_0, window_bounds = array<i64: 16, 128>}, {pipeline_mode = #tpu.pipeline_mode<synchronous>, transform_indices = @transform_1, window_bounds = array<i64: 16, 128>}, {pipeline_mode = #tpu.pipeline_mode<synchronous>, transform_indices = @transform_2, window_bounds = array<i64: 8, 8>}, {pipeline_mode = #tpu.pipeline_mode<synchronous>, transform_indices = @transform_3, window_bounds = array<i64: 128, 1280>}, {pipeline_mode = #tpu.pipeline_mode<synchronous>, transform_indices = @transform_4, window_bounds = array<i64: 256, 128>}, {pipeline_mode = #tpu.pipeline_mode<synchronous>, transform_indices = @transform_5, window_bounds = array<i64: 1, 2176>}, {pipeline_mode = #tpu.pipeline_mode<synchronous>, transform_indices = @transform_6, window_bounds = array<i64: 16, 128>}]} {
    %c0 = arith.constant 0 : index
    %c0_0 = arith.constant 0 : index
    %0 = vector.load %arg1[%c0, %c0_0] : memref<16x128xf32, #tpu.memory_space<vmem>>, vector<16x128xf32>
    %c0_1 = arith.constant 0 : index
    %c0_2 = arith.constant 0 : index
    %1 = vector.load %arg2[%c0_1, %c0_2] : memref<16x128xf32, #tpu.memory_space<vmem>>, vector<16x128xf32>
    %c0_3 = arith.constant 0 : index
    %c0_4 = arith.constant 0 : index
    %2 = vector.load %arg3[%c0_3, %c0_4] : memref<8x8xf32, #tpu.memory_space<vmem>>, vector<8x8xf32>
    %c0_5 = arith.constant 0 : index
    %c0_6 = arith.constant 0 : index
    %3 = vector.load %arg4[%c0_5, %c0_6] : memref<128x1280xbf16, #tpu.memory_space<vmem>>, vector<128x384xbf16>
    %4 = arith.truncf %1 : vector<16x128xf32> to vector<16x128xbf16>
    %cst = arith.constant dense<0.000000e+00> : vector<16x384xf32>
    %5 = tpu.matmul %4, %3, %cst {dimension_numbers = #tpu.dot_dimension_numbers<[1], [0], [0], [1], [0, 0, 1, 1], [], []>} : vector<16x128xbf16>, vector<128x384xbf16>, vector<16x384xf32> -> vector<16x384xf32>
    %c0_7 = arith.constant 0 : index
    %c0_8 = arith.constant 0 : index
    %6 = vector.load %arg6[%c0_7, %c0_8] : memref<1x2176xf32, #tpu.memory_space<vmem>>, vector<1x384xf32>
    %7 = vector.broadcast %6 : vector<1x384xf32> to vector<16x384xf32>
    %8 = arith.addf %5, %7 : vector<16x384xf32>
    %9 = arith.truncf %8 : vector<16x384xf32> to vector<16x384xbf16>
    %10 = vector.extract_strided_slice %9 {offsets = [0, 0], sizes = [16, 128], strides = [1, 1]} : vector<16x384xbf16> to vector<16x128xbf16>
    %11 = vector.shape_cast %10 : vector<16x128xbf16> to vector<2x8x4x32xbf16>
    %12 = tpu.transpose %11, [0, 2, 1, 3] : vector<2x8x4x32xbf16> -> vector<2x4x8x32xbf16>
    %13 = vector.shape_cast %12 : vector<2x4x8x32xbf16> to vector<8x8x32xbf16>
    %14 = vector.extract_strided_slice %9 {offsets = [0, 128], sizes = [16, 128], strides = [1, 1]} : vector<16x384xbf16> to vector<16x128xbf16>
    %15 = vector.shape_cast %14 : vector<16x128xbf16> to vector<2x8x4x32xbf16>
    %16 = tpu.transpose %15, [0, 2, 1, 3] : vector<2x8x4x32xbf16> -> vector<2x4x8x32xbf16>
    %17 = vector.shape_cast %16 : vector<2x4x8x32xbf16> to vector<8x8x32xbf16>
    %18 = vector.extract_strided_slice %9 {offsets = [0, 256], sizes = [16, 128], strides = [1, 1]} : vector<16x384xbf16> to vector<16x128xbf16>
    %19 = vector.shape_cast %18 : vector<16x128xbf16> to vector<2x8x4x32xbf16>
    %20 = tpu.transpose %19, [0, 2, 1, 3] : vector<2x8x4x32xbf16> -> vector<2x4x8x32xbf16>
    %21 = vector.shape_cast %20 : vector<2x4x8x32xbf16> to vector<8x8x32xbf16>
    "tpu.trace_start"() <{level = 10 : i32, message = "hqd,hkd->hqk"}> : () -> ()
    %cst_9 = arith.constant dense<0.000000e+00> : vector<8x8x8xf32>
    %22 = tpu.matmul %13, %17, %cst_9 {dimension_numbers = #tpu.dot_dimension_numbers<[2], [2], [1], [1], [0, 0, 0, 1, 1, 1], [0], [0]>} : vector<8x8x32xbf16>, vector<8x8x32xbf16>, vector<8x8x8xf32> -> vector<8x8x8xf32>
    "tpu.trace_stop"() : () -> ()
    %cst_10 = arith.constant 0.176776692 : f32
    %23 = vector.broadcast %cst_10 : f32 to vector<8x8x8xf32>
    %24 = arith.mulf %22, %23 : vector<8x8x8xf32>
    %25 = vector.shape_cast %2 : vector<8x8xf32> to vector<1x8x8xf32>
    %26 = vector.broadcast %25 : vector<1x8x8xf32> to vector<8x8x8xf32>
    %27 = arith.addf %24, %26 : vector<8x8x8xf32>
    %cst_11 = arith.constant dense<0xFF800000> : vector<8x8xf32>
    %28 = vector.multi_reduction <maximumf>, %27, %cst_11 [2] : vector<8x8x8xf32> to vector<8x8xf32>
    %29 = vector.shape_cast %28 : vector<8x8xf32> to vector<8x8x1xf32>
    %30 = vector.broadcast %29 : vector<8x8x1xf32> to vector<8x8x8xf32>
    %31 = arith.subf %27, %30 : vector<8x8x8xf32>
    %32 = math.exp %31 : vector<8x8x8xf32>
    %cst_12 = arith.constant dense<0.000000e+00> : vector<8x8xf32>
    %33 = vector.multi_reduction <add>, %32, %cst_12 [2] : vector<8x8x8xf32> to vector<8x8xf32>
    %34 = vector.shape_cast %33 : vector<8x8xf32> to vector<8x8x1xf32>
    %35 = tpu.reciprocal %34 {approx = true} : vector<8x8x1xf32> -> vector<8x8x1xf32>
    %36 = vector.broadcast %35 : vector<8x8x1xf32> to vector<8x8x8xf32>
    %37 = arith.mulf %32, %36 : vector<8x8x8xf32>
    %38 = arith.truncf %37 : vector<8x8x8xf32> to vector<8x8x8xbf16>
    "tpu.trace_start"() <{level = 10 : i32, message = "hqk,hkd->hqd"}> : () -> ()
    %cst_13 = arith.constant dense<0.000000e+00> : vector<8x8x32xf32>
    %39 = tpu.matmul %38, %21, %cst_13 {dimension_numbers = #tpu.dot_dimension_numbers<[2], [1], [1], [2], [0, 0, 0, 1, 1, 2], [0], [0]>} : vector<8x8x8xbf16>, vector<8x8x32xbf16>, vector<8x8x32xf32> -> vector<8x8x32xf32>
    "tpu.trace_stop"() : () -> ()
    %40 = vector.shape_cast %39 : vector<8x8x32xf32> to vector<2x4x8x32xf32>
    %41 = tpu.transpose %40, [0, 2, 1, 3] : vector<2x4x8x32xf32> -> vector<2x8x4x32xf32>
    %42 = vector.shape_cast %41 : vector<2x8x4x32xf32> to vector<16x128xf32>
    %c0_14 = arith.constant 0 : index
    %c384 = arith.constant 384 : index
    %43 = vector.load %arg4[%c0_14, %c384] : memref<128x1280xbf16, #tpu.memory_space<vmem>>, vector<128x128xbf16>
    %44 = arith.truncf %42 : vector<16x128xf32> to vector<16x128xbf16>
    %cst_15 = arith.constant dense<0.000000e+00> : vector<16x128xf32>
    %45 = tpu.matmul %44, %43, %cst_15 {dimension_numbers = #tpu.dot_dimension_numbers<[1], [0], [0], [1], [0, 0, 1, 1], [], []>} : vector<16x128xbf16>, vector<128x128xbf16>, vector<16x128xf32> -> vector<16x128xf32>
    %c0_16 = arith.constant 0 : index
    %c384_17 = arith.constant 384 : index
    %46 = vector.load %arg6[%c0_16, %c384_17] : memref<1x2176xf32, #tpu.memory_space<vmem>>, vector<1x128xf32>
    %47 = vector.broadcast %46 : vector<1x128xf32> to vector<16x128xf32>
    %48 = arith.addf %45, %47 : vector<16x128xf32>
    %49 = arith.addf %48, %1 : vector<16x128xf32>
    %c0_18 = arith.constant 0 : index
    %c512 = arith.constant 512 : index
    %50 = vector.load %arg6[%c0_18, %c512] : memref<1x2176xf32, #tpu.memory_space<vmem>>, vector<1x128xf32>
    %c0_19 = arith.constant 0 : index
    %c640 = arith.constant 640 : index
    %51 = vector.load %arg6[%c0_19, %c640] : memref<1x2176xf32, #tpu.memory_space<vmem>>, vector<1x128xf32>
    %cst_20 = arith.constant dense<0.000000e+00> : vector<16xf32>
    %52 = vector.multi_reduction <add>, %49, %cst_20 [1] : vector<16x128xf32> to vector<16xf32>
    %53 = vector.shape_cast %52 : vector<16xf32> to vector<16x1xf32>
    %cst_21 = arith.constant 1.280000e+02 : f32
    %54 = vector.broadcast %cst_21 : f32 to vector<16x1xf32>
    %55 = arith.divf %53, %54 : vector<16x1xf32>
    %56 = vector.broadcast %55 : vector<16x1xf32> to vector<16x128xf32>
    %57 = arith.subf %49, %56 : vector<16x128xf32>
    %58 = arith.mulf %57, %57 : vector<16x128xf32>
    %cst_22 = arith.constant dense<0.000000e+00> : vector<16xf32>
    %59 = vector.multi_reduction <add>, %58, %cst_22 [1] : vector<16x128xf32> to vector<16xf32>
    %60 = vector.shape_cast %59 : vector<16xf32> to vector<16x1xf32>
    %cst_23 = arith.constant 1.280000e+02 : f32
    %61 = vector.broadcast %cst_23 : f32 to vector<16x1xf32>
    %62 = arith.divf %60, %61 : vector<16x1xf32>
    %63 = vector.broadcast %55 : vector<16x1xf32> to vector<16x128xf32>
    %64 = arith.subf %49, %63 : vector<16x128xf32>
    %cst_24 = arith.constant 9.99999974E-6 : f32
    %65 = vector.broadcast %cst_24 : f32 to vector<16x1xf32>
    %66 = arith.addf %62, %65 : vector<16x1xf32>
    %67 = math.rsqrt %66 : vector<16x1xf32>
    %68 = vector.broadcast %67 : vector<16x1xf32> to vector<16x128xf32>
    %69 = arith.mulf %64, %68 : vector<16x128xf32>
    %70 = vector.broadcast %50 : vector<1x128xf32> to vector<16x128xf32>
    %71 = arith.mulf %70, %69 : vector<16x128xf32>
    %72 = vector.broadcast %51 : vector<1x128xf32> to vector<16x128xf32>
    %73 = arith.addf %71, %72 : vector<16x128xf32>
    %c0_25 = arith.constant 0 : index
    %c512_26 = arith.constant 512 : index
    %74 = vector.load %arg4[%c0_25, %c512_26] : memref<128x1280xbf16, #tpu.memory_space<vmem>>, vector<128x256xbf16>
    %75 = arith.truncf %0 : vector<16x128xf32> to vector<16x128xbf16>
    %cst_27 = arith.constant dense<0.000000e+00> : vector<16x256xf32>
    %76 = tpu.matmul %75, %74, %cst_27 {dimension_numbers = #tpu.dot_dimension_numbers<[1], [0], [0], [1], [0, 0, 1, 1], [], []>} : vector<16x128xbf16>, vector<128x256xbf16>, vector<16x256xf32> -> vector<16x256xf32>
    %c0_28 = arith.constant 0 : index
    %c768 = arith.constant 768 : index
    %77 = vector.load %arg6[%c0_28, %c768] : memref<1x2176xf32, #tpu.memory_space<vmem>>, vector<1x256xf32>
    %78 = vector.broadcast %77 : vector<1x256xf32> to vector<16x256xf32>
    %79 = arith.addf %76, %78 : vector<16x256xf32>
    %80 = arith.truncf %79 : vector<16x256xf32> to vector<16x256xbf16>
    %81 = vector.extract_strided_slice %80 {offsets = [0, 0], sizes = [16, 128], strides = [1, 1]} : vector<16x256xbf16> to vector<16x128xbf16>
    %82 = vector.shape_cast %81 : vector<16x128xbf16> to vector<2x8x4x32xbf16>
    %83 = tpu.transpose %82, [0, 2, 1, 3] : vector<2x8x4x32xbf16> -> vector<2x4x8x32xbf16>
    %84 = vector.shape_cast %83 : vector<2x4x8x32xbf16> to vector<8x8x32xbf16>
    %85 = vector.extract_strided_slice %80 {offsets = [0, 128], sizes = [16, 128], strides = [1, 1]} : vector<16x256xbf16> to vector<16x128xbf16>
    %86 = vector.shape_cast %85 : vector<16x128xbf16> to vector<2x8x4x32xbf16>
    %87 = tpu.transpose %86, [0, 2, 1, 3] : vector<2x8x4x32xbf16> -> vector<2x4x8x32xbf16>
    %88 = vector.shape_cast %87 : vector<2x4x8x32xbf16> to vector<8x8x32xbf16>
    %c0_29 = arith.constant 0 : index
    %c768_30 = arith.constant 768 : index
    %89 = vector.load %arg4[%c0_29, %c768_30] : memref<128x1280xbf16, #tpu.memory_space<vmem>>, vector<128x128xbf16>
    %90 = arith.truncf %73 : vector<16x128xf32> to vector<16x128xbf16>
    %cst_31 = arith.constant dense<0.000000e+00> : vector<16x128xf32>
    %91 = tpu.matmul %90, %89, %cst_31 {dimension_numbers = #tpu.dot_dimension_numbers<[1], [0], [0], [1], [0, 0, 1, 1], [], []>} : vector<16x128xbf16>, vector<128x128xbf16>, vector<16x128xf32> -> vector<16x128xf32>
    %c0_32 = arith.constant 0 : index
    %c1024 = arith.constant 1024 : index
    %92 = vector.load %arg6[%c0_32, %c1024] : memref<1x2176xf32, #tpu.memory_space<vmem>>, vector<1x128xf32>
    %93 = vector.broadcast %92 : vector<1x128xf32> to vector<16x128xf32>
    %94 = arith.addf %91, %93 : vector<16x128xf32>
    %95 = arith.truncf %94 : vector<16x128xf32> to vector<16x128xbf16>
    %96 = vector.shape_cast %95 : vector<16x128xbf16> to vector<2x8x4x32xbf16>
    %97 = tpu.transpose %96, [0, 2, 1, 3] : vector<2x8x4x32xbf16> -> vector<2x4x8x32xbf16>
    %98 = vector.shape_cast %97 : vector<2x4x8x32xbf16> to vector<8x8x32xbf16>
    "tpu.trace_start"() <{level = 10 : i32, message = "hqd,hkd->hqk"}> : () -> ()
    %cst_33 = arith.constant dense<0.000000e+00> : vector<8x8x8xf32>
    %99 = tpu.matmul %98, %84, %cst_33 {dimension_numbers = #tpu.dot_dimension_numbers<[2], [2], [1], [1], [0, 0, 0, 1, 1, 1], [0], [0]>} : vector<8x8x32xbf16>, vector<8x8x32xbf16>, vector<8x8x8xf32> -> vector<8x8x8xf32>
    "tpu.trace_stop"() : () -> ()
    %cst_34 = arith.constant 0.176776692 : f32
    %100 = vector.broadcast %cst_34 : f32 to vector<8x8x8xf32>
    %101 = arith.mulf %99, %100 : vector<8x8x8xf32>
    %cst_35 = arith.constant dense<0xFF800000> : vector<8x8xf32>
    %102 = vector.multi_reduction <maximumf>, %101, %cst_35 [2] : vector<8x8x8xf32> to vector<8x8xf32>
    %103 = vector.shape_cast %102 : vector<8x8xf32> to vector<8x8x1xf32>
    %104 = vector.broadcast %103 : vector<8x8x1xf32> to vector<8x8x8xf32>
    %105 = arith.subf %101, %104 : vector<8x8x8xf32>
    %106 = math.exp %105 : vector<8x8x8xf32>
    %cst_36 = arith.constant dense<0.000000e+00> : vector<8x8xf32>
    %107 = vector.multi_reduction <add>, %106, %cst_36 [2] : vector<8x8x8xf32> to vector<8x8xf32>
    %108 = vector.shape_cast %107 : vector<8x8xf32> to vector<8x8x1xf32>
    %109 = tpu.reciprocal %108 {approx = true} : vector<8x8x1xf32> -> vector<8x8x1xf32>
    %110 = vector.broadcast %109 : vector<8x8x1xf32> to vector<8x8x8xf32>
    %111 = arith.mulf %106, %110 : vector<8x8x8xf32>
    %112 = arith.truncf %111 : vector<8x8x8xf32> to vector<8x8x8xbf16>
    "tpu.trace_start"() <{level = 10 : i32, message = "hqk,hkd->hqd"}> : () -> ()
    %cst_37 = arith.constant dense<0.000000e+00> : vector<8x8x32xf32>
    %113 = tpu.matmul %112, %88, %cst_37 {dimension_numbers = #tpu.dot_dimension_numbers<[2], [1], [1], [2], [0, 0, 0, 1, 1, 2], [0], [0]>} : vector<8x8x8xbf16>, vector<8x8x32xbf16>, vector<8x8x32xf32> -> vector<8x8x32xf32>
    "tpu.trace_stop"() : () -> ()
    %114 = vector.shape_cast %113 : vector<8x8x32xf32> to vector<2x4x8x32xf32>
    %115 = tpu.transpose %114, [0, 2, 1, 3] : vector<2x4x8x32xf32> -> vector<2x8x4x32xf32>
    %116 = vector.shape_cast %115 : vector<2x8x4x32xf32> to vector<16x128xf32>
    %c0_38 = arith.constant 0 : index
    %c896 = arith.constant 896 : index
    %117 = vector.load %arg4[%c0_38, %c896] : memref<128x1280xbf16, #tpu.memory_space<vmem>>, vector<128x128xbf16>
    %118 = arith.truncf %116 : vector<16x128xf32> to vector<16x128xbf16>
    %cst_39 = arith.constant dense<0.000000e+00> : vector<16x128xf32>
    %119 = tpu.matmul %118, %117, %cst_39 {dimension_numbers = #tpu.dot_dimension_numbers<[1], [0], [0], [1], [0, 0, 1, 1], [], []>} : vector<16x128xbf16>, vector<128x128xbf16>, vector<16x128xf32> -> vector<16x128xf32>
    %c0_40 = arith.constant 0 : index
    %c1152 = arith.constant 1152 : index
    %120 = vector.load %arg6[%c0_40, %c1152] : memref<1x2176xf32, #tpu.memory_space<vmem>>, vector<1x128xf32>
    %121 = vector.broadcast %120 : vector<1x128xf32> to vector<16x128xf32>
    %122 = arith.addf %119, %121 : vector<16x128xf32>
    %123 = arith.addf %122, %73 : vector<16x128xf32>
    %c0_41 = arith.constant 0 : index
    %c1280 = arith.constant 1280 : index
    %124 = vector.load %arg6[%c0_41, %c1280] : memref<1x2176xf32, #tpu.memory_space<vmem>>, vector<1x128xf32>
    %c0_42 = arith.constant 0 : index
    %c1408 = arith.constant 1408 : index
    %125 = vector.load %arg6[%c0_42, %c1408] : memref<1x2176xf32, #tpu.memory_space<vmem>>, vector<1x128xf32>
    %cst_43 = arith.constant dense<0.000000e+00> : vector<16xf32>
    %126 = vector.multi_reduction <add>, %123, %cst_43 [1] : vector<16x128xf32> to vector<16xf32>
    %127 = vector.shape_cast %126 : vector<16xf32> to vector<16x1xf32>
    %cst_44 = arith.constant 1.280000e+02 : f32
    %128 = vector.broadcast %cst_44 : f32 to vector<16x1xf32>
    %129 = arith.divf %127, %128 : vector<16x1xf32>
    %130 = vector.broadcast %129 : vector<16x1xf32> to vector<16x128xf32>
    %131 = arith.subf %123, %130 : vector<16x128xf32>
    %132 = arith.mulf %131, %131 : vector<16x128xf32>
    %cst_45 = arith.constant dense<0.000000e+00> : vector<16xf32>
    %133 = vector.multi_reduction <add>, %132, %cst_45 [1] : vector<16x128xf32> to vector<16xf32>
    %134 = vector.shape_cast %133 : vector<16xf32> to vector<16x1xf32>
    %cst_46 = arith.constant 1.280000e+02 : f32
    %135 = vector.broadcast %cst_46 : f32 to vector<16x1xf32>
    %136 = arith.divf %134, %135 : vector<16x1xf32>
    %137 = vector.broadcast %129 : vector<16x1xf32> to vector<16x128xf32>
    %138 = arith.subf %123, %137 : vector<16x128xf32>
    %cst_47 = arith.constant 9.99999974E-6 : f32
    %139 = vector.broadcast %cst_47 : f32 to vector<16x1xf32>
    %140 = arith.addf %136, %139 : vector<16x1xf32>
    %141 = math.rsqrt %140 : vector<16x1xf32>
    %142 = vector.broadcast %141 : vector<16x1xf32> to vector<16x128xf32>
    %143 = arith.mulf %138, %142 : vector<16x128xf32>
    %144 = vector.broadcast %124 : vector<1x128xf32> to vector<16x128xf32>
    %145 = arith.mulf %144, %143 : vector<16x128xf32>
    %146 = vector.broadcast %125 : vector<1x128xf32> to vector<16x128xf32>
    %147 = arith.addf %145, %146 : vector<16x128xf32>
    %c0_48 = arith.constant 0 : index
    %c1024_49 = arith.constant 1024 : index
    %148 = vector.load %arg4[%c0_48, %c1024_49] : memref<128x1280xbf16, #tpu.memory_space<vmem>>, vector<128x256xbf16>
    %149 = arith.truncf %147 : vector<16x128xf32> to vector<16x128xbf16>
    %cst_50 = arith.constant dense<0.000000e+00> : vector<16x256xf32>
    %150 = tpu.matmul %149, %148, %cst_50 {dimension_numbers = #tpu.dot_dimension_numbers<[1], [0], [0], [1], [0, 0, 1, 1], [], []>} : vector<16x128xbf16>, vector<128x256xbf16>, vector<16x256xf32> -> vector<16x256xf32>
    %c0_51 = arith.constant 0 : index
    %c1536 = arith.constant 1536 : index
    %151 = vector.load %arg6[%c0_51, %c1536] : memref<1x2176xf32, #tpu.memory_space<vmem>>, vector<1x256xf32>
    %152 = vector.broadcast %151 : vector<1x256xf32> to vector<16x256xf32>
    %153 = arith.addf %150, %152 : vector<16x256xf32>
    %cst_52 = arith.constant 0.000000e+00 : f32
    %154 = vector.broadcast %cst_52 : f32 to vector<16x256xf32>
    %155 = arith.maximumf %153, %154 : vector<16x256xf32>
    %c0_53 = arith.constant 0 : index
    %c0_54 = arith.constant 0 : index
    %156 = vector.load %arg5[%c0_53, %c0_54] : memref<256x128xbf16, #tpu.memory_space<vmem>>, vector<256x128xbf16>
    %157 = arith.truncf %155 : vector<16x256xf32> to vector<16x256xbf16>
    %cst_55 = arith.constant dense<0.000000e+00> : vector<16x128xf32>
    %158 = tpu.matmul %157, %156, %cst_55 {dimension_numbers = #tpu.dot_dimension_numbers<[1], [0], [0], [1], [0, 0, 1, 1], [], []>} : vector<16x256xbf16>, vector<256x128xbf16>, vector<16x128xf32> -> vector<16x128xf32>
    %c0_56 = arith.constant 0 : index
    %c1792 = arith.constant 1792 : index
    %159 = vector.load %arg6[%c0_56, %c1792] : memref<1x2176xf32, #tpu.memory_space<vmem>>, vector<1x128xf32>
    %160 = vector.broadcast %159 : vector<1x128xf32> to vector<16x128xf32>
    %161 = arith.addf %158, %160 : vector<16x128xf32>
    %162 = arith.addf %161, %147 : vector<16x128xf32>
    %c0_57 = arith.constant 0 : index
    %c1920 = arith.constant 1920 : index
    %163 = vector.load %arg6[%c0_57, %c1920] : memref<1x2176xf32, #tpu.memory_space<vmem>>, vector<1x128xf32>
    %c0_58 = arith.constant 0 : index
    %c2048 = arith.constant 2048 : index
    %164 = vector.load %arg6[%c0_58, %c2048] : memref<1x2176xf32, #tpu.memory_space<vmem>>, vector<1x128xf32>
    %cst_59 = arith.constant dense<0.000000e+00> : vector<16xf32>
    %165 = vector.multi_reduction <add>, %162, %cst_59 [1] : vector<16x128xf32> to vector<16xf32>
    %166 = vector.shape_cast %165 : vector<16xf32> to vector<16x1xf32>
    %cst_60 = arith.constant 1.280000e+02 : f32
    %167 = vector.broadcast %cst_60 : f32 to vector<16x1xf32>
    %168 = arith.divf %166, %167 : vector<16x1xf32>
    %169 = vector.broadcast %168 : vector<16x1xf32> to vector<16x128xf32>
    %170 = arith.subf %162, %169 : vector<16x128xf32>
    %171 = arith.mulf %170, %170 : vector<16x128xf32>
    %cst_61 = arith.constant dense<0.000000e+00> : vector<16xf32>
    %172 = vector.multi_reduction <add>, %171, %cst_61 [1] : vector<16x128xf32> to vector<16xf32>
    %173 = vector.shape_cast %172 : vector<16xf32> to vector<16x1xf32>
    %cst_62 = arith.constant 1.280000e+02 : f32
    %174 = vector.broadcast %cst_62 : f32 to vector<16x1xf32>
    %175 = arith.divf %173, %174 : vector<16x1xf32>
    %176 = vector.broadcast %168 : vector<16x1xf32> to vector<16x128xf32>
    %177 = arith.subf %162, %176 : vector<16x128xf32>
    %cst_63 = arith.constant 9.99999974E-6 : f32
    %178 = vector.broadcast %cst_63 : f32 to vector<16x1xf32>
    %179 = arith.addf %175, %178 : vector<16x1xf32>
    %180 = math.rsqrt %179 : vector<16x1xf32>
    %181 = vector.broadcast %180 : vector<16x1xf32> to vector<16x128xf32>
    %182 = arith.mulf %177, %181 : vector<16x128xf32>
    %183 = vector.broadcast %163 : vector<1x128xf32> to vector<16x128xf32>
    %184 = arith.mulf %183, %182 : vector<16x128xf32>
    %185 = vector.broadcast %164 : vector<1x128xf32> to vector<16x128xf32>
    %186 = arith.addf %184, %185 : vector<16x128xf32>
    %c0_64 = arith.constant 0 : index
    %c0_65 = arith.constant 0 : index
    %187 = vector.load %arg7[%c0_64, %c0_65] : memref<16x128xf32, #tpu.memory_space<vmem>>, vector<16x128xf32>
    tpu.vector_store %arg7[%c0_64, %c0_65], %186 {strides = array<i32>} : memref<16x128xf32, #tpu.memory_space<vmem>>, vector<16x128xf32>,
    return
  }
  func.func @transform_0(%arg0: i32) -> (i32, i32) {
    %c0_i32 = arith.constant 0 : i32
    %c0_i32_0 = arith.constant 0 : i32
    %c0_i32_1 = arith.constant 0 : i32
    return %c0_i32, %c0_i32_0 : i32, i32
  }
  func.func @transform_1(%arg0: i32) -> (i32, i32) {
    %c0_i32 = arith.constant 0 : i32
    %c0_i32_0 = arith.constant 0 : i32
    %c0_i32_1 = arith.constant 0 : i32
    return %c0_i32, %c0_i32_0 : i32, i32
  }
  func.func @transform_2(%arg0: i32) -> (i32, i32) {
    %c0_i32 = arith.constant 0 : i32
    %c0_i32_0 = arith.constant 0 : i32
    %c0_i32_1 = arith.constant 0 : i32
    return %c0_i32, %c0_i32_0 : i32, i32
  }
  func.func @transform_3(%arg0: i32) -> (i32, i32) {
    %c0_i32 = arith.constant 0 : i32
    %c0_i32_0 = arith.constant 0 : i32
    %c0_i32_1 = arith.constant 0 : i32
    return %c0_i32, %c0_i32_0 : i32, i32
  }
  func.func @transform_4(%arg0: i32) -> (i32, i32) {
    %c0_i32 = arith.constant 0 : i32
    %c0_i32_0 = arith.constant 0 : i32
    %c0_i32_1 = arith.constant 0 : i32
    return %c0_i32, %c0_i32_0 : i32, i32
  }
  func.func @transform_5(%arg0: i32) -> (i32, i32) {
    %c0_i32 = arith.constant 0 : i32
    %c0_i32_0 = arith.constant 0 : i32
    %c0_i32_1 = arith.constant 0 : i32
    return %c0_i32, %c0_i32_0 : i32, i32
  }
  func.func @transform_6(%arg0: i32) -> (i32, i32) {
    %c0_i32 = arith.constant 0 : i32
    %c0_i32_0 = arith.constant 0 : i32
    %c0_i32_1 = arith.constant 0 : i32
    return %c0_i32, %c0_i32_0 : i32, i32
  }
}

</mosaic_0001>

<bundles_post_ra>
// kernel: tpu_custom_call.1
= control target key start
LH: loop header
LB: loop body
LE: loop exit
PB: predicated region body
PF: predicated region fallthrough
CT: control target
= control target key end

     0   :  { %11 = vsyncpa [#allocation3], 0  ;;  %s7220_s0 = inlined_call_operand.hbm [shape: f32[16,128], index: 0, kind: input, shape index: {}]   ;;  %s7221_s1 = inlined_call_operand.hbm [shape: f32[16,128], index: 1, kind: input, shape index: {}]   ;;  %s7222_s2 = inlined_call_operand.hbm [shape: f32[8,8], index: 2, kind: input, shape index: {}]   ;;  %s7223_s3 = inlined_call_operand.hbm [shape: bf16[128,1280], index: 3, kind: input, shape index: {}]   ;;  %s7224_s4 = inlined_call_operand.hbm [shape: bf16[256,128], index: 4, kind: input, shape index: {}]   ;;  %s7225_s5 = inlined_call_operand.vmem [shape: f32[1,2176], index: 5, kind: input, shape index: {}]   ;;  %s7226_s6 = inlined_call_operand.hbm [shape: f32[16,128], index: 6, kind: output, shape index: {}]  }
   0x1   :  { %12 = vsyncpa [#allocation6], 0 }
   0x2   :  { %13 = vsyncpa [#allocation9], 0 }
   0x3   :  { %14 = vsyncpa [#allocation4], 0  ;;  %s6265_s21 = smov [#allocation5]   ;;  %s6266_s23 = smov [#allocation8]  }
   0x4   :  { %s32_s22 = sshll.u32 %s6265_s21, 4  ;;  %s54_s24 = sshll.u32 %s6266_s23, 4  ;;  %s33_s22 = int_to_ptr.vmem [resolvable:$true] %s32_s22  ;;  %s6319_s24 = int_to_ptr.vmem [resolvable:$true] %s54_s24 }
   0x5   :  { %s6125_s27 = scalar_lea.hbm %s7221_s1, 256 }
   0x6   :  { %p6126_p0 = scmp.ne.s32.totalorder %s7221_s1, %s6125_s27  ;;  %p6129_p1 = scmp.lt.u32.totalorder %s6125_s27, %s7221_s1 }
   0x8   :  { %p6131_p2 = pnand %p6129_p1, %p6126_p0 }
   0xa   :  { %6134 = shalt.err (!%p6131_p2)
}
   0xb   :  { %s6135_s8 = scalar_lea.vmem %s33_s22, 256  ;;  %p6140_p4 = scmp.lt.s32.totalorder %s33_s22, %s33_s22 }
   0xc   :  { %p6136_p3 = scmp.ne.s32.totalorder %s33_s22, %s6135_s8  ;;  %p6141_p5 = scmp.lt.s32.totalorder %s6135_s8, %s6135_s8 }
   0xe   :  { %p6142_p6 = por %p6141_p5, %p6140_p4 }
  0x10   :  { %p6143_p7 = pnand %p6142_p6, %p6136_p3 }
  0x12   :  { %6146 = shalt.err (!%p6143_p7)
}
  0x13   :  { %s6267_s9 = smov 128   ;;  %s6268_s10 = smov 8  }
  0x14   :  { %38 = dma.hbm_to_vmem [thread:$0]  %s7221_s1, 256, %s33_s22, [#allocation6], %s6267_s9, %s6267_s9, %s6268_s10  }
  0x15   :  { %s6147_s15 = scalar_lea.hbm %s7223_s3, 10240 }
  0x16   :  { %p6148_p8 = scmp.ne.s32.totalorder %s7223_s3, %s6147_s15  ;;  %p6151_p9 = scmp.lt.u32.totalorder %s6147_s15, %s7223_s3 }
  0x18   :  { %p6153_p10 = pnand %p6151_p9, %p6148_p8 }
  0x1a   :  { %6156 = shalt.err (!%p6153_p10)
}
  0x1b   :  { %s6157_s20 = scalar_lea.vmem %s6319_s24, 10240  ;;  %p6162_p12 = scmp.lt.s32.totalorder %s6319_s24, %s6319_s24 }
  0x1c   :  { %p6158_p11 = scmp.ne.s32.totalorder %s6319_s24, %s6157_s20  ;;  %p6163_p13 = scmp.lt.s32.totalorder %s6157_s20, %s6157_s20 }
  0x1e   :  { %p6164_p0 = por %p6163_p13, %p6162_p12 }
  0x20   :  { %p6165_p1 = pnand %p6164_p0, %p6158_p11 }
  0x22   :  { %6168 = shalt.err (!%p6165_p1)
}
  0x23   :  { %s6269_s1 = smov 640   ;;  %s6270_s21 = smov 40  }
  0x24   :  { %60 = dma.hbm_to_vmem [thread:$0]  %s7223_s3, 10240, %s6319_s24, [#allocation9], %s6269_s1, %s6269_s1, %s6270_s21  }
  0x25   :  { %s6271_s25 = smov [#allocation2]   ;;  %s6272_s27 = smov [#allocation7]  }
  0x26   :  { %s20_s26 = sshll.u32 %s6271_s25, 4  ;;  %s45_s28 = sshll.u32 %s6272_s27, 4  ;;  %s21_s26 = int_to_ptr.vmem [resolvable:$true] %s20_s26  ;;  %s46_s28 = int_to_ptr.vmem [resolvable:$true] %s45_s28 }
  0x27   :  { %s6169_s7 = scalar_lea.hbm %s7220_s0, 256 }
  0x28   :  { %p6170_p2 = scmp.ne.s32.totalorder %s7220_s0, %s6169_s7  ;;  %p6173_p3 = scmp.lt.u32.totalorder %s6169_s7, %s7220_s0 }
  0x2a   :  { %p6175_p4 = pnand %p6173_p3, %p6170_p2 }
  0x2c   :  { %6178 = shalt.err (!%p6175_p4)
}
  0x2d   :  { %s6179_s3 = scalar_lea.vmem %s21_s26, 256  ;;  %p6184_p6 = scmp.lt.s32.totalorder %s21_s26, %s21_s26 }
  0x2e   :  { %p6180_p5 = scmp.ne.s32.totalorder %s21_s26, %s6179_s3  ;;  %p6185_p7 = scmp.lt.s32.totalorder %s6179_s3, %s6179_s3 }
  0x30   :  { %p6186_p8 = por %p6185_p7, %p6184_p6 }
  0x32   :  { %p6187_p9 = pnand %p6186_p8, %p6180_p5 }
  0x34   :  { %6190 = shalt.err (!%p6187_p9)
}
  0x35   :  { %26 = dma.hbm_to_vmem [thread:$0]  %s7220_s0, 256, %s21_s26, [#allocation3], %s6267_s9, %s6267_s9, %s6268_s10  }
  0x36   :  { %s6191_s17 = scalar_lea.hbm %s7222_s2, 128 }
  0x37   :  { %p6192_p10 = scmp.ne.s32.totalorder %s7222_s2, %s6191_s17  ;;  %p6195_p11 = scmp.lt.u32.totalorder %s6191_s17, %s7222_s2 }
  0x39   :  { %p6197_p12 = pnand %p6195_p11, %p6192_p10 }
  0x3b   :  { %6200 = shalt.err (!%p6197_p12)
}
  0x3c   :  { %s6201_s21 = scalar_lea.vmem %s46_s28, 128  ;;  %p6206_p0 = scmp.lt.s32.totalorder %s46_s28, %s46_s28 }
  0x3d   :  { %p6202_p13 = scmp.ne.s32.totalorder %s46_s28, %s6201_s21  ;;  %p6207_p1 = scmp.lt.s32.totalorder %s6201_s21, %s6201_s21 }
  0x3f   :  { %p6208_p2 = por %p6207_p1, %p6206_p0 }
  0x41   :  { %p6209_p3 = pnand %p6208_p2, %p6202_p13 }
  0x43   :  { %6212 = shalt.err (!%p6209_p3)
}
  0x44   :  { %48 = dma.hbm_to_vmem [thread:$0]  %s7222_s2, 128, %s46_s28, [#allocation6]  }
  0x45   :  { %s6273_s23 = smov [#allocation10]   ;;  %s6213_s29 = scalar_lea.hbm %s7224_s4, 2048 }
  0x46   :  { %s66_s25 = sshll.u32 %s6273_s23, 4  ;;  %p6214_p4 = scmp.ne.s32.totalorder %s7224_s4, %s6213_s29  ;;  %s67_s25 = int_to_ptr.vmem [resolvable:$true] %s66_s25 }
  0x47   :  { %p6217_p5 = scmp.lt.u32.totalorder %s6213_s29, %s7224_s4 }
  0x49   :  { %p6219_p6 = pnand %p6217_p5, %p6214_p4 }
  0x4b   :  { %6222 = shalt.err (!%p6219_p6)
}
  0x4c   :  { %s6223_s12 = scalar_lea.vmem %s67_s25, 2048  ;;  %p6228_p8 = scmp.lt.s32.totalorder %s67_s25, %s67_s25 }
  0x4d   :  { %p6224_p7 = scmp.ne.s32.totalorder %s67_s25, %s6223_s12  ;;  %p6229_p9 = scmp.lt.s32.totalorder %s6223_s12, %s6223_s12 }
  0x4f   :  { %p6230_p10 = por %p6229_p9, %p6228_p8 }
  0x51   :  { %p6231_p11 = pnand %p6230_p10, %p6224_p7 }
  0x53   :  { %6234 = shalt.err (!%p6231_p11)
}
  0x54   :  { %s6274_s2 = smov 64   ;;  %s6275_s28 = smov 4  }
  0x55   :  { %72 = dma.hbm_to_vmem [thread:$0]  %s7224_s4, 2048, %s67_s25, [#allocation9], %s6274_s2, %s6274_s2, %s6275_s28  }
  0x56   :  { %6257 = dma.done.wait [#allocation3], 256  }
  0x57   :  { %6258 = vsyncadd [#allocation3], 4294967040 }
  0x58   :  { %6259 = dma.done.wait [#allocation6], 384  }
  0x59   :  { %6260 = vsyncadd [#allocation6], 4294966912 }
  0x5a   :  { %6261 = dma.done.wait [#allocation9], 12288  }
  0x5b   :  { %6262 = vsyncadd [#allocation9], 4294955008  ;;  %v6276_v0 = vmov 0   ;;  %v5927_v1 = vld [vmem:[#allocation8 + $0x4] ss:$40 sps:$4 sm:$0xff]   ;;  %v94_v18 = vld [vmem:[#allocation5 + $0x8] sm:$0xff]  ;;  %v131_v24 = vlaneseq }
  0x5c   :  { %306 = vmatprep.mubr.bf16.mxu0 %v6276_v0  ;;  %v5929_v2 = vld [vmem:[#allocation8] ss:$40 sps:$4 sm:$0xff]   ;;  %274 = vmatprep.subr.bf16.mxu0 %v5927_v1  ;;  %v5930_v3 = vld [vmem:[#allocation8 + $0x54] ss:$40 sps:$4 sm:$0xff]   ;;  %v5932_v4 = vld [vmem:[#allocation8 + $0x50] ss:$40 sps:$4 sm:$0xff]   ;;  %v6436_v51 = vpack.i.b16 %v6276_v0, %v6276_v0 }
  0x5d   :  { %275 = vmatpush1.bf16.msra.mxu0 %v5929_v2  ;;  %v5933_v5 = vld [vmem:[#allocation8 + $0xa4] ss:$40 sps:$4 sm:$0xff]   ;;  %v5935_v6 = vld [vmem:[#allocation8 + $0xa0] ss:$40 sps:$4 sm:$0xff]   ;;  %v5936_v7 = vld [vmem:[#allocation8 + $0xf4] ss:$40 sps:$4 sm:$0xff]  }
  0x5e   :  { %276 = vmatprep.subr.bf16.mxu0 %v5930_v3  ;;  %v5938_v8 = vld [vmem:[#allocation8 + $0xf0] ss:$40 sps:$4 sm:$0xff]   ;;  %v5939_v9 = vld [vmem:[#allocation8 + $0x144] ss:$40 sps:$4 sm:$0xff]   ;;  %v5941_v10 = vld [vmem:[#allocation8 + $0x140] ss:$40 sps:$4 sm:$0xff]  }
  0x5f   :  { %v5942_v11 = vld [vmem:[#allocation8 + $0x194] ss:$40 sps:$4 sm:$0xff]   ;;  %v5944_v12 = vld [vmem:[#allocation8 + $0x190] ss:$40 sps:$4 sm:$0xff]   ;;  %v5945_v13 = vld [vmem:[#allocation8 + $0x1e4] ss:$40 sps:$4 sm:$0xff]  }
  0x60   :  { %v5947_v14 = vld [vmem:[#allocation8 + $0x1e0] ss:$40 sps:$4 sm:$0xff]   ;;  %v5948_v15 = vld [vmem:[#allocation8 + $0x234] ss:$40 sps:$4 sm:$0xff]   ;;  %v5950_v16 = vld [vmem:[#allocation8 + $0x230] ss:$40 sps:$4 sm:$0xff]  }
  0x61   :  { %277 = vmatpush1.bf16.msra.mxu0 %v5932_v4  ;;  %v93_v17 = vld [vmem:[#allocation5] sm:$0xff]  ;;  %v6277_v21 = vmov 0.0   ;;  %v5952_v22 = vld [vmem:[#allocation8 + $0x58] ss:$40 sps:$4 sm:$0xff]   ;;  %v6400_v25 = vshrl.u32 %v131_v24, 7  ;;  %s6278_s14 = smov 32  }
  0x62   :  { %278 = vmatprep.subr.bf16.mxu0 %v5933_v5  ;;  %v128_v19 = vpack.c.bf16 %v94_v18, %v93_v17  ;;  %v5951_v20 = vld [vmem:[#allocation8 + $0x8] ss:$40 sps:$4 sm:$0xff]   ;;  %5606 = vmatprep.subr.bf16.mxu1 %v6277_v21  ;;  %v5954_v26 = vld [vmem:[#allocation8 + $0xf8] ss:$40 sps:$4 sm:$0xff]   ;;  %s6279_s15 = smov 96   ;;  %vm6280_vm0 = vmmov 0  }
  0x63   :  { %5607 = vmatpush3.bf16.msra.mxu1 %v5951_v20  ;;  %v5953_v23 = vld [vmem:[#allocation8 + $0xa8] ss:$40 sps:$4 sm:$0xff]   ;;  %v6403_v27 = vsub.s32 0, %v6400_v25  ;;  %v6408_v28 = vld [vmem:[%s7225_s5] sm:$0x7]  ;;  %v6411_v29 = vsub.s32 1, %v6400_v25  ;;  %5622 = vmatprep.mubr.msk.bf16.mxu1 %vm6280_vm0, %v6277_v21 }
  0x64   :  { %5608 = vmatprep.subr.bf16.mxu1 %v6277_v21  ;;  %v5955_v38 = vld [vmem:[#allocation8 + $0x148] ss:$40 sps:$4 sm:$0xff]   ;;  %v5956_v43 = vld [vmem:[#allocation8 + $0x198] ss:$40 sps:$4 sm:$0xff]   ;;  %v6281_v46 = vmov 1983009808  }
  0x65   :  { %279 = vmatpush1.bf16.msra.mxu0 %v5935_v6  ;;  %v134_v30 = vrot.slane %v6408_v28, %v6403_v27  ;;  %v138_v32 = vrot.slane %v6408_v28, %v6411_v29  ;;  %v5957_v44 = vld [vmem:[#allocation8 + $0x1e8] ss:$40 sps:$4 sm:$0xff]   ;;  %v5958_v45 = vld [vmem:[#allocation8 + $0x238] ss:$40 sps:$4 sm:$0xff]   ;;  %v392_v47 = vunpack.c.l.s4 %v6281_v46  ;;  %v6282_v48 = vmov 1934713408  }
  0x66   :  { %280 = vmatprep.subr.bf16.mxu0 %v5936_v7  ;;  %v423_v49 = vunpack.c.l.s4 %v6282_v48  ;;  %vm1204_vm1 = vcmask 261120   ;;  %vm1589_vm2 = vcmask 64512   ;;  %vm1689_vm3 = vcmask 1043456   ;;  %s6283_s24 = smov [#allocation11]  }
  0x67   :  { %5609 = vmatpush3.bf16.msra.mxu1 %v5952_v22  ;;  %v393_v50 = vunpack.c.0.s8 %v392_v47  ;;  %vm2353_vm4 = vcmask 523264   ;;  %vm2356_vm5 = vcmask 785408  }
  0x68   :  { %5610 = vmatprep.subr.bf16.mxu1 %v6277_v21  ;;  %v424_v52 = vunpack.c.0.s8 %v423_v49 }
  0x69   :  { %281 = vmatpush1.bf16.msra.mxu0 %v5938_v8  ;;  %v6439_v55 = vsub.s32 %v393_v50, %v6400_v25 }
  0x6a   :  { %282 = vmatprep.subr.bf16.mxu0 %v5939_v9  ;;  %v6443_v61 = vsub.s32 %v424_v52, %v6400_v25 }
  0x6b   :  { %5611 = vmatpush3.bf16.msra.mxu1 %v5953_v23 }
  0x6c   :  { %5612 = vmatprep.subr.bf16.mxu1 %v6277_v21 }
  0x6d   :  { %283 = vmatpush1.bf16.msra.mxu0 %v5941_v10 }
  0x6e   :  { %284 = vmatprep.subr.bf16.mxu0 %v5942_v11 }
  0x6f   :  { %5613 = vmatpush3.bf16.msra.mxu1 %v5954_v26 }
  0x70   :  { %5614 = vmatprep.subr.bf16.mxu1 %v6277_v21 }
  0x71   :  { %285 = vmatpush1.bf16.msra.mxu0 %v5944_v12 }
  0x72   :  { %286 = vmatprep.subr.bf16.mxu0 %v5945_v13 }
  0x73   :  { %5615 = vmatpush3.bf16.msra.mxu1 %v5955_v38 }
  0x74   :  { %5616 = vmatprep.subr.bf16.mxu1 %v6277_v21 }
  0x75   :  { %287 = vmatpush1.bf16.msra.mxu0 %v5947_v14 }
  0x76   :  { %288 = vmatprep.subr.bf16.mxu0 %v5948_v15 }
  0x77   :  { %5617 = vmatpush3.bf16.msra.mxu1 %v5956_v43 }
  0x78   :  { %5618 = vmatprep.subr.bf16.mxu1 %v6277_v21 }
  0x79   :  { %289 = vmatpush1.bf16.msra.mxu0 %v5950_v16 }
  0x7a   :  { %5650 = vmatprep.subr.bf16.mxu0 %v6277_v21 }
  0x7b   :  { %5619 = vmatpush3.bf16.msra.mxu1 %v5957_v44 }
  0x7c   :  { %307 = vmatmul.mubr.bf16.vlgmr.msra.gmra.mrb[0].mxu0 %v128_v19  ;;  %5620 = vmatprep.subr.bf16.mxu1 %v6277_v21 }
  0x7d   :  { %5652 = vmatprep.mubr.msk.bf16.mxu0 %vm6280_vm0, %v6277_v21 }
  0x7f   :  { %5621 = vmatpush3.bf16.msra.mxu1 %v5958_v45 }
  0x80   :  { %5626 = vmatprep.subr.bf16.mxu1 %v6277_v21 }
  0x82   :  { %5623 = vmatmul.mubr.bf16.vlgmr.msra.gmra.mrb[0].mxu1 %v128_v19 }
  0x83   :  { %5628 = vmatprep.mubr.msk.bf16.mxu1 %vm6280_vm0, %v6277_v21 }
 0x14f   :  { %v308_v31 = vpop.f32.mrb[0].mxu0 }
 0x150   :  { %v310_v33 = vpop.f32.mrb[1].mxu0  ;;  %v309_v35 = vadd.f32 %v308_v31, %v134_v30 }
 0x151   :  { %v312_v34 = vpop.f32.mrb[2].mxu0  ;;  %v311_v39 = vadd.f32 %v310_v33, %v138_v32 }
 0x152   :  { %v313_v36 = vadd.f32 %v312_v34, %v134_v30  ;;  %v314_v37 = vpop.f32.mrb[3].mxu0 }
 0x153   :  { %v315_v40 = vadd.f32 %v314_v37, %v138_v32 }
 0x154   :  { %v358_v41 = vpack.c.bf16 %v313_v36, %v309_v35 }
 0x155   :  { %v359_v42 = vpack.c.bf16 %v315_v40, %v311_v39 }
 0x156   :  { %v372_v1 = vshrl.u32 %v358_v41, 16 }
 0x157   :  { %651 = vrot.lane.b32.xlu1 %v359_v42, %s6278_s14  ;;  %647 = vrot.lane.b32.xlu0 %v359_v42, %s6279_s15  ;;  %v657_v57 = vshrl.u32 %v359_v42, 16 }
 0x15b   :  { %649 = vrot.lane.b32.xlu0 %v359_v42, %s6274_s2  ;;  %362 = vrot.lane.b32.xlu1 %v358_v41, %s6279_s15 }
 0x15f   :  { %364 = vrot.lane.b32.xlu0 %v358_v41, %s6274_s2  ;;  %366 = vrot.lane.b32.xlu1 %v358_v41, %s6278_s14 }
 0x1c9   :  { %v652_v53 = vpop.permute.xlu1 %651  ;;  %v648_v54 = vpop.permute.xlu0 %647 }
 0x1ca   :  { %v655_v56 = vpack.i.b16 %v648_v54, %v359_v42  ;;  %v658_v58 = vshrl.u32 %v648_v54, 16  ;;  %v666_v2 = vshrl.u32 %v652_v53, 16 }
 0x1cc   :  { %v659_v59 = vpack.i.b16 %v658_v58, %v657_v57  ;;  %v669_v60 = vcombine.high %v655_v56, %v6436_v51  ;;  %v676_v3 = vrot.slane %v655_v56, %v6439_v55 }
 0x1cd   :  { %v650_v62 = vpop.permute.xlu0 %649  ;;  %v363_v63 = vpop.permute.xlu1 %362 }
 0x1ce   :  { %v735_v4 = vcombine.high %v659_v59, %v6436_v51  ;;  %v663_v5 = vpack.i.b16 %v652_v53, %v650_v62  ;;  %v683_v6 = vrot.slane %v669_v60, %v6439_v55  ;;  %v665_v7 = vshrl.u32 %v650_v62, 16 }
 0x1cf   :  { %v370_v8 = vpack.i.b16 %v363_v63, %v358_v41  ;;  %v373_v9 = vshrl.u32 %v363_v63, 16  ;;  %v742_v10 = vrot.slane %v659_v59, %v6439_v55 }
 0x1d0   :  { %v749_v11 = vrot.slane %v735_v4, %v6439_v55  ;;  %v684_v12 = vcombine.high %v663_v5, %v6436_v51  ;;  %v691_v13 = vrot.slane %v663_v5, %v6439_v55  ;;  %v667_v14 = vpack.i.b16 %v666_v2, %v665_v7 }
 0x1d1   :  { %v374_v15 = vpack.i.b16 %v373_v9, %v372_v1  ;;  %v390_v16 = vcombine.high %v370_v8, %v6436_v51  ;;  %v397_v17 = vrot.slane %v370_v8, %v6439_v55  ;;  %v365_v18 = vpop.permute.xlu0 %364  ;;  %v367_v48 = vpop.permute.xlu1 %366 }
 0x1d2   :  { %v698_v19 = vrot.slane %v684_v12, %v6439_v55  ;;  %v699_v20 = vcombine.low %v676_v3, %v691_v13  ;;  %v700_v22 = vcombine.high %v676_v3, %v691_v13  ;;  %v380_v23 = vshrl.u32 %v365_v18, 16 }
 0x1d3   :  { %v750_v24 = vcombine.high %v667_v14, %v6436_v51  ;;  %v757_v26 = vrot.slane %v667_v14, %v6439_v55  ;;  %v404_v30 = vrot.slane %v390_v16, %v6439_v55  ;;  %v456_v31 = vcombine.high %v374_v15, %v6436_v51 }
 0x1d4   :  { %v707_v32 = vrot.slane %v699_v20, %v6443_v61  ;;  %v714_v33 = vrot.slane %v700_v22, %v6443_v61  ;;  %v715_v34 = vcombine.low %v683_v6, %v698_v19  ;;  %v716_v35 = vcombine.high %v683_v6, %v698_v19 }
 0x1d5   :  { %v764_v36 = vrot.slane %v750_v24, %v6439_v55  ;;  %v765_v37 = vcombine.low %v742_v10, %v757_v26  ;;  %v766_v38 = vcombine.high %v742_v10, %v757_v26  ;;  %v6463_v39 = vrot.slane %v374_v15, %v6439_v55 }
 0x1d6   :  { %v723_v40 = vrot.slane %v715_v34, %v6443_v61  ;;  %v730_v41 = vrot.slane %v716_v35, %v6443_v61  ;;  %v801_v42 = vcombine.low %v707_v32, %v714_v33  ;;  %v5342_v43 = vcombine.high %v707_v32, %v714_v33 }
 0x1d7   :  { %v773_v44 = vrot.slane %v765_v37, %v6443_v61  ;;  %v780_v45 = vrot.slane %v766_v38, %v6443_v61  ;;  %v781_v46 = vcombine.low %v749_v11, %v764_v36  ;;  %v782_v47 = vcombine.high %v749_v11, %v764_v36 }
 0x1d8   :  { %v808_v49 = vrot.slane %v801_v42, %v6439_v55  ;;  %v816_v50 = vrot.slane %v5342_v43, %v6439_v55  ;;  %v851_v52 = vcombine.low %v723_v40, %v730_v41  ;;  %v5344_v53 = vcombine.high %v723_v40, %v730_v41 }
 0x1d9   :  { %v789_v54 = vrot.slane %v781_v46, %v6443_v61  ;;  %v796_v56 = vrot.slane %v782_v47, %v6443_v61  ;;  %v826_v57 = vcombine.low %v773_v44, %v780_v45  ;;  %v5343_v58 = vcombine.high %v773_v44, %v780_v45 }
 0x1da   :  { %v858_v59 = vrot.slane %v851_v52, %v6439_v55  ;;  %v866_v60 = vrot.slane %v5344_v53, %v6439_v55  ;;  %v470_v62 = vrot.slane %v456_v31, %v6439_v55  ;;  %v378_v63 = vpack.i.b16 %v367_v48, %v365_v18 }
 0x1db   :  { %v833_v1 = vrot.slane %v826_v57, %v6439_v55  ;;  %v841_v2 = vrot.slane %v5343_v58, %v6439_v55  ;;  %v876_v3 = vcombine.low %v789_v54, %v796_v56  ;;  %v5345_v4 = vcombine.high %v789_v54, %v796_v56 }
 0x1dc   :  { %v381_v5 = vshrl.u32 %v367_v48, 16  ;;  %v405_v6 = vcombine.high %v378_v63, %v6436_v51  ;;  %v412_v7 = vrot.slane %v378_v63, %v6439_v55  ;;  %v817_v8 = vcombine.low %v808_v49, %v816_v50 }
 0x1dd   :  { %v842_v9 = vcombine.low %v833_v1, %v841_v2  ;;  %v867_v10 = vcombine.low %v858_v59, %v866_v60  ;;  %v883_v11 = vrot.slane %v876_v3, %v6439_v55  ;;  %v891_v12 = vrot.slane %v5345_v4, %v6439_v55 }
 0x1de   :  { %v382_v13 = vpack.i.b16 %v381_v5, %v380_v23  ;;  %v419_v14 = vrot.slane %v405_v6, %v6439_v55  ;;  %v420_v15 = vcombine.low %v397_v17, %v412_v7  ;;  %v421_v16 = vcombine.high %v397_v17, %v412_v7 }
 0x1df   :  { %v6484_v18 = vrot.slane %v817_v8, %v6443_v61  ;;  %v6487_v19 = vrot.slane %v842_v9, %v6443_v61  ;;  %v6490_v20 = vrot.slane %v867_v10, %v6443_v61  ;;  %v892_v22 = vcombine.low %v883_v11, %v891_v12 }
 0x1e0   :  { %v428_v24 = vrot.slane %v420_v15, %v6443_v61  ;;  %v435_v26 = vrot.slane %v421_v16, %v6443_v61  ;;  %v436_v31 = vcombine.low %v404_v30, %v419_v14  ;;  %v437_v23 = vcombine.high %v404_v30, %v419_v14 }
 0x1e1   :  { %v471_v32 = vcombine.high %v382_v13, %v6436_v51  ;;  %v478_v17 = vrot.slane %v382_v13, %v6439_v55  ;;  %v903_v33 = vpack.i.b16 %v6487_v19, %v6484_v18  ;;  %v6499_v34 = vrot.slane %v892_v22, %v6443_v61 }
 0x1e2   :  { %v444_v35 = vrot.slane %v436_v31, %v6443_v61  ;;  %v451_v36 = vrot.slane %v437_v23, %v6443_v61  ;;  %v522_v37 = vcombine.low %v428_v24, %v435_v26  ;;  %v5338_v38 = vcombine.high %v428_v24, %v435_v26 }
 0x1e3   :  { %v485_v40 = vrot.slane %v471_v32, %v6439_v55  ;;  %v486_v30 = vcombine.low %v6463_v39, %v478_v17  ;;  %v487_v41 = vcombine.high %v6463_v39, %v478_v17  ;;  %v1209_v42 = vsel %vm1204_vm1, %v903_v33, 0 }
 0x1e4   :  { %v529_v43 = vrot.slane %v522_v37, %v6439_v55  ;;  %v537_v44 = vrot.slane %v5338_v38, %v6439_v55  ;;  %v572_v45 = vcombine.low %v444_v35, %v451_v36  ;;  %v5340_v46 = vcombine.high %v444_v35, %v451_v36  ;;  %5627 = vmatpush3.bf16.xpose.msra.mxu1 %v1209_v42 }
 0x1e5   :  { %v494_v47 = vrot.slane %v486_v30, %v6443_v61  ;;  %v501_v48 = vrot.slane %v487_v41, %v6443_v61  ;;  %v502_v49 = vcombine.low %v470_v62, %v485_v40  ;;  %v503_v50 = vcombine.high %v470_v62, %v485_v40  ;;  %5632 = vmatprep.subr.bf16.mxu1 %v6277_v21 }
 0x1e6   :  { %v579_v52 = vrot.slane %v572_v45, %v6439_v55  ;;  %v587_v39 = vrot.slane %v5340_v46, %v6439_v55  ;;  %v915_v53 = vpack.i.b16 %v6499_v34, %v6490_v20  ;;  %v538_v59 = vcombine.low %v529_v43, %v537_v44 }
 0x1e7   :  { %v510_v54 = vrot.slane %v502_v49, %v6443_v61  ;;  %v517_v56 = vrot.slane %v503_v50, %v6443_v61  ;;  %v547_v57 = vcombine.low %v494_v47, %v501_v48  ;;  %v5339_v58 = vcombine.high %v494_v47, %v501_v48 }
 0x1e8   :  { %v1393_v60 = vsel %vm1204_vm1, %v915_v53, 0  ;;  %v588_v3 = vcombine.low %v579_v52, %v587_v39  ;;  %v904_v4 = vshrl.u32 %v6484_v18, 16  ;;  %v905_v5 = vshrl.u32 %v6487_v19, 16 }
 0x1e9   :  { %v554_v62 = vrot.slane %v547_v57, %v6439_v55  ;;  %v562_v63 = vrot.slane %v5339_v58, %v6439_v55  ;;  %v597_v1 = vcombine.low %v510_v54, %v517_v56  ;;  %v5341_v2 = vcombine.high %v510_v54, %v517_v56  ;;  %5651 = vmatpush3.bf16.xpose.msra.mxu0 %v1393_v60 }
 0x1ea   :  { %5662 = vmatprep.subr.bf16.mxu0 %v6277_v21  ;;  %v6528_v9 = vcombine.high %v6499_v34, %v6276_v0  ;;  %v545_v10 = vrot.slane %v538_v59, %v6443_v61  ;;  %v906_v13 = vpack.i.b16 %v905_v5, %v904_v4  ;;  %v875_v14 = vcombine.high %v6490_v20, %v6276_v0 }
 0x1eb   :  { %v563_v6 = vcombine.low %v554_v62, %v562_v63  ;;  %v604_v7 = vrot.slane %v597_v1, %v6439_v55  ;;  %v612_v8 = vrot.slane %v5341_v2, %v6439_v55  ;;  %v595_v16 = vrot.slane %v588_v3, %v6443_v61  ;;  %v351_v3 = vpop.f32.mrb[0].mxu1 }
 0x1ec   :  { %v921_v24 = vpack.i.b16 %v6528_v9, %v875_v14  ;;  %v1255_v26 = vsel %vm1204_vm1, %v906_v13, 0  ;;  %v850_v23 = vcombine.high %v6487_v19, %v6276_v0  ;;  %v825_v33 = vcombine.high %v6484_v18, %v6276_v0  ;;  %v5624_v5 = vpop.f32.mrb[1].mxu1 }
 0x1ed   :  { %v613_v11 = vcombine.low %v604_v7, %v612_v8  ;;  %v570_v12 = vrot.slane %v563_v6, %v6443_v61  ;;  %v625_v35 = vshrl.u32 %v545_v10, 16  ;;  %v596_v38 = vcombine.high %v595_v16, %v6276_v0  ;;  %v354_v6 = vpop.f32.mrb[2].mxu1 }
 0x1ee   :  { %v1485_v32 = vsel %vm1204_vm1, %v921_v24, 0  ;;  %v909_v19 = vpack.i.b16 %v850_v23, %v825_v33  ;;  %v911_v41 = vshrl.u32 %v850_v23, 16  ;;  %v910_v42 = vshrl.u32 %v825_v33, 16  ;;  %v5625_v8 = vpop.f32.mrb[3].mxu1 }
 0x1ef   :  { %v624_v15 = vpack.i.b16 %v570_v12, %v545_v10  ;;  %v620_v22 = vrot.slane %v613_v11, %v6443_v61  ;;  %v626_v17 = vshrl.u32 %v570_v12, 16  ;;  %v571_v18 = vcombine.high %v570_v12, %v6276_v0  ;;  %v6588_v11 = vld [vmem:[#allocation7] sm:$0xff] }
 0x1f0   :  { %v1301_v40 = vsel %vm1204_vm1, %v909_v19, 0  ;;  %v546_v43 = vcombine.high %v545_v10, %v6276_v0  ;;  %v912_v44 = vpack.i.b16 %v911_v41, %v910_v42  ;;  %v917_v47 = vshrl.u32 %v6499_v34, 16 }
 0x1f1   :  { %5629 = vmatmul.mubr.msk.bf16.vlgmr.msra.gmra.mrb[4].mxu1 %vm1204_vm1, %v624_v15  ;;  %v636_v31 = vpack.i.b16 %v620_v22, %v595_v16  ;;  %v621_v36 = vcombine.high %v620_v22, %v6276_v0  ;;  %v627_v37 = vpack.i.b16 %v626_v17, %v625_v35  ;;  %v632_v48 = vshrl.u32 %v571_v18, 16 }
 0x1f2   :  { %5633 = vmatpush3.bf16.xpose.msra.mxu1 %v1255_v26  ;;  %5634 = vmatprep.mubr.msk.bf16.mxu1 %vm6280_vm0, %v6277_v21  ;;  %v630_v45 = vpack.i.b16 %v571_v18, %v546_v43  ;;  %v1347_v46 = vsel %vm1204_vm1, %v912_v44, 0  ;;  %v916_v49 = vshrl.u32 %v6490_v20, 16  ;;  %v631_v50 = vshrl.u32 %v546_v43, 16 }
 0x1f3   :  { %5653 = vmatmul.mubr.msk.bf16.vlgmr.msra.gmra.mrb[4].mxu0 %vm1204_vm1, %v636_v31  ;;  %5638 = vmatprep.subr.bf16.mxu1 %v6277_v21  ;;  %v642_v30 = vpack.i.b16 %v621_v36, %v596_v38  ;;  %v923_v54 = vshrl.u32 %v6528_v9, 16  ;;  %v638_v34 = vshrl.u32 %v620_v22, 16  ;;  %v922_v56 = vshrl.u32 %v875_v14, 16 }
 0x1f4   :  { %5663 = vmatpush3.bf16.xpose.msra.mxu0 %v1485_v32  ;;  %5664 = vmatprep.mubr.msk.bf16.mxu0 %vm6280_vm0, %v6277_v21  ;;  %v918_v52 = vpack.i.b16 %v917_v47, %v916_v49  ;;  %v633_v39 = vpack.i.b16 %v632_v48, %v631_v50  ;;  %v637_v57 = vshrl.u32 %v595_v16, 16  ;;  %v644_v60 = vshrl.u32 %v621_v36, 16 }
 0x1f5   :  { %5674 = vmatprep.subr.bf16.mxu0 %v6277_v21  ;;  %v924_v58 = vpack.i.b16 %v923_v54, %v922_v56  ;;  %v643_v62 = vshrl.u32 %v596_v38, 16  ;;  %v141_v1 = vsub.s32 2, %v6400_v25 }
 0x1f6   :  { %v1439_v53 = vsel %vm1204_vm1, %v918_v52, 0  ;;  %v639_v20 = vpack.i.b16 %v638_v34, %v637_v57 }
 0x1f7   :  { %v1531_v59 = vsel %vm1204_vm1, %v924_v58, 0  ;;  %v645_v63 = vpack.i.b16 %v644_v60, %v643_v62  ;;  %v142_v2 = vrot.slane %v6408_v28, %v141_v1 }
 0x1f9   :  { %5635 = vmatmul.mubr.msk.bf16.vlgmr.msra.gmra.mrb[8].mxu1 %vm1204_vm1, %v627_v37  ;;  %v352_v4 = vadd.f32 %v351_v3, %v142_v2  ;;  %v355_v7 = vadd.f32 %v354_v6, %v142_v2 }
 0x1fa   :  { %5639 = vmatpush3.bf16.xpose.msra.mxu1 %v1301_v40  ;;  %5640 = vmatprep.mubr.msk.bf16.mxu1 %vm6280_vm0, %v6277_v21 }
 0x1fb   :  { %5665 = vmatmul.mubr.msk.bf16.vlgmr.msra.gmra.mrb[8].mxu0 %vm1204_vm1, %v642_v30  ;;  %5644 = vmatprep.subr.bf16.mxu1 %v6277_v21  ;;  %v6586_v9 = vpack.c.bf16 %v355_v7, %v352_v4 }
 0x1fc   :  { %5676 = vmatprep.mubr.msk.bf16.mxu0 %vm6280_vm0, %v6277_v21 }
 0x201   :  { %5641 = vmatmul.mubr.msk.bf16.vlgmr.msra.gmra.mrb[12].mxu1 %vm1204_vm1, %v630_v45 }
 0x202   :  { %5645 = vmatpush3.bf16.xpose.msra.mxu1 %v1347_v46  ;;  %5646 = vmatprep.mubr.msk.bf16.mxu1 %vm6280_vm0, %v6277_v21 }
 0x203   :  { %5656 = vmatprep.subr.bf16.mxu1 %v6277_v21 }
 0x209   :  { %5647 = vmatmul.mubr.msk.bf16.vlgmr.msra.gmra.mrb[16].mxu1 %vm1204_vm1, %v633_v39 }
 0x20a   :  { %5657 = vmatpush3.bf16.xpose.msra.mxu1 %v1439_v53  ;;  %5658 = vmatprep.mubr.msk.bf16.mxu1 %vm6280_vm0, %v6277_v21 }
 0x20b   :  { %5668 = vmatprep.subr.bf16.mxu1 %v6277_v21 }
 0x211   :  { %5659 = vmatmul.mubr.msk.bf16.vlgmr.msra.gmra.mrb[20].mxu1 %vm1204_vm1, %v639_v20 }
 0x212   :  { %5669 = vmatpush3.bf16.xpose.msra.mxu1 %v1531_v59  ;;  %5670 = vmatprep.mubr.msk.bf16.mxu1 %vm6280_vm0, %v6277_v21 }
 0x213   :  { %5680 = vmatprep.subr.bf16.mxu1 %v6277_v21 }
 0x219   :  { %5671 = vmatmul.mubr.msk.bf16.vlgmr.msra.gmra.mrb[24].mxu1 %vm1204_vm1, %v645_v63 }
 0x21a   :  { %5682 = vmatprep.mubr.msk.bf16.mxu1 %vm6280_vm0, %v6277_v21 }
 0x2c4   :  { %v1245_v10 = vpop.f32.mrb[4].mxu1 }
 0x2c5   :  { %v1573_v12 = vmul.f32 0.17677669, %v1245_v10  ;;  %v5630_v13 = vpop.f32.mrb[5].mxu1 }
 0x2c6   :  { %v1248_v14 = vpop.f32.mrb[6].mxu1  ;;  %v1429_v15 = vpop.f32.mrb[4].mxu0 }
 0x2c7   :  { %v5631_v16 = vpop.f32.mrb[7].mxu1  ;;  %v5654_v25 = vpop.f32.mrb[5].mxu0  ;;  %v1581_v28 = vadd.f32 %v1573_v12, %v6588_v11  ;;  %v1577_v23 = vmul.f32 0.17677669, %v1429_v15 }
 0x2c8   :  { %v1432_v22 = vpop.f32.mrb[6].mxu0 }
 0x2c9   :  { %v5655_v24 = vpop.f32.mrb[7].mxu0  ;;  %v1590_v26 = vsel %vm1589_vm2, %v1581_v28, -inf  ;;  %v6595_v18 = vadd.f32 %v1577_v23, %v6588_v11 }
 0x2ca   :  { %1591 = vmax.xlane.f32.xlu0 %v1590_v26 }
 0x2cb   :  { %v1602_v45 = vsel %vm1589_vm2, %v6595_v18, -inf }
 0x2cc   :  { %v1291_v31 = vpop.f32.mrb[8].mxu1 }
 0x2cd   :  { %v1574_v32 = vmul.f32 0.17677669, %v1291_v31  ;;  %v5636_v17 = vpop.f32.mrb[9].mxu1 }
 0x2ce   :  { %v1294_v33 = vpop.f32.mrb[10].mxu1  ;;  %v1521_v35 = vpop.f32.mrb[8].mxu0 }
 0x2cf   :  { %v5637_v19 = vpop.f32.mrb[11].mxu1  ;;  %v5666_v36 = vpop.f32.mrb[9].mxu0  ;;  %v1582_v37 = vadd.f32 %v1574_v32, %v6588_v11  ;;  %v1579_v40 = vmul.f32 0.17677669, %v1521_v35 }
 0x2d0   :  { %v1524_v38 = vpop.f32.mrb[10].mxu0 }
 0x2d1   :  { %v5667_v30 = vpop.f32.mrb[11].mxu0  ;;  %v1593_v41 = vsel %vm1589_vm2, %v1582_v37, -inf  ;;  %v6600_v46 = vadd.f32 %v1579_v40, %v6588_v11 }
 0x2d2   :  { %1594 = vmax.xlane.f32.xlu1 %v1593_v41 }
 0x2d3   :  { %v1608_v52 = vsel %vm1589_vm2, %v6600_v46, -inf }
 0x2d4   :  { %v1337_v42 = vpop.f32.mrb[12].mxu1 }
 0x2d5   :  { %v1575_v43 = vmul.f32 0.17677669, %v1337_v42  ;;  %v5642_v44 = vpop.f32.mrb[13].mxu1 }
 0x2d6   :  { %v1340_v47 = vpop.f32.mrb[14].mxu1  ;;  %1603 = vmax.xlane.f32.xlu1 %v1602_v45 }
 0x2d7   :  { %v5643_v48 = vpop.f32.mrb[15].mxu1  ;;  %v1583_v49 = vadd.f32 %v1575_v43, %v6588_v11 }
 0x2d9   :  { %v1596_v50 = vsel %vm1589_vm2, %v1583_v49, -inf }
 0x2da   :  { %1597 = vmax.xlane.f32.xlu0 %v1596_v50  ;;  %1609 = vmax.xlane.f32.xlu1 %v1608_v52 }
 0x2dc   :  { %v1383_v39 = vpop.f32.mrb[16].mxu1 }
 0x2dd   :  { %v1576_v53 = vmul.f32 0.17677669, %v1383_v39  ;;  %v5648_v54 = vpop.f32.mrb[17].mxu1 }
 0x2de   :  { %v1386_v34 = vpop.f32.mrb[18].mxu1 }
 0x2df   :  { %v5649_v56 = vpop.f32.mrb[19].mxu1  ;;  %v1584_v57 = vadd.f32 %v1576_v53, %v6588_v11 }
 0x2e1   :  { %v1599_v58 = vsel %vm1589_vm2, %v1584_v57, -inf }
 0x2e2   :  { %1600 = vmax.xlane.f32.xlu0 %v1599_v58 }
 0x2e4   :  { %v1475_v20 = vpop.f32.mrb[20].mxu1 }
 0x2e5   :  { %v1578_v59 = vmul.f32 0.17677669, %v1475_v20  ;;  %v5660_v60 = vpop.f32.mrb[21].mxu1 }
 0x2e6   :  { %v1478_v62 = vpop.f32.mrb[22].mxu1 }
 0x2e7   :  { %v5661_v63 = vpop.f32.mrb[23].mxu1  ;;  %v1586_v1 = vadd.f32 %v1578_v59, %v6588_v11 }
 0x2e8   :  { %v936_v63 = vshrl.u32 %v6586_v9, 16 }
 0x2e9   :  { %v1605_v2 = vsel %vm1589_vm2, %v1586_v1, -inf }
 0x2ea   :  { %1606 = vmax.xlane.f32.xlu0 %v1605_v2 }
 0x2eb   :  { %926 = vrot.lane.b32.xlu1 %v6586_v9, %s6279_s15 }
 0x2ec   :  { %v1567_v3 = vpop.f32.mrb[24].mxu1 }
 0x2ed   :  { %v1580_v4 = vmul.f32 0.17677669, %v1567_v3  ;;  %v5672_v5 = vpop.f32.mrb[25].mxu1 }
 0x2ee   :  { %v1570_v6 = vpop.f32.mrb[26].mxu1 }
 0x2ef   :  { %v5673_v7 = vpop.f32.mrb[27].mxu1  ;;  %v1588_v8 = vadd.f32 %v1580_v4, %v6588_v11 }
 0x2f1   :  { %v1611_v10 = vsel %vm1589_vm2, %v1588_v8, -inf }
 0x2f2   :  { %1612 = vmax.xlane.f32.xlu0 %v1611_v10 }
 0x357   :  { %v1592_v12 = vpop.xlane.xlu0 %1591 }
 0x358   :  { %v1614_v13 = vsub.f32 %v1581_v28, %v1592_v12 }
 0x35a   :  { %v1622_v14 = vmul.f32 1.442695, %v1614_v13 }
 0x35c   :  { %6047 = vpow2.f32 %v1622_v14 }
 0x35f   :  { %v1595_v15 = vpop.xlane.xlu1 %1594 }
 0x360   :  { %v1615_v16 = vsub.f32 %v1582_v37, %v1595_v15 }
 0x362   :  { %v1624_v25 = vmul.f32 1.442695, %v1615_v16 }
 0x363   :  { %v1604_v19 = vpop.xlane.xlu1 %1603 }
 0x364   :  { %6049 = vpow2.f32 %v1624_v25  ;;  %v1618_v30 = vsub.f32 %v6595_v18, %v1604_v19 }
 0x366   :  { %v6614_v22 = vpop.eup %6047  ;;  %v1630_v43 = vmul.f32 1.442695, %v1618_v30 }
 0x367   :  { %v1638_v24 = vsel %vm1589_vm2, %v6614_v22, 0.0  ;;  %v1598_v28 = vpop.xlane.xlu0 %1597  ;;  %v1610_v42 = vpop.xlane.xlu1 %1609 }
 0x368   :  { %1639 = vadd.xlane.f32.xlu1 %v1638_v24  ;;  %v1616_v23 = vsub.f32 %v1583_v49, %v1598_v28  ;;  %v1620_v44 = vsub.f32 %v6600_v46, %v1610_v42 }
 0x36a   :  { %v1626_v17 = vmul.f32 1.442695, %v1616_v23  ;;  %v1634_v47 = vmul.f32 1.442695, %v1620_v44 }
 0x36c   :  { %6051 = vpow2.f32 %v1626_v17 }
 0x36e   :  { %v6618_v26 = vpop.eup %6049 }
 0x36f   :  { %v1641_v11 = vsel %vm1589_vm2, %v6618_v26, 0.0  ;;  %v1601_v31 = vpop.xlane.xlu0 %1600 }
 0x370   :  { %1642 = vadd.xlane.f32.xlu0 %v1641_v11  ;;  %v1617_v36 = vsub.f32 %v1584_v57, %v1601_v31  ;;  %v927_v57 = vpop.permute.xlu1 %926 }
 0x371   :  { %v937_v59 = vshrl.u32 %v927_v57, 16  ;;  %v6653_v62 = vpack.i.b16 %v927_v57, %v6586_v9 }
 0x372   :  { %v1628_v40 = vmul.f32 1.442695, %v1617_v36 }
 0x373   :  { %v938_v5 = vpack.i.b16 %v937_v59, %v936_v63  ;;  %v955_v6 = vrot.slane %v6653_v62, %v6439_v55 }
 0x375   :  { %v1021_v13 = vrot.slane %v938_v5, %v6439_v55  ;;  %v1014_v59 = vcombine.high %v938_v5, %v6436_v51 }
 0x376   :  { %v6628_v45 = vpop.eup %6051 }
 0x377   :  { %v1607_v32 = vpop.xlane.xlu0 %1606  ;;  %v1644_v48 = vsel %vm1589_vm2, %v6628_v45, 0.0 }
 0x378   :  { %v1619_v33 = vsub.f32 %v1586_v1, %v1607_v32 }
 0x379   :  { %930 = vrot.lane.b32.xlu1 %v6586_v9, %s6278_s14 }
 0x37a   :  { %v1632_v37 = vmul.f32 1.442695, %v1619_v33 }
 0x37c   :  { %6053 = vpow2.f32 %v1632_v37 }
 0x37d   :  { %6055 = vpow2.f32 %v1628_v40 }
 0x37f   :  { %v1613_v35 = vpop.xlane.xlu0 %1612 }
 0x380   :  { %v1621_v38 = vsub.f32 %v1588_v8, %v1613_v35 }
 0x382   :  { %v1636_v41 = vmul.f32 1.442695, %v1621_v38 }
 0x384   :  { %6057 = vpow2.f32 %v1636_v41 }
 0x385   :  { %6059 = vpow2.f32 %v1630_v43 }
 0x386   :  { %928 = vrot.lane.b32.xlu0 %v6586_v9, %s6274_s2  ;;  %v6632_v49 = vpop.eup %6053  ;;  %6061 = vpow2.f32 %v1634_v47 }
 0x387   :  { %v6634_v18 = vpop.eup %6055  ;;  %v1653_v50 = vsel %vm1589_vm2, %v6632_v49, 0.0 }
 0x388   :  { %v1647_v46 = vsel %vm1589_vm2, %v6634_v18, 0.0 }
 0x38e   :  { %v6638_v52 = vpop.eup %6057 }
 0x38f   :  { %v1659_v39 = vsel %vm1589_vm2, %v6638_v52, 0.0  ;;  %v6644_v53 = vpop.eup %6059 }
 0x390   :  { %v1650_v54 = vsel %vm1589_vm2, %v6644_v53, 0.0  ;;  %v6648_v34 = vpop.eup %6061 }
 0x391   :  { %v1656_v56 = vsel %vm1589_vm2, %v6648_v34, 0.0 }
 0x39d   :  { %1645 = vadd.xlane.f32.xlu1 %v1644_v48 }
 0x3a1   :  { %1654 = vadd.xlane.f32.xlu1 %v1653_v50 }
 0x3a5   :  { %1648 = vadd.xlane.f32.xlu0 %v1647_v46  ;;  %1660 = vadd.xlane.f32.xlu1 %v1659_v39 }
 0x3a9   :  { %1651 = vadd.xlane.f32.xlu0 %v1650_v54 }
 0x3ad   :  { %1657 = vadd.xlane.f32.xlu0 %v1656_v56 }
 0x3f5   :  { %v1640_v58 = vpop.xlane.xlu1 %1639 }
 0x3f6   :  { %6063 = vrcp.f32 %v1640_v58 }
 0x3f9   :  { %v931_v60 = vpop.permute.xlu1 %930 }
 0x3fa   :  { %v945_v2 = vshrl.u32 %v931_v60, 16 }
 0x3fd   :  { %v1643_v20 = vpop.xlane.xlu0 %1642 }
 0x3fe   :  { %6065 = vrcp.f32 %v1643_v20 }
 0x400   :  { %v6064_v38 = vpop.eup %6063 }
 0x401   :  { %v929_v1 = vpop.permute.xlu0 %928  ;;  %v1670_v43 = vmul.f32 %v6064_v38, %v6614_v22 }
 0x402   :  { %v942_v3 = vpack.i.b16 %v931_v60, %v929_v1  ;;  %v944_v4 = vshrl.u32 %v929_v1, 16 }
 0x403   :  { %v1678_v63 = vpack.c.bf16 %v1670_v43, %v1670_v43 }
 0x404   :  { %v946_v7 = vpack.i.b16 %v945_v2, %v944_v4  ;;  %v970_v8 = vrot.slane %v942_v3, %v6439_v55  ;;  %v963_v22 = vcombine.high %v942_v3, %v6436_v51  ;;  %v1028_v3 = vrot.slane %v1014_v59, %v6439_v55 }
 0x406   :  { %v978_v10 = vcombine.low %v955_v6, %v970_v8  ;;  %v979_v12 = vcombine.high %v955_v6, %v970_v8  ;;  %v1036_v14 = vrot.slane %v946_v7, %v6439_v55  ;;  %v1029_v39 = vcombine.high %v946_v7, %v6436_v51 }
 0x407   :  { %v977_v6 = vrot.slane %v963_v22, %v6439_v55 }
 0x408   :  { %v986_v9 = vrot.slane %v978_v10, %v6443_v61  ;;  %v993_v15 = vrot.slane %v979_v12, %v6443_v61  ;;  %v1044_v16 = vcombine.low %v1021_v13, %v1036_v14  ;;  %v1045_v25 = vcombine.high %v1021_v13, %v1036_v14  ;;  %v6066_v41 = vpop.eup %6065 }
 0x409   :  { %v1671_v46 = vmul.f32 %v6066_v41, %v6618_v26  ;;  %v948_v26 = vcombine.high %v6653_v62, %v6436_v51  ;;  %v1043_v2 = vrot.slane %v1029_v39, %v6439_v55 }
 0x40a   :  { %v1080_v24 = vcombine.low %v986_v9, %v993_v15  ;;  %v5346_v11 = vcombine.high %v986_v9, %v993_v15  ;;  %v1052_v28 = vrot.slane %v1044_v16, %v6443_v61  ;;  %v1059_v31 = vrot.slane %v1045_v25, %v6443_v61 }
 0x40b   :  { %v1679_v5 = vpack.c.bf16 %v1671_v46, %v1671_v46  ;;  %v962_v7 = vrot.slane %v948_v26, %v6439_v55  ;;  %v1060_v8 = vcombine.low %v1028_v3, %v1043_v2  ;;  %v1061_v10 = vcombine.high %v1028_v3, %v1043_v2 }
 0x40c   :  { %v1087_v23 = vrot.slane %v1080_v24, %v6439_v55  ;;  %v1095_v32 = vrot.slane %v5346_v11, %v6439_v55  ;;  %v1105_v17 = vcombine.low %v1052_v28, %v1059_v31  ;;  %v5347_v33 = vcombine.high %v1052_v28, %v1059_v31 }
 0x40d   :  { %v994_v12 = vcombine.low %v962_v7, %v977_v6  ;;  %v995_v13 = vcombine.high %v962_v7, %v977_v6  ;;  %v1068_v14 = vrot.slane %v1060_v8, %v6443_v61  ;;  %v1075_v9 = vrot.slane %v1061_v10, %v6443_v61 }
 0x40e   :  { %v1096_v35 = vcombine.low %v1087_v23, %v1095_v32  ;;  %v1112_v19 = vrot.slane %v1105_v17, %v6439_v55  ;;  %v1120_v36 = vrot.slane %v5347_v33, %v6439_v55 }
 0x40f   :  { %v1002_v15 = vrot.slane %v994_v12, %v6443_v61  ;;  %v1009_v16 = vrot.slane %v995_v13, %v6443_v61  ;;  %v1155_v25 = vcombine.low %v1068_v14, %v1075_v9  ;;  %v5349_v24 = vcombine.high %v1068_v14, %v1075_v9  ;;  %v5959_v12 = vld [vmem:[#allocation8 + $0xc] ss:$40 sps:$4 sm:$0xff]   ;;  %v5960_v13 = vld [vmem:[#allocation8 + $0x5c] ss:$40 sps:$4 sm:$0xff]  }
 0x410   :  { %v1103_v37 = vrot.slane %v1096_v35, %v6443_v61  ;;  %v1121_v40 = vcombine.low %v1112_v19, %v1120_v36  ;;  %v5961_v14 = vld [vmem:[#allocation8 + $0xac] ss:$40 sps:$4 sm:$0xff]  }
 0x411   :  { %v1130_v11 = vcombine.low %v1002_v15, %v1009_v16  ;;  %v5348_v28 = vcombine.high %v1002_v15, %v1009_v16  ;;  %v1162_v23 = vrot.slane %v1155_v25, %v6439_v55  ;;  %v1170_v32 = vrot.slane %v5349_v24, %v6439_v55  ;;  %v5963_v9 = vld [vmem:[#allocation8 + $0x14c] ss:$40 sps:$4 sm:$0xff]   ;;  %v5964_v15 = vld [vmem:[#allocation8 + $0x19c] ss:$40 sps:$4 sm:$0xff]  }
 0x412   :  { %v1104_v30 = vcombine.high %v1103_v37, %v6276_v0  ;;  %v1128_v42 = vrot.slane %v1121_v40, %v6443_v61  ;;  %v1183_v47 = vshrl.u32 %v1103_v37, 16 }
 0x413   :  { %v1137_v17 = vrot.slane %v1130_v11, %v6439_v55  ;;  %v1145_v33 = vrot.slane %v5348_v28, %v6439_v55  ;;  %v1171_v35 = vcombine.low %v1162_v23, %v1170_v32 }
 0x414   :  { %v1182_v44 = vpack.i.b16 %v1128_v42, %v1103_v37  ;;  %v1184_v48 = vshrl.u32 %v1128_v42, 16  ;;  %v1129_v50 = vcombine.high %v1128_v42, %v6276_v0  ;;  %v1189_v54 = vshrl.u32 %v1104_v30, 16 }
 0x415   :  { %v1146_v19 = vcombine.low %v1137_v17, %v1145_v33  ;;  %v1178_v37 = vrot.slane %v1171_v35, %v6443_v61 }
 0x416   :  { %v1691_v56 = vsel %vm1689_vm3, %v1182_v44, 0  ;;  %v1185_v57 = vpack.i.b16 %v1184_v48, %v1183_v47  ;;  %v1188_v58 = vpack.i.b16 %v1129_v50, %v1104_v30  ;;  %v1190_v20 = vshrl.u32 %v1129_v50, 16 }
 0x417   :  { %5675 = vmatpush3.bf16.msra.mxu0 %v1691_v56  ;;  %v1153_v40 = vrot.slane %v1146_v19, %v6443_v61  ;;  %v1196_v50 = vshrl.u32 %v1178_v37, 16 }
 0x418   :  { %v1737_v60 = vsel %vm1689_vm3, %v1185_v57, 0  ;;  %5686 = vmatprep.subr.bf16.mxu0 %v6277_v21  ;;  %v1191_v1 = vpack.i.b16 %v1190_v20, %v1189_v54  ;;  %v1783_v4 = vsel %vm1689_vm3, %v1188_v58, 0  ;;  %v1179_v57 = vcombine.high %v1178_v37, %v6276_v0 }
 0x419   :  { %5681 = vmatpush3.bf16.msra.mxu1 %v1737_v60  ;;  %v1194_v43 = vpack.i.b16 %v1178_v37, %v1153_v40  ;;  %v1195_v39 = vshrl.u32 %v1153_v40, 16  ;;  %v1154_v59 = vcombine.high %v1153_v40, %v6276_v0 }
 0x41a   :  { %5677 = vmatmul.mubr.msk.bf16.vlgmr.msra.gmra.mrb[12].mxu0 %vm1589_vm2, %v1678_v63  ;;  %5692 = vmatprep.subr.bf16.mxu1 %v6277_v21  ;;  %v1829_v62 = vsel %vm1689_vm3, %v1191_v1, 0  ;;  %v1202_v26 = vshrl.u32 %v1179_v57, 16 }
 0x41b   :  { %5687 = vmatpush3.bf16.msra.mxu0 %v1783_v4  ;;  %5688 = vmatprep.mubr.msk.bf16.mxu0 %vm6280_vm0, %v6277_v21  ;;  %v1875_v48 = vsel %vm1689_vm3, %v1194_v43, 0  ;;  %v1197_v56 = vpack.i.b16 %v1196_v50, %v1195_v39  ;;  %v1200_v1 = vpack.i.b16 %v1179_v57, %v1154_v59  ;;  %v1201_v4 = vshrl.u32 %v1154_v59, 16 }
 0x41c   :  { %5683 = vmatmul.mubr.msk.bf16.vlgmr.msra.gmra.mrb[28].mxu1 %vm1589_vm2, %v1679_v5  ;;  %5698 = vmatprep.subr.bf16.mxu0 %v6277_v21 }
 0x41d   :  { %5693 = vmatpush3.bf16.msra.mxu1 %v1829_v62  ;;  %5694 = vmatprep.mubr.msk.bf16.mxu1 %vm6280_vm0, %v6277_v21  ;;  %v1921_v63 = vsel %vm1689_vm3, %v1197_v56, 0  ;;  %v1203_v3 = vpack.i.b16 %v1202_v26, %v1201_v4 }
 0x41e   :  { %5704 = vmatprep.subr.bf16.mxu1 %v6277_v21 }
 0x41f   :  { %v2013_v7 = vsel %vm1689_vm3, %v1203_v3, 0 }
 0x42a   :  { %v1646_v31 = vpop.xlane.xlu1 %1645 }
 0x42b   :  { %6067 = vrcp.f32 %v1646_v31 }
 0x42e   :  { %v1655_v38 = vpop.xlane.xlu1 %1654 }
 0x432   :  { %v1649_v36 = vpop.xlane.xlu0 %1648  ;;  %v1661_v46 = vpop.xlane.xlu1 %1660 }
 0x433   :  { %6069 = vrcp.f32 %v1649_v36 }
 0x434   :  { %6071 = vrcp.f32 %v1655_v38 }
 0x435   :  { %v6068_v30 = vpop.eup %6067 }
 0x436   :  { %v1672_v41 = vmul.f32 %v6068_v30, %v6628_v45  ;;  %v1652_v42 = vpop.xlane.xlu0 %1651 }
 0x437   :  { %6073 = vrcp.f32 %v1652_v42 }
 0x438   :  { %v1680_v44 = vpack.c.bf16 %v1672_v41, %v1672_v41 }
 0x43a   :  { %v1658_v47 = vpop.xlane.xlu0 %1657  ;;  %5689 = vmatmul.mubr.msk.bf16.vlgmr.msra.gmra.mrb[16].mxu0 %vm1589_vm2, %v1680_v44 }
 0x43b   :  { %6075 = vrcp.f32 %v1658_v47  ;;  %5699 = vmatpush3.bf16.msra.mxu0 %v1875_v48  ;;  %5700 = vmatprep.mubr.msk.bf16.mxu0 %vm6280_vm0, %v6277_v21 }
 0x43c   :  { %5710 = vmatprep.subr.bf16.mxu0 %v6277_v21  ;;  %6077 = vrcp.f32 %v1661_v46 }
 0x43d   :  { %v6070_v45 = vpop.eup %6069 }
 0x43e   :  { %v1673_v54 = vmul.f32 %v6070_v45, %v6634_v18  ;;  %v6072_v58 = vpop.eup %6071 }
 0x43f   :  { %v1675_v18 = vmul.f32 %v6072_v58, %v6632_v49 }
 0x440   :  { %v1681_v20 = vpack.c.bf16 %v1673_v54, %v1673_v54 }
 0x441   :  { %v6074_v22 = vpop.eup %6073  ;;  %v1683_v62 = vpack.c.bf16 %v1675_v18, %v1675_v18 }
 0x442   :  { %v1674_v60 = vmul.f32 %v6074_v22, %v6644_v53  ;;  %5695 = vmatmul.mubr.msk.bf16.vlgmr.msra.gmra.mrb[32].mxu1 %vm1589_vm2, %v1681_v20  ;;  %v1967_v53 = vsel %vm1689_vm3, %v1200_v1, 0 }
 0x443   :  { %5705 = vmatpush3.bf16.msra.mxu1 %v1921_v63  ;;  %5706 = vmatprep.mubr.msk.bf16.mxu1 %vm6280_vm0, %v6277_v21 }
 0x444   :  { %v1682_v2 = vpack.c.bf16 %v1674_v60, %v1674_v60  ;;  %5716 = vmatprep.subr.bf16.mxu1 %v6277_v21 }
 0x445   :  { %v6076_v5 = vpop.eup %6075 }
 0x446   :  { %5701 = vmatmul.mubr.msk.bf16.vlgmr.msra.gmra.mrb[20].mxu0 %vm1589_vm2, %v1682_v2  ;;  %v1676_v6 = vmul.f32 %v6076_v5, %v6648_v34  ;;  %v6078_v49 = vpop.eup %6077 }
 0x447   :  { %5711 = vmatpush3.bf16.msra.mxu0 %v1967_v53  ;;  %5712 = vmatprep.mubr.msk.bf16.mxu0 %vm6280_vm0, %v6277_v21  ;;  %v1677_v8 = vmul.f32 %v6078_v49, %v6638_v52  ;;  %v5962_v52 = vld [vmem:[#allocation8 + $0xfc] ss:$40 sps:$4 sm:$0xff]  }
 0x448   :  { %5722 = vmatprep.subr.bf16.mxu0 %v6277_v21  ;;  %v1684_v10 = vpack.c.bf16 %v1676_v6, %v1676_v6 }
 0x449   :  { %v1685_v34 = vpack.c.bf16 %v1677_v8, %v1677_v8 }
 0x44a   :  { %5707 = vmatmul.mubr.msk.bf16.vlgmr.msra.gmra.mrb[36].mxu1 %vm1589_vm2, %v1683_v62 }
 0x44b   :  { %5717 = vmatpush3.bf16.msra.mxu1 %v2013_v7  ;;  %5718 = vmatprep.mubr.msk.bf16.mxu1 %vm6280_vm0, %v6277_v21 }
 0x44e   :  { %5713 = vmatmul.mubr.msk.bf16.vlgmr.msra.gmra.mrb[24].mxu0 %vm1589_vm2, %v1684_v10 }
 0x44f   :  { %5738 = vmatprep.mubr.msk.bf16.mxu0 %vm6280_vm0, %v6277_v21  ;;  %5723 = vmatpush3.bf16.msra.mxu0 %v5959_v12 }
 0x450   :  { %5724 = vmatprep.subr.bf16.mxu0 %v6277_v21 }
 0x452   :  { %5719 = vmatmul.mubr.msk.bf16.vlgmr.msra.gmra.mrb[40].mxu1 %vm1589_vm2, %v1685_v34 }
 0x453   :  { %2656 = vmatprep.mubr.bf16.mxu1 %v6276_v0  ;;  %5725 = vmatpush3.bf16.msra.mxu0 %v5960_v13 }
 0x454   :  { %5726 = vmatprep.subr.bf16.mxu0 %v6277_v21 }
 0x457   :  { %5727 = vmatpush3.bf16.msra.mxu0 %v5961_v14 }
 0x458   :  { %5728 = vmatprep.subr.bf16.mxu0 %v6277_v21 }
 0x45b   :  { %5729 = vmatpush3.bf16.msra.mxu0 %v5962_v52 }
 0x45c   :  { %5730 = vmatprep.subr.bf16.mxu0 %v6277_v21 }
 0x45f   :  { %5731 = vmatpush3.bf16.msra.mxu0 %v5963_v9 }
 0x460   :  { %5732 = vmatprep.subr.bf16.mxu0 %v6277_v21 }
 0x463   :  { %5733 = vmatpush3.bf16.msra.mxu0 %v5964_v15 }
 0x464   :  { %5734 = vmatprep.subr.bf16.mxu0 %v6277_v21 }
 0x4ed   :  { %v1727_v16 = vpop.f32.mrb[12].mxu0 }
 0x4ee   :  { %v5678_v25 = vpop.f32.mrb[13].mxu0 }
 0x4ef   :  { %v1730_v24 = vpop.f32.mrb[14].mxu0  ;;  %v1773_v11 = vpop.f32.mrb[28].mxu1 }
 0x4f0   :  { %v5679_v28 = vpop.f32.mrb[15].mxu0  ;;  %v5684_v31 = vpop.f32.mrb[29].mxu1 }
 0x4f1   :  { %v1776_v23 = vpop.f32.mrb[30].mxu1 }
 0x4f2   :  { %v5685_v32 = vpop.f32.mrb[31].mxu1 }
 0x50d   :  { %v1819_v17 = vpop.f32.mrb[16].mxu0 }
 0x50e   :  { %v2055_v33 = vcombine.low %v1727_v16, %v1819_v17  ;;  %v2056_v35 = vcombine.high %v1727_v16, %v1819_v17  ;;  %v5690_v19 = vpop.f32.mrb[17].mxu0 }
 0x50f   :  { %v1822_v36 = vpop.f32.mrb[18].mxu0 }
 0x510   :  { %v5691_v37 = vpop.f32.mrb[19].mxu0  ;;  %v2063_v43 = vrot.slane %v2055_v33, %v6439_v55  ;;  %v2070_v44 = vrot.slane %v2056_v35, %v6439_v55 }
 0x515   :  { %v1865_v38 = vpop.f32.mrb[32].mxu1 }
 0x516   :  { %v2071_v40 = vcombine.low %v1773_v11, %v1865_v38  ;;  %v2072_v30 = vcombine.high %v1773_v11, %v1865_v38  ;;  %v5696_v41 = vpop.f32.mrb[33].mxu1 }
 0x517   :  { %v1868_v42 = vpop.f32.mrb[34].mxu1 }
 0x518   :  { %v2079_v47 = vrot.slane %v2071_v40, %v6439_v55  ;;  %v2086_v48 = vrot.slane %v2072_v30, %v6439_v55  ;;  %v5697_v50 = vpop.f32.mrb[35].mxu1 }
 0x519   :  { %v1911_v46 = vpop.f32.mrb[20].mxu0 }
 0x51a   :  { %v2087_v39 = vcombine.low %v2063_v43, %v2079_v47  ;;  %v2088_v45 = vcombine.high %v2063_v43, %v2079_v47  ;;  %v2103_v54 = vcombine.low %v2070_v44, %v2086_v48  ;;  %v2104_v56 = vcombine.high %v2070_v44, %v2086_v48  ;;  %v5702_v57 = vpop.f32.mrb[21].mxu0 }
 0x51b   :  { %v1914_v58 = vpop.f32.mrb[22].mxu0 }
 0x51c   :  { %v2095_v20 = vrot.slane %v2087_v39, %v6443_v61  ;;  %v2102_v59 = vrot.slane %v2088_v45, %v6443_v61  ;;  %v2111_v22 = vrot.slane %v2103_v54, %v6443_v61  ;;  %v2118_v60 = vrot.slane %v2104_v56, %v6443_v61  ;;  %v5703_v63 = vpop.f32.mrb[23].mxu0 }
 0x51d   :  { %v1957_v1 = vpop.f32.mrb[36].mxu1 }
 0x51e   :  { %v2191_v26 = vcombine.low %v2095_v20, %v2102_v59  ;;  %v5366_v18 = vcombine.high %v2095_v20, %v2102_v59  ;;  %v2207_v2 = vcombine.low %v2111_v22, %v2118_v60  ;;  %v5367_v4 = vcombine.high %v2111_v22, %v2118_v60  ;;  %v5708_v5 = vpop.f32.mrb[37].mxu1  ;;  %v5965_v20 = vld [vmem:[#allocation8 + $0x1ec] ss:$40 sps:$4 sm:$0xff]  }
 0x51f   :  { %v1960_v53 = vpop.f32.mrb[38].mxu1  ;;  %5735 = vmatpush3.bf16.msra.mxu0 %v5965_v20  ;;  %v5981_v20 = vld [vmem:[#allocation8 + $0x154] ss:$40 sps:$4 sm:$0xff]  }
 0x520   :  { %v5709_v3 = vpop.f32.mrb[39].mxu1  ;;  %v2198_v6 = vrot.slane %v2191_v26, %v6439_v55  ;;  %v2206_v62 = vrot.slane %v5366_v18, %v6439_v55  ;;  %v2214_v49 = vrot.slane %v2207_v2, %v6439_v55  ;;  %v2222_v7 = vrot.slane %v5367_v4, %v6439_v55  ;;  %5736 = vmatprep.subr.bf16.mxu0 %v6277_v21 }
 0x521   :  { %v2003_v8 = vpop.f32.mrb[24].mxu0 }
 0x522   :  { %v2123_v10 = vcombine.low %v1911_v46, %v2003_v8  ;;  %v2124_v34 = vcombine.high %v1911_v46, %v2003_v8  ;;  %v5714_v12 = vpop.f32.mrb[25].mxu0  ;;  %v2224_v13 = vcombine.high %v2198_v6, %v2206_v62  ;;  %v2240_v14 = vcombine.high %v2214_v49, %v2222_v7 }
 0x523   :  { %v2006_v52 = vpop.f32.mrb[26].mxu0  ;;  %v2223_v9 = vcombine.low %v2198_v6, %v2206_v62  ;;  %v2239_v15 = vcombine.low %v2214_v49, %v2222_v7  ;;  %v5966_v6 = vld [vmem:[#allocation8 + $0x23c] ss:$40 sps:$4 sm:$0xff]  }
 0x524   :  { %v5715_v16 = vpop.f32.mrb[27].mxu0  ;;  %v2238_v25 = vrot.slane %v2224_v13, %v6443_v61  ;;  %v2254_v24 = vrot.slane %v2240_v14, %v6443_v61  ;;  %v2131_v38 = vrot.slane %v2123_v10, %v6439_v55  ;;  %v2138_v40 = vrot.slane %v2124_v34, %v6439_v55  ;;  %5737 = vmatpush3.bf16.msra.mxu0 %v5966_v6 }
 0x525   :  { %v2049_v11 = vpop.f32.mrb[40].mxu1  ;;  %v6761_v28 = vrot.slane %v2223_v9, %v6443_v61  ;;  %v2247_v31 = vrot.slane %v2239_v15, %v6443_v61  ;;  %5742 = vmatprep.subr.bf16.mxu0 %v6277_v21 }
 0x526   :  { %v2139_v23 = vcombine.low %v1957_v1, %v2049_v11  ;;  %v2140_v32 = vcombine.high %v1957_v1, %v2049_v11  ;;  %v5720_v17 = vpop.f32.mrb[41].mxu1  ;;  %v2257_v33 = vcombine.low %v2238_v25, %v2254_v24  ;;  %v2258_v35 = vcombine.high %v2238_v25, %v2254_v24 }
 0x527   :  { %v2052_v19 = vpop.f32.mrb[42].mxu1  ;;  %v2255_v36 = vcombine.low %v6761_v28, %v2247_v31  ;;  %v2256_v37 = vcombine.high %v6761_v28, %v2247_v31 }
 0x528   :  { %v2147_v30 = vrot.slane %v2139_v23, %v6439_v55  ;;  %v2154_v41 = vrot.slane %v2140_v32, %v6439_v55  ;;  %v5721_v42 = vpop.f32.mrb[43].mxu1  ;;  %v5370_v19 = vld [vmem:[%s7225_s5 + $0x3] ss:$0 sm:$0xff] }
 0x529   :  { %v6123_v42 = vld [vmem:[#allocation5] sm:$0xff] }
 0x52a   :  { %v2155_v43 = vcombine.low %v2131_v38, %v2147_v30  ;;  %v2156_v44 = vcombine.high %v2131_v38, %v2147_v30  ;;  %v2171_v47 = vcombine.low %v2138_v40, %v2154_v41  ;;  %v2172_v48 = vcombine.high %v2138_v40, %v2154_v41 }
 0x52c   :  { %v2163_v50 = vrot.slane %v2155_v43, %v6443_v61  ;;  %v2170_v46 = vrot.slane %v2156_v44, %v6443_v61  ;;  %v2179_v39 = vrot.slane %v2171_v47, %v6443_v61  ;;  %v2186_v45 = vrot.slane %v2172_v48, %v6443_v61  ;;  %v6124_v44 = vld [vmem:[#allocation5 + $0x8] sm:$0xff] }
 0x52d   :  { %v5967_v48 = vld [vmem:[#allocation8 + $0x10] ss:$40 sps:$4 sm:$0xff]  }
 0x52e   :  { %v2259_v54 = vcombine.low %v2163_v50, %v2170_v46  ;;  %v5368_v56 = vcombine.high %v2163_v50, %v2170_v46  ;;  %v2275_v57 = vcombine.low %v2179_v39, %v2186_v45  ;;  %v5369_v58 = vcombine.high %v2179_v39, %v2186_v45  ;;  %v5969_v50 = vld [vmem:[#allocation8 + $0x14] ss:$40 sps:$4 sm:$0xff]   ;;  %v5972_v46 = vld [vmem:[#allocation8 + $0x64] ss:$40 sps:$4 sm:$0xff]   ;;  %v5970_v39 = vld [vmem:[#allocation8 + $0x60] ss:$40 sps:$4 sm:$0xff]  }
 0x52f   :  { %2624 = vmatprep.subr.bf16.mxu1 %v5969_v50  ;;  %v5975_v45 = vld [vmem:[#allocation8 + $0xb4] ss:$40 sps:$4 sm:$0xff]  }
 0x530   :  { %v2266_v59 = vrot.slane %v2259_v54, %v6439_v55  ;;  %v2274_v22 = vrot.slane %v5368_v56, %v6439_v55  ;;  %v2282_v60 = vrot.slane %v2275_v57, %v6439_v55  ;;  %v2290_v63 = vrot.slane %v5369_v58, %v6439_v55  ;;  %2625 = vmatpush1.bf16.msra.mxu1 %v5967_v48  ;;  %v5991_v54 = vld [vmem:[#allocation8 + $0x18] ss:$40 sps:$4 sm:$0xff]   ;;  %v5978_v57 = vld [vmem:[#allocation8 + $0x104] ss:$40 sps:$4 sm:$0xff]  }
 0x531   :  { %2626 = vmatprep.subr.bf16.mxu1 %v5972_v46  ;;  %v5973_v56 = vld [vmem:[#allocation8 + $0xb0] ss:$40 sps:$4 sm:$0xff]   ;;  %v5976_v58 = vld [vmem:[#allocation8 + $0x100] ss:$40 sps:$4 sm:$0xff]  }
 0x532   :  { %v2292_v1 = vcombine.high %v2266_v59, %v2274_v22  ;;  %v2308_v26 = vcombine.high %v2282_v60, %v2290_v63  ;;  %v2291_v18 = vcombine.low %v2266_v59, %v2274_v22  ;;  %v2307_v2 = vcombine.low %v2282_v60, %v2290_v63  ;;  %v5979_v59 = vld [vmem:[#allocation8 + $0x150] ss:$40 sps:$4 sm:$0xff]   ;;  %v5984_v22 = vld [vmem:[#allocation8 + $0x1a4] ss:$40 sps:$4 sm:$0xff]   ;;  %v5982_v60 = vld [vmem:[#allocation8 + $0x1a0] ss:$40 sps:$4 sm:$0xff]  }
 0x533   :  { %v5987_v63 = vld [vmem:[#allocation8 + $0x1f4] ss:$40 sps:$4 sm:$0xff]  }
 0x534   :  { %v2306_v4 = vrot.slane %v2292_v1, %v6443_v61  ;;  %v2322_v5 = vrot.slane %v2308_v26, %v6443_v61  ;;  %v2299_v53 = vrot.slane %v2291_v18, %v6443_v61  ;;  %v2315_v3 = vrot.slane %v2307_v2, %v6443_v61  ;;  %2627 = vmatpush1.bf16.msra.mxu1 %v5970_v39  ;;  %v5985_v1 = vld [vmem:[#allocation8 + $0x1f0] ss:$40 sps:$4 sm:$0xff]   ;;  %v5990_v26 = vld [vmem:[#allocation8 + $0x244] ss:$40 sps:$4 sm:$0xff]   ;;  %v5988_v18 = vld [vmem:[#allocation8 + $0x240] ss:$40 sps:$4 sm:$0xff]  }
 0x535   :  { %2628 = vmatprep.subr.bf16.mxu1 %v5975_v45  ;;  %v91_v2 = vld [vmem:[#allocation2] sm:$0xff]  ;;  %v5380_v39 = vld [vmem:[%s7225_s5 + $0x5] ss:$0 sm:$0xff] }
 0x536   :  { %v2325_v62 = vcombine.low %v2306_v4, %v2322_v5  ;;  %v2324_v49 = vcombine.high %v2299_v53, %v2315_v3  ;;  %v2323_v7 = vcombine.low %v2299_v53, %v2315_v3  ;;  %v2326_v8 = vcombine.high %v2306_v4, %v2322_v5  ;;  %v92_v4 = vld [vmem:[#allocation2 + $0x8] sm:$0xff] }
 0x537   :  { %v2531_v5 = vpack.c.bf16 %v92_v4, %v91_v2 }
 0x538   :  { %v5902_v10 = vpack.i.bf16 %v2325_v62, %v2257_v33  ;;  %v5897_v34 = vpack.i.bf16 %v2324_v49, %v2256_v37  ;;  %v5907_v12 = vpack.i.bf16 %v2326_v8, %v2258_v35  ;;  %2629 = vmatpush1.bf16.msra.mxu1 %v5973_v56 }
 0x539   :  { %2630 = vmatprep.subr.bf16.mxu1 %v5978_v57 }
 0x53a   :  { %5903 = vrot.lane.b32.xlu1 %v5902_v10, %s6274_s2  ;;  %5898 = vrot.lane.b32.xlu0 %v5897_v34, %s6278_s14  ;;  %v5992_v34 = vld [vmem:[#allocation8 + $0x68] ss:$40 sps:$4 sm:$0xff]  }
 0x53c   :  { %2631 = vmatpush1.bf16.msra.mxu1 %v5976_v58 }
 0x53d   :  { %2632 = vmatprep.subr.bf16.mxu1 %v5981_v20 }
 0x53e   :  { %5908 = vrot.lane.b32.xlu1 %v5907_v12, %s6279_s15  ;;  %v5993_v12 = vld [vmem:[#allocation8 + $0xb8] ss:$40 sps:$4 sm:$0xff]  }
 0x540   :  { %2633 = vmatpush1.bf16.msra.mxu1 %v5979_v59 }
 0x541   :  { %2634 = vmatprep.subr.bf16.mxu1 %v5984_v22 }
 0x544   :  { %2635 = vmatpush1.bf16.msra.mxu1 %v5982_v60 }
 0x545   :  { %2636 = vmatprep.subr.bf16.mxu1 %v5987_v63 }
 0x548   :  { %2637 = vmatpush1.bf16.msra.mxu1 %v5985_v1 }
 0x549   :  { %2638 = vmatprep.subr.bf16.mxu1 %v5990_v26 }
 0x54c   :  { %2639 = vmatpush1.bf16.msra.mxu1 %v5988_v18 }
 0x54d   :  { %5762 = vmatprep.subr.bf16.mxu1 %v6277_v21 }
 0x54f   :  { %2657 = vmatmul.mubr.bf16.vlgmr.msra.gmra.mrb[44].mxu1 %v2531_v5 }
 0x550   :  { %5764 = vmatprep.mubr.msk.bf16.mxu1 %vm6280_vm0, %v6277_v21 }
 0x5ac   :  { %v5904_v13 = vpop.permute.xlu1 %5903  ;;  %v5899_v14 = vpop.permute.xlu0 %5898 }
 0x5ad   :  { %v5901_v52 = vunpack.i.h.bf16 %v5899_v14  ;;  %v5900_v9 = vunpack.i.l.bf16 %v5899_v14  ;;  %v5906_v15 = vunpack.i.h.bf16 %v5904_v13  ;;  %v5905_v16 = vunpack.i.l.bf16 %v5904_v13  ;;  %v5994_v13 = vld [vmem:[#allocation8 + $0x108] ss:$40 sps:$4 sm:$0xff]   ;;  %v5995_v14 = vld [vmem:[#allocation8 + $0x158] ss:$40 sps:$4 sm:$0xff]  }
 0x5af   :  { %v2351_v25 = vsel %vm1204_vm1, %v2255_v36, %v5900_v9  ;;  %v2352_v24 = vsel %vm1204_vm1, %v2323_v7, %v5901_v52  ;;  %v5996_v52 = vld [vmem:[#allocation8 + $0x1a8] ss:$40 sps:$4 sm:$0xff]   ;;  %v5997_v9 = vld [vmem:[#allocation8 + $0x1f8] ss:$40 sps:$4 sm:$0xff]  }
 0x5b0   :  { %v5909_v11 = vpop.permute.xlu1 %5908  ;;  %v2354_v23 = vsel %vm2353_vm4, %v2351_v25, %v5905_v16  ;;  %v2355_v32 = vsel %vm2353_vm4, %v2352_v24, %v5906_v15  ;;  %v5998_v15 = vld [vmem:[#allocation8 + $0x248] ss:$40 sps:$4 sm:$0xff]   ;;  %v2532_v16 = vld [vmem:[%s7225_s5 + $0x6] sm:$0x3] }
 0x5b1   :  { %v5911_v28 = vunpack.i.h.bf16 %v5909_v11  ;;  %v5910_v31 = vunpack.i.l.bf16 %v5909_v11  ;;  %v2537_v25 = vrot.slane %v2532_v16, %v6403_v27  ;;  %v2541_v24 = vrot.slane %v2532_v16, %v6411_v29 }
 0x5b3   :  { %v2357_v17 = vsel %vm2356_vm5, %v2354_v23, %v5910_v31  ;;  %v2358_v33 = vsel %vm2356_vm5, %v2355_v32, %v5911_v28 }
 0x5b4   :  { %v2375_v35 = vpack.c.bf16 %v2358_v33, %v2357_v17 }
 0x5b6   :  { %5739 = vmatmul.mubr.bf16.vlgmr.msra.gmra.mrb[28].mxu0 %v2375_v35 }
 0x5b7   :  { %5758 = vmatprep.mubr.msk.bf16.mxu0 %vm6280_vm0, %v6277_v21  ;;  %5743 = vmatpush3.bf16.msra.mxu0 %v5991_v54 }
 0x5b8   :  { %5744 = vmatprep.subr.bf16.mxu0 %v6277_v21 }
 0x5bb   :  { %5745 = vmatpush3.bf16.msra.mxu0 %v5992_v34 }
 0x5bc   :  { %5746 = vmatprep.subr.bf16.mxu0 %v6277_v21 }
 0x5bf   :  { %5747 = vmatpush3.bf16.msra.mxu0 %v5993_v12 }
 0x5c0   :  { %5748 = vmatprep.subr.bf16.mxu0 %v6277_v21 }
 0x5c3   :  { %5749 = vmatpush3.bf16.msra.mxu0 %v5994_v13 }
 0x5c4   :  { %5750 = vmatprep.subr.bf16.mxu0 %v6277_v21 }
 0x5c7   :  { %5751 = vmatpush3.bf16.msra.mxu0 %v5995_v14 }
 0x5c8   :  { %5752 = vmatprep.subr.bf16.mxu0 %v6277_v21 }
 0x5cb   :  { %5753 = vmatpush3.bf16.msra.mxu0 %v5996_v52 }
 0x5cc   :  { %5754 = vmatprep.subr.bf16.mxu0 %v6277_v21 }
 0x5cf   :  { %5755 = vmatpush3.bf16.msra.mxu0 %v5997_v9 }
 0x5d0   :  { %5756 = vmatprep.subr.bf16.mxu0 %v6277_v21 }
 0x5d3   :  { %5757 = vmatpush3.bf16.msra.mxu0 %v5998_v15 }
 0x5d4   :  { %5786 = vmatprep.subr.bf16.mxu0 %v6277_v21 }
 0x622   :  { %v2658_v11 = vpop.f32.mrb[44].mxu1 }
 0x623   :  { %v2659_v28 = vadd.f32 %v2658_v11, %v2537_v25  ;;  %v2660_v31 = vpop.f32.mrb[45].mxu1 }
 0x624   :  { %v2661_v23 = vadd.f32 %v2660_v31, %v2541_v24  ;;  %v2662_v32 = vpop.f32.mrb[46].mxu1 }
 0x625   :  { %v2663_v17 = vadd.f32 %v2662_v32, %v2537_v25  ;;  %v2664_v33 = vpop.f32.mrb[47].mxu1 }
 0x626   :  { %v2665_v35 = vadd.f32 %v2664_v33, %v2541_v24 }
 0x689   :  { %v2465_v36 = vpop.f32.mrb[28].mxu0 }
 0x68a   :  { %v2466_v37 = vadd.f32 %v5370_v19, %v2465_v36  ;;  %v5740_v38 = vpop.f32.mrb[29].mxu0  ;;  %v6814_v36 = vpack.c.bf16 %v2665_v35, %v2661_v23 }
 0x68b   :  { %v2468_v40 = vpop.f32.mrb[30].mxu0 }
 0x68c   :  { %v2469_v30 = vadd.f32 %v5370_v19, %v2468_v40  ;;  %v5741_v41 = vpop.f32.mrb[31].mxu0  ;;  %v2472_v43 = vadd.f32 %v6123_v42, %v2466_v37  ;;  %v2667_v19 = vpack.c.bf16 %v2663_v17, %v2659_v28 }
 0x68e   :  { %2476 = vadd.xlane.f32.xlu0 %v2472_v43  ;;  %v2473_v47 = vadd.f32 %v6124_v44, %v2469_v30  ;;  %v2680_v58 = vshrl.u32 %v2667_v19, 16 }
 0x690   :  { %2478 = vadd.xlane.f32.xlu1 %v2473_v47 }
 0x6a1   :  { %2670 = vrot.lane.b32.xlu1 %v2667_v19, %s6279_s15 }
 0x6a5   :  { %2674 = vrot.lane.b32.xlu1 %v2667_v19, %s6278_s14 }
 0x71b   :  { %v2477_v53 = vpop.xlane.xlu0 %2476 }
 0x71c   :  { %v2481_v3 = vmul.f32 0.0078125, %v2477_v53 }
 0x71d   :  { %v2479_v6 = vpop.xlane.xlu1 %2478 }
 0x71e   :  { %v2483_v62 = vsub.f32 %v2472_v43, %v2481_v3  ;;  %v2482_v49 = vmul.f32 0.0078125, %v2479_v6 }
 0x720   :  { %v2484_v7 = vsub.f32 %v2473_v47, %v2482_v49  ;;  %v2485_v8 = vmul.f32 %v2483_v62, %v2483_v62  ;;  %v5379_v47 = vld [vmem:[%s7225_s5 + $0x4] ss:$0 sm:$0xff] }
 0x721   :  { %v2671_v20 = vpop.permute.xlu1 %2670 }
 0x722   :  { %2487 = vadd.xlane.f32.xlu0 %v2485_v8  ;;  %v2486_v10 = vmul.f32 %v2484_v7, %v2484_v7  ;;  %v2678_v59 = vpack.i.b16 %v2671_v20, %v2667_v19  ;;  %v2681_v22 = vshrl.u32 %v2671_v20, 16 }
 0x724   :  { %v2682_v63 = vpack.i.b16 %v2681_v22, %v2680_v58  ;;  %v2692_v1 = vcombine.high %v2678_v59, %v6436_v51  ;;  %v2699_v2 = vrot.slane %v2678_v59, %v6439_v55 }
 0x725   :  { %v2675_v18 = vpop.permute.xlu1 %2674 }
 0x726   :  { %2489 = vadd.xlane.f32.xlu0 %v2486_v10  ;;  %v2758_v5 = vcombine.high %v2682_v63, %v6436_v51  ;;  %v2689_v53 = vshrl.u32 %v2675_v18, 16  ;;  %v2706_v3 = vrot.slane %v2692_v1, %v6439_v55  ;;  %v2765_v49 = vrot.slane %v2682_v63, %v6439_v55 }
 0x728   :  { %v2772_v12 = vrot.slane %v2758_v5, %v6439_v55 }
 0x73c   :  { %2672 = vrot.lane.b32.xlu0 %v2667_v19, %s6274_s2 }
 0x7af   :  { %v2488_v37 = vpop.xlane.xlu0 %2487 }
 0x7b0   :  { %v2491_v38 = vmul.f32 0.0078125, %v2488_v37 }
 0x7b2   :  { %v2493_v40 = vadd.f32 1e-05, %v2491_v38 }
 0x7b3   :  { %v2490_v30 = vpop.xlane.xlu0 %2489 }
 0x7b4   :  { %6079 = vrsqrt.f32 %v2493_v40  ;;  %v2492_v41 = vmul.f32 0.0078125, %v2490_v30 }
 0x7b6   :  { %v2494_v42 = vadd.f32 1e-05, %v2492_v41 }
 0x7b7   :  { %v2673_v60 = vpop.permute.xlu0 %2672 }
 0x7b8   :  { %6081 = vrsqrt.f32 %v2494_v42  ;;  %v2688_v26 = vshrl.u32 %v2673_v60, 16  ;;  %v2686_v4 = vpack.i.b16 %v2675_v18, %v2673_v60 }
 0x7ba   :  { %v2707_v6 = vcombine.high %v2686_v4, %v6436_v51 }
 0x7bc   :  { %v2721_v8 = vrot.slane %v2707_v6, %v6439_v55 }
 0x7be   :  { %v6080_v43 = vpop.eup %6079  ;;  %v2738_v15 = vcombine.low %v2706_v3, %v2721_v8  ;;  %v2739_v16 = vcombine.high %v2706_v3, %v2721_v8 }
 0x7bf   :  { %v2497_v44 = vmul.f32 %v6080_v43, %v2483_v62  ;;  %v2714_v62 = vrot.slane %v2686_v4, %v6439_v55 }
 0x7c0   :  { %v2746_v28 = vrot.slane %v2738_v15, %v6443_v61  ;;  %v2753_v31 = vrot.slane %v2739_v16, %v6443_v61 }
 0x7c1   :  { %v2505_v46 = vmul.f32 %v5379_v47, %v2497_v44  ;;  %v2722_v10 = vcombine.low %v2699_v2, %v2714_v62  ;;  %v2723_v34 = vcombine.high %v2699_v2, %v2714_v62 }
 0x7c2   :  { %v6082_v48 = vpop.eup %6081  ;;  %v2874_v37 = vcombine.low %v2746_v28, %v2753_v31  ;;  %v5399_v38 = vcombine.high %v2746_v28, %v2753_v31  ;;  %v5405_v28 = vld [vmem:[%s7225_s5 + $0x8] ss:$0 sm:$0xff] }
 0x7c3   :  { %v2498_v50 = vmul.f32 %v6082_v48, %v2484_v7  ;;  %v6825_v54 = vadd.f32 %v5380_v39, %v2505_v46  ;;  %v2690_v7 = vpack.i.b16 %v2689_v53, %v2688_v26  ;;  %v2730_v52 = vrot.slane %v2722_v10, %v6443_v61 }
 0x7c4   :  { %v2737_v9 = vrot.slane %v2723_v34, %v6443_v61  ;;  %v2889_v48 = vrot.slane %v5399_v38, %v6439_v55 }
 0x7c5   :  { %v2506_v45 = vmul.f32 %v5379_v47, %v2498_v50  ;;  %v2773_v13 = vcombine.high %v2690_v7, %v6436_v51  ;;  %v2780_v14 = vrot.slane %v2690_v7, %v6439_v55  ;;  %v2881_v47 = vrot.slane %v2874_v37, %v6439_v55 }
 0x7c6   :  { %v2824_v23 = vcombine.low %v2730_v52, %v2737_v9  ;;  %v5397_v32 = vcombine.high %v2730_v52, %v2737_v9 }
 0x7c7   :  { %v6827_v56 = vadd.f32 %v5380_v39, %v2506_v45  ;;  %v2787_v25 = vrot.slane %v2773_v13, %v6439_v55  ;;  %v2788_v24 = vcombine.low %v2765_v49, %v2780_v14  ;;  %v2789_v11 = vcombine.high %v2765_v49, %v2780_v14 }
 0x7c8   :  { %v2831_v43 = vrot.slane %v2824_v23, %v6439_v55  ;;  %v2839_v44 = vrot.slane %v5397_v32, %v6439_v55  ;;  %v2890_v20 = vcombine.low %v2881_v47, %v2889_v48 }
 0x7c9   :  { %v3243_v57 = vpack.c.bf16 %v6827_v56, %v6825_v54  ;;  %v2796_v17 = vrot.slane %v2788_v24, %v6443_v61  ;;  %v2803_v33 = vrot.slane %v2789_v11, %v6443_v61  ;;  %v2804_v35 = vcombine.low %v2772_v12, %v2787_v25 }
 0x7ca   :  { %v2805_v19 = vcombine.high %v2772_v12, %v2787_v25  ;;  %v2897_v1 = vrot.slane %v2890_v20, %v6443_v61 }
 0x7cb   :  { %5759 = vmatmul.mubr.bf16.vlgmr.msra.gmra.mrb[32].mxu0 %v3243_v57  ;;  %v2812_v40 = vrot.slane %v2804_v35, %v6443_v61  ;;  %v2849_v41 = vcombine.low %v2796_v17, %v2803_v33  ;;  %v5398_v42 = vcombine.high %v2796_v17, %v2803_v33  ;;  %v2840_v57 = vcombine.low %v2831_v43, %v2839_v44 }
 0x7cc   :  { %5788 = vmatprep.mubr.msk.bf16.mxu0 %vm6280_vm0, %v6277_v21  ;;  %v2819_v30 = vrot.slane %v2805_v19, %v6443_v61  ;;  %v6878_v8 = vcombine.high %v2897_v1, %v6276_v0  ;;  %v2939_v14 = vshrl.u32 %v2897_v1, 16 }
 0x7cd   :  { %v2856_v50 = vrot.slane %v2849_v41, %v6439_v55  ;;  %v2864_v46 = vrot.slane %v5398_v42, %v6439_v55  ;;  %v2847_v60 = vrot.slane %v2840_v57, %v6443_v61 }
 0x7ce   :  { %v2899_v39 = vcombine.low %v2812_v40, %v2819_v30  ;;  %v5400_v45 = vcombine.high %v2812_v40, %v2819_v30  ;;  %v2945_v15 = vshrl.u32 %v6878_v8, 16 }
 0x7cf   :  { %v2865_v58 = vcombine.low %v2856_v50, %v2864_v46  ;;  %v2927_v3 = vshrl.u32 %v2847_v60, 16  ;;  %v6870_v62 = vcombine.high %v2847_v60, %v6276_v0 }
 0x7d0   :  { %v2906_v59 = vrot.slane %v2899_v39, %v6439_v55  ;;  %v2914_v22 = vrot.slane %v5400_v45, %v6439_v55 }
 0x7d1   :  { %v2872_v63 = vrot.slane %v2865_v58, %v6443_v61  ;;  %v2933_v12 = vshrl.u32 %v6870_v62, 16 }
 0x7d2   :  { %v2915_v26 = vcombine.low %v2906_v59, %v2914_v22 }
 0x7d3   :  { %v2926_v18 = vpack.i.b16 %v2872_v63, %v2847_v60  ;;  %v2928_v6 = vshrl.u32 %v2872_v63, 16  ;;  %v6873_v49 = vcombine.high %v2872_v63, %v6276_v0 }
 0x7d4   :  { %v2922_v2 = vrot.slane %v2915_v26, %v6443_v61 }
 0x7d5   :  { %v3624_v4 = vsel %vm1204_vm1, %v2926_v18, 0  ;;  %v6875_v7 = vpack.i.b16 %v2928_v6, %v2927_v3  ;;  %v2932_v34 = vpack.i.b16 %v6873_v49, %v6870_v62  ;;  %v2934_v13 = vshrl.u32 %v6873_v49, 16 }
 0x7d6   :  { %5763 = vmatpush3.bf16.xpose.msra.mxu1 %v3624_v4  ;;  %v2938_v5 = vpack.i.b16 %v2922_v2, %v2897_v1  ;;  %v6881_v10 = vcombine.high %v2922_v2, %v6276_v0  ;;  %v2940_v52 = vshrl.u32 %v2922_v2, 16 }
 0x7d7   :  { %5768 = vmatprep.subr.bf16.mxu1 %v6277_v21  ;;  %v6890_v16 = vpack.i.b16 %v2934_v13, %v2933_v12 }
 0x7d8   :  { %v3808_v53 = vsel %vm1204_vm1, %v2938_v5, 0  ;;  %v2944_v9 = vpack.i.b16 %v6881_v10, %v6878_v8  ;;  %v6892_v25 = vpack.i.b16 %v2940_v52, %v2939_v14  ;;  %v2946_v24 = vshrl.u32 %v6881_v10, 16 }
 0x7d9   :  { %5787 = vmatpush3.bf16.xpose.msra.mxu0 %v3808_v53  ;;  %v3716_v8 = vsel %vm1204_vm1, %v2932_v34, 0  ;;  %v3762_v62 = vsel %vm1204_vm1, %v6890_v16, 0 }
 0x7da   :  { %5798 = vmatprep.subr.bf16.mxu0 %v6277_v21  ;;  %v6895_v11 = vpack.i.b16 %v2946_v24, %v2945_v15 }
 0x89e   :  { %v3333_v31 = vpop.f32.mrb[32].mxu0 }
 0x89f   :  { %v5760_v23 = vpop.f32.mrb[33].mxu0  ;;  %v3334_v17 = vadd.f32 %v5405_v28, %v3333_v31 }
 0x8a0   :  { %v3336_v32 = vpop.f32.mrb[34].mxu0 }
 0x8a1   :  { %v3337_v33 = vadd.f32 %v5405_v28, %v3336_v32  ;;  %v5761_v35 = vpop.f32.mrb[35].mxu0 }
 0x8a3   :  { %v3340_v19 = vpack.c.bf16 %v3337_v33, %v3334_v17 }
 0x8a5   :  { %3344 = vrot.lane.b32.xlu0 %v3340_v19, %s6274_s2  ;;  %3342 = vrot.lane.b32.xlu1 %v3340_v19, %s6279_s15  ;;  %v3352_v30 = vshrl.u32 %v3340_v19, 16 }
 0x8a9   :  { %3346 = vrot.lane.b32.xlu1 %v3340_v19, %s6278_s14 }
 0x917   :  { %v3343_v37 = vpop.permute.xlu1 %3342  ;;  %v3345_v41 = vpop.permute.xlu0 %3344 }
 0x918   :  { %v3350_v38 = vpack.i.b16 %v3343_v37, %v3340_v19  ;;  %v3353_v40 = vshrl.u32 %v3343_v37, 16  ;;  %v3360_v48 = vshrl.u32 %v3345_v41, 16 }
 0x91a   :  { %v3354_v42 = vpack.i.b16 %v3353_v40, %v3352_v30  ;;  %v3364_v44 = vcombine.high %v3350_v38, %v6436_v51  ;;  %v3371_v46 = vrot.slane %v3350_v38, %v6439_v55 }
 0x91b   :  { %v3347_v43 = vpop.permute.xlu1 %3346 }
 0x91c   :  { %v3358_v47 = vpack.i.b16 %v3347_v43, %v3345_v41  ;;  %v3361_v50 = vshrl.u32 %v3347_v43, 16  ;;  %v3430_v57 = vcombine.high %v3354_v42, %v6436_v51  ;;  %v3378_v20 = vrot.slane %v3364_v44, %v6439_v55 }
 0x91d   :  { %v3437_v63 = vrot.slane %v3354_v42, %v6439_v55 }
 0x91e   :  { %v3379_v39 = vcombine.high %v3358_v47, %v6436_v51  ;;  %v3386_v45 = vrot.slane %v3358_v47, %v6439_v55  ;;  %v3362_v58 = vpack.i.b16 %v3361_v50, %v3360_v48  ;;  %v3444_v53 = vrot.slane %v3430_v57, %v6439_v55 }
 0x920   :  { %v3393_v59 = vrot.slane %v3379_v39, %v6439_v55  ;;  %v3394_v22 = vcombine.low %v3371_v46, %v3386_v45  ;;  %v3395_v60 = vcombine.high %v3371_v46, %v3386_v45  ;;  %v3445_v1 = vcombine.high %v3362_v58, %v6436_v51 }
 0x921   :  { %v3452_v26 = vrot.slane %v3362_v58, %v6439_v55 }
 0x922   :  { %v3402_v18 = vrot.slane %v3394_v22, %v6443_v61  ;;  %v3409_v2 = vrot.slane %v3395_v60, %v6443_v61  ;;  %v3410_v4 = vcombine.low %v3378_v20, %v3393_v59  ;;  %v3411_v5 = vcombine.high %v3378_v20, %v3393_v59 }
 0x923   :  { %v3459_v3 = vrot.slane %v3445_v1, %v6439_v55  ;;  %v3460_v6 = vcombine.low %v3437_v63, %v3452_v26  ;;  %v3461_v12 = vcombine.high %v3437_v63, %v3452_v26  ;;  %v3670_v63 = vsel %vm1204_vm1, %v6875_v7, 0 }
 0x924   :  { %v3418_v13 = vrot.slane %v3410_v4, %v6443_v61  ;;  %v3425_v14 = vrot.slane %v3411_v5, %v6443_v61  ;;  %v3496_v52 = vcombine.low %v3402_v18, %v3409_v2  ;;  %v5414_v15 = vcombine.high %v3402_v18, %v3409_v2 }
 0x925   :  { %v3468_v24 = vrot.slane %v3460_v6, %v6443_v61  ;;  %v3475_v28 = vrot.slane %v3461_v12, %v6443_v61  ;;  %v3476_v31 = vcombine.low %v3444_v53, %v3459_v3  ;;  %v3477_v23 = vcombine.high %v3444_v53, %v3459_v3 }
 0x926   :  { %v3503_v32 = vrot.slane %v3496_v52, %v6439_v55  ;;  %v3511_v17 = vrot.slane %v5414_v15, %v6439_v55  ;;  %v3546_v33 = vcombine.low %v3418_v13, %v3425_v14  ;;  %v5416_v35 = vcombine.high %v3418_v13, %v3425_v14 }
 0x927   :  { %v3484_v19 = vrot.slane %v3476_v31, %v6443_v61  ;;  %v3491_v37 = vrot.slane %v3477_v23, %v6443_v61  ;;  %v3521_v38 = vcombine.low %v3468_v24, %v3475_v28  ;;  %v5415_v40 = vcombine.high %v3468_v24, %v3475_v28 }
 0x928   :  { %v3512_v30 = vcombine.low %v3503_v32, %v3511_v17  ;;  %v3553_v41 = vrot.slane %v3546_v33, %v6439_v55  ;;  %v3561_v42 = vrot.slane %v5416_v35, %v6439_v55  ;;  %v3900_v26 = vsel %vm1204_vm1, %v2944_v9, 0 }
 0x929   :  { %v3528_v43 = vrot.slane %v3521_v38, %v6439_v55  ;;  %v3536_v44 = vrot.slane %v5415_v40, %v6439_v55  ;;  %v3571_v47 = vcombine.low %v3484_v19, %v3491_v37  ;;  %v5417_v48 = vcombine.high %v3484_v19, %v3491_v37 }
 0x92a   :  { %v3562_v46 = vcombine.low %v3553_v41, %v3561_v42  ;;  %v3519_v57 = vrot.slane %v3512_v30, %v6443_v61  ;;  %v3854_v12 = vsel %vm1204_vm1, %v6892_v25, 0  ;;  %v3946_v52 = vsel %vm1204_vm1, %v6895_v11, 0 }
 0x92b   :  { %v3537_v50 = vcombine.low %v3528_v43, %v3536_v44  ;;  %v3578_v39 = vrot.slane %v3571_v47, %v6439_v55  ;;  %v3586_v45 = vrot.slane %v5417_v48, %v6439_v55 }
 0x92c   :  { %v3569_v22 = vrot.slane %v3562_v46, %v6443_v61  ;;  %v3599_v7 = vshrl.u32 %v3519_v57, 16  ;;  %v3520_v53 = vcombine.high %v3519_v57, %v6276_v0 }
 0x92d   :  { %v3587_v58 = vcombine.low %v3578_v39, %v3586_v45  ;;  %v3544_v20 = vrot.slane %v3537_v50, %v6443_v61 }
 0x92e   :  { %v3570_v5 = vcombine.high %v3569_v22, %v6276_v0  ;;  %v3605_v34 = vshrl.u32 %v3520_v53, 16  ;;  %v3611_v13 = vshrl.u32 %v3569_v22, 16 }
 0x92f   :  { %v3598_v59 = vpack.i.b16 %v3544_v20, %v3519_v57  ;;  %v3594_v60 = vrot.slane %v3587_v58, %v6443_v61  ;;  %v3600_v18 = vshrl.u32 %v3544_v20, 16  ;;  %v3545_v9 = vcombine.high %v3544_v20, %v6276_v0 }
 0x930   :  { %v3617_v25 = vshrl.u32 %v3570_v5, 16 }
 0x931   :  { %5765 = vmatmul.mubr.msk.bf16.vlgmr.msra.gmra.mrb[48].mxu1 %vm1204_vm1, %v3598_v59  ;;  %v3610_v1 = vpack.i.b16 %v3594_v60, %v3569_v22  ;;  %v3595_v2 = vcombine.high %v3594_v60, %v6276_v0  ;;  %v3601_v4 = vpack.i.b16 %v3600_v18, %v3599_v7  ;;  %v3604_v3 = vpack.i.b16 %v3545_v9, %v3520_v53 }
 0x932   :  { %5769 = vmatpush3.bf16.xpose.msra.mxu1 %v3670_v63  ;;  %5770 = vmatprep.mubr.msk.bf16.mxu1 %vm6280_vm0, %v6277_v21  ;;  %v3606_v49 = vshrl.u32 %v3545_v9, 16  ;;  %v3612_v16 = vshrl.u32 %v3594_v60, 16 }
 0x933   :  { %5789 = vmatmul.mubr.msk.bf16.vlgmr.msra.gmra.mrb[36].mxu0 %vm1204_vm1, %v3610_v1  ;;  %5774 = vmatprep.subr.bf16.mxu1 %v6277_v21  ;;  %v3616_v10 = vpack.i.b16 %v3595_v2, %v3570_v5  ;;  %v3618_v15 = vshrl.u32 %v3595_v2, 16 }
 0x934   :  { %5799 = vmatpush3.bf16.xpose.msra.mxu0 %v3900_v26  ;;  %5800 = vmatprep.mubr.msk.bf16.mxu0 %vm6280_vm0, %v6277_v21  ;;  %v3607_v6 = vpack.i.b16 %v3606_v49, %v3605_v34  ;;  %v3613_v14 = vpack.i.b16 %v3612_v16, %v3611_v13 }
 0x935   :  { %5810 = vmatprep.subr.bf16.mxu0 %v6277_v21  ;;  %v3619_v24 = vpack.i.b16 %v3618_v15, %v3617_v25 }
 0x939   :  { %5771 = vmatmul.mubr.msk.bf16.vlgmr.msra.gmra.mrb[52].mxu1 %vm1204_vm1, %v3601_v4 }
 0x93a   :  { %5775 = vmatpush3.bf16.xpose.msra.mxu1 %v3716_v8  ;;  %5776 = vmatprep.mubr.msk.bf16.mxu1 %vm6280_vm0, %v6277_v21 }
 0x93b   :  { %5801 = vmatmul.mubr.msk.bf16.vlgmr.msra.gmra.mrb[40].mxu0 %vm1204_vm1, %v3616_v10  ;;  %5780 = vmatprep.subr.bf16.mxu1 %v6277_v21 }
 0x93c   :  { %5812 = vmatprep.mubr.msk.bf16.mxu0 %vm6280_vm0, %v6277_v21 }
 0x941   :  { %5777 = vmatmul.mubr.msk.bf16.vlgmr.msra.gmra.mrb[56].mxu1 %vm1204_vm1, %v3604_v3 }
 0x942   :  { %5781 = vmatpush3.bf16.xpose.msra.mxu1 %v3762_v62  ;;  %5782 = vmatprep.mubr.msk.bf16.mxu1 %vm6280_vm0, %v6277_v21 }
 0x943   :  { %5792 = vmatprep.subr.bf16.mxu1 %v6277_v21 }
 0x949   :  { %5783 = vmatmul.mubr.msk.bf16.vlgmr.msra.gmra.mrb[60].mxu1 %vm1204_vm1, %v3607_v6 }
 0x94a   :  { %5793 = vmatpush3.bf16.xpose.msra.mxu1 %v3854_v12  ;;  %5794 = vmatprep.mubr.msk.bf16.mxu1 %vm6280_vm0, %v6277_v21 }
 0x94b   :  { %5804 = vmatprep.subr.bf16.mxu1 %v6277_v21 }
 0x951   :  { %5795 = vmatmul.mubr.msk.bf16.vlgmr.msra.gmra.mrb[64].mxu1 %vm1204_vm1, %v3613_v14 }
 0x952   :  { %5805 = vmatpush3.bf16.xpose.msra.mxu1 %v3946_v52  ;;  %5806 = vmatprep.mubr.msk.bf16.mxu1 %vm6280_vm0, %v6277_v21 }
 0x953   :  { %5816 = vmatprep.subr.bf16.mxu1 %v6277_v21 }
 0x959   :  { %5807 = vmatmul.mubr.msk.bf16.vlgmr.msra.gmra.mrb[68].mxu1 %vm1204_vm1, %v3619_v24 }
 0x95a   :  { %5818 = vmatprep.mubr.msk.bf16.mxu1 %vm6280_vm0, %v6277_v21 }
 0xa04   :  { %v3660_v28 = vpop.f32.mrb[48].mxu1 }
 0xa05   :  { %v3988_v31 = vmul.f32 0.17677669, %v3660_v28  ;;  %v5766_v23 = vpop.f32.mrb[49].mxu1 }
 0xa06   :  { %v3663_v32 = vpop.f32.mrb[50].mxu1  ;;  %v3844_v17 = vpop.f32.mrb[36].mxu0 }
 0xa07   :  { %v5767_v11 = vpop.f32.mrb[51].mxu1  ;;  %v5790_v33 = vpop.f32.mrb[37].mxu0  ;;  %v3996_v35 = vsel %vm1589_vm2, %v3988_v31, -inf  ;;  %v6986_v43 = vmul.f32 0.17677669, %v3844_v17 }
 0xa08   :  { %3997 = vmax.xlane.f32.xlu0 %v3996_v35  ;;  %v3847_v19 = vpop.f32.mrb[38].mxu0 }
 0xa09   :  { %v5791_v37 = vpop.f32.mrb[39].mxu0  ;;  %v4008_v45 = vsel %vm1589_vm2, %v6986_v43, -inf }
 0xa0c   :  { %v3706_v38 = vpop.f32.mrb[52].mxu1 }
 0xa0d   :  { %v3989_v40 = vmul.f32 0.17677669, %v3706_v38  ;;  %v5772_v30 = vpop.f32.mrb[53].mxu1 }
 0xa0e   :  { %v3709_v41 = vpop.f32.mrb[54].mxu1  ;;  %v3936_v42 = vpop.f32.mrb[40].mxu0 }
 0xa0f   :  { %v5773_v44 = vpop.f32.mrb[55].mxu1  ;;  %v5802_v47 = vpop.f32.mrb[41].mxu0  ;;  %v3999_v48 = vsel %vm1589_vm2, %v3989_v40, -inf  ;;  %v6989_v39 = vmul.f32 0.17677669, %v3936_v42 }
 0xa10   :  { %4000 = vmax.xlane.f32.xlu1 %v3999_v48  ;;  %v3939_v50 = vpop.f32.mrb[42].mxu0 }
 0xa11   :  { %v5803_v46 = vpop.f32.mrb[43].mxu0  ;;  %v4014_v63 = vsel %vm1589_vm2, %v6989_v39, -inf }
 0xa14   :  { %v3752_v57 = vpop.f32.mrb[56].mxu1  ;;  %4009 = vmax.xlane.f32.xlu1 %v4008_v45 }
 0xa15   :  { %v3990_v58 = vmul.f32 0.17677669, %v3752_v57  ;;  %v5778_v20 = vpop.f32.mrb[57].mxu1 }
 0xa16   :  { %v3755_v59 = vpop.f32.mrb[58].mxu1 }
 0xa17   :  { %v5779_v22 = vpop.f32.mrb[59].mxu1  ;;  %v4002_v60 = vsel %vm1589_vm2, %v3990_v58, -inf }
 0xa18   :  { %4003 = vmax.xlane.f32.xlu0 %v4002_v60  ;;  %4015 = vmax.xlane.f32.xlu1 %v4014_v63 }
 0xa1c   :  { %v3798_v1 = vpop.f32.mrb[60].mxu1 }
 0xa1d   :  { %v3991_v26 = vmul.f32 0.17677669, %v3798_v1  ;;  %v5784_v18 = vpop.f32.mrb[61].mxu1 }
 0xa1e   :  { %v3801_v7 = vpop.f32.mrb[62].mxu1 }
 0xa1f   :  { %v5785_v2 = vpop.f32.mrb[63].mxu1  ;;  %v4005_v4 = vsel %vm1589_vm2, %v3991_v26, -inf }
 0xa20   :  { %4006 = vmax.xlane.f32.xlu0 %v4005_v4 }
 0xa24   :  { %v3890_v5 = vpop.f32.mrb[64].mxu1 }
 0xa25   :  { %v3993_v8 = vmul.f32 0.17677669, %v3890_v5  ;;  %v5796_v10 = vpop.f32.mrb[65].mxu1 }
 0xa26   :  { %v3893_v9 = vpop.f32.mrb[66].mxu1 }
 0xa27   :  { %v5797_v53 = vpop.f32.mrb[67].mxu1  ;;  %v4011_v3 = vsel %vm1589_vm2, %v3993_v8, -inf }
 0xa28   :  { %4012 = vmax.xlane.f32.xlu0 %v4011_v3  ;;  %v2959_v53 = vshrl.u32 %v6814_v36, 16 }
 0xa29   :  { %2949 = vrot.lane.b32.xlu1 %v6814_v36, %s6279_s15 }
 0xa2c   :  { %v3982_v62 = vpop.f32.mrb[68].mxu1 }
 0xa2d   :  { %v3995_v49 = vmul.f32 0.17677669, %v3982_v62  ;;  %v5808_v34 = vpop.f32.mrb[69].mxu1 }
 0xa2e   :  { %v3985_v6 = vpop.f32.mrb[70].mxu1 }
 0xa2f   :  { %v5809_v12 = vpop.f32.mrb[71].mxu1  ;;  %v4017_v16 = vsel %vm1589_vm2, %v3995_v49, -inf }
 0xa30   :  { %4018 = vmax.xlane.f32.xlu0 %v4017_v16 }
 0xa95   :  { %v3998_v13 = vpop.xlane.xlu0 %3997 }
 0xa96   :  { %v4020_v14 = vsub.f32 %v3988_v31, %v3998_v13 }
 0xa98   :  { %v4028_v52 = vmul.f32 1.442695, %v4020_v14 }
 0xa9a   :  { %6083 = vpow2.f32 %v4028_v52 }
 0xa9d   :  { %v4001_v15 = vpop.xlane.xlu1 %4000 }
 0xa9e   :  { %v4021_v25 = vsub.f32 %v3989_v40, %v4001_v15 }
 0xaa0   :  { %v4030_v24 = vmul.f32 1.442695, %v4021_v25 }
 0xaa1   :  { %v4010_v40 = vpop.xlane.xlu1 %4009 }
 0xaa2   :  { %6085 = vpow2.f32 %v4030_v24  ;;  %v4024_v47 = vsub.f32 %v6986_v43, %v4010_v40 }
 0xaa4   :  { %v7001_v28 = vpop.eup %6083  ;;  %v4036_v46 = vmul.f32 1.442695, %v4024_v47 }
 0xaa5   :  { %v4044_v23 = vsel %vm1589_vm2, %v7001_v28, 0.0  ;;  %v4004_v31 = vpop.xlane.xlu0 %4003  ;;  %v4016_v50 = vpop.xlane.xlu1 %4015 }
 0xaa6   :  { %4045 = vadd.xlane.f32.xlu1 %v4044_v23  ;;  %v4022_v33 = vsub.f32 %v3990_v58, %v4004_v31  ;;  %v4026_v45 = vsub.f32 %v6989_v39, %v4016_v50 }
 0xaa8   :  { %v4032_v19 = vmul.f32 1.442695, %v4022_v33  ;;  %v4040_v58 = vmul.f32 1.442695, %v4026_v45 }
 0xaa9   :  { %v2950_v2 = vpop.permute.xlu1 %2949 }
 0xaaa   :  { %6087 = vpow2.f32 %v4032_v19  ;;  %v7040_v9 = vpack.i.b16 %v2950_v2, %v6814_v36 }
 0xaac   :  { %v7005_v32 = vpop.eup %6085  ;;  %v2978_v12 = vrot.slane %v7040_v9, %v6439_v55 }
 0xaad   :  { %v4047_v17 = vsel %vm1589_vm2, %v7005_v32, 0.0  ;;  %v4007_v11 = vpop.xlane.xlu0 %4006 }
 0xaae   :  { %4048 = vadd.xlane.f32.xlu0 %v4047_v17  ;;  %v4023_v30 = vsub.f32 %v3991_v26, %v4007_v11 }
 0xab0   :  { %v4034_v44 = vmul.f32 1.442695, %v4023_v30 }
 0xab4   :  { %v7015_v57 = vpop.eup %6087 }
 0xab5   :  { %v4013_v35 = vpop.xlane.xlu0 %4012  ;;  %v4050_v20 = vsel %vm1589_vm2, %v7015_v57, 0.0 }
 0xab6   :  { %v4025_v37 = vsub.f32 %v3993_v8, %v4013_v35  ;;  %v2960_v8 = vshrl.u32 %v2950_v2, 16 }
 0xab7   :  { %2953 = vrot.lane.b32.xlu1 %v6814_v36, %s6278_s14 }
 0xab8   :  { %v4038_v41 = vmul.f32 1.442695, %v4025_v37  ;;  %v2961_v6 = vpack.i.b16 %v2960_v8, %v2959_v53 }
 0xaba   :  { %6089 = vpow2.f32 %v4038_v41  ;;  %v3044_v15 = vrot.slane %v2961_v6, %v6439_v55  ;;  %v3037_v53 = vcombine.high %v2961_v6, %v6436_v51 }
 0xabb   :  { %6091 = vpow2.f32 %v4034_v44 }
 0xabd   :  { %v4019_v38 = vpop.xlane.xlu0 %4018 }
 0xabe   :  { %v4027_v42 = vsub.f32 %v3995_v49, %v4019_v38 }
 0xac0   :  { %v4042_v48 = vmul.f32 1.442695, %v4027_v42 }
 0xac2   :  { %6093 = vpow2.f32 %v4042_v48 }
 0xac3   :  { %6095 = vpow2.f32 %v4036_v46 }
 0xac4   :  { %2951 = vrot.lane.b32.xlu0 %v6814_v36, %s6274_s2  ;;  %v7019_v59 = vpop.eup %6089  ;;  %6097 = vpow2.f32 %v4040_v58 }
 0xac5   :  { %v7021_v43 = vpop.eup %6091  ;;  %v4059_v22 = vsel %vm1589_vm2, %v7019_v59, 0.0 }
 0xac6   :  { %v4053_v39 = vsel %vm1589_vm2, %v7021_v43, 0.0 }
 0xacc   :  { %v7025_v60 = vpop.eup %6093 }
 0xacd   :  { %v4065_v63 = vsel %vm1589_vm2, %v7025_v60, 0.0  ;;  %v7031_v1 = vpop.eup %6095 }
 0xace   :  { %v4056_v26 = vsel %vm1589_vm2, %v7031_v1, 0.0  ;;  %v7035_v18 = vpop.eup %6097 }
 0xacf   :  { %v4062_v7 = vsel %vm1589_vm2, %v7035_v18, 0.0 }
 0xadb   :  { %4051 = vadd.xlane.f32.xlu1 %v4050_v20 }
 0xadf   :  { %4060 = vadd.xlane.f32.xlu1 %v4059_v22 }
 0xae3   :  { %4054 = vadd.xlane.f32.xlu0 %v4053_v39  ;;  %4066 = vadd.xlane.f32.xlu1 %v4065_v63 }
 0xae7   :  { %4057 = vadd.xlane.f32.xlu0 %v4056_v26 }
 0xaeb   :  { %4063 = vadd.xlane.f32.xlu0 %v4062_v7 }
 0xb33   :  { %v4046_v4 = vpop.xlane.xlu1 %4045 }
 0xb34   :  { %6099 = vrcp.f32 %v4046_v4 }
 0xb37   :  { %v2954_v10 = vpop.permute.xlu1 %2953 }
 0xb38   :  { %v2968_v62 = vshrl.u32 %v2954_v10, 16 }
 0xb3b   :  { %v4049_v5 = vpop.xlane.xlu0 %4048 }
 0xb3c   :  { %6101 = vrcp.f32 %v4049_v5 }
 0xb3e   :  { %v6100_v47 = vpop.eup %6099 }
 0xb3f   :  { %v2952_v3 = vpop.permute.xlu0 %2951  ;;  %v4076_v58 = vmul.f32 %v6100_v47, %v7001_v28 }
 0xb40   :  { %v2965_v49 = vpack.i.b16 %v2954_v10, %v2952_v3  ;;  %v2967_v34 = vshrl.u32 %v2952_v3, 16 }
 0xb42   :  { %v2969_v16 = vpack.i.b16 %v2968_v62, %v2967_v34  ;;  %v2993_v13 = vrot.slane %v2965_v49, %v6439_v55  ;;  %v2986_v3 = vcombine.high %v2965_v49, %v6436_v51  ;;  %v4084_v62 = vpack.c.bf16 %v4076_v58, %v4076_v58 }
 0xb43   :  { %v3051_v49 = vrot.slane %v3037_v53, %v6439_v55 }
 0xb44   :  { %v3001_v14 = vcombine.low %v2978_v12, %v2993_v13  ;;  %v3002_v52 = vcombine.high %v2978_v12, %v2993_v13  ;;  %v3059_v25 = vrot.slane %v2969_v16, %v6439_v55  ;;  %v3052_v7 = vcombine.high %v2969_v16, %v6436_v51 }
 0xb45   :  { %v3000_v13 = vrot.slane %v2986_v3, %v6439_v55 }
 0xb46   :  { %v3009_v36 = vrot.slane %v3001_v14, %v6443_v61  ;;  %v3016_v24 = vrot.slane %v3002_v52, %v6443_v61  ;;  %v3067_v23 = vcombine.low %v3044_v15, %v3059_v25  ;;  %v3068_v17 = vcombine.high %v3044_v15, %v3059_v25  ;;  %v6102_v46 = vpop.eup %6101 }
 0xb47   :  { %v4077_v26 = vmul.f32 %v6102_v46, %v7005_v32  ;;  %v2971_v32 = vcombine.high %v7040_v9, %v6436_v51  ;;  %v3066_v12 = vrot.slane %v3052_v7, %v6439_v55 }
 0xb48   :  { %v3103_v31 = vcombine.low %v3009_v36, %v3016_v24  ;;  %v5401_v11 = vcombine.high %v3009_v36, %v3016_v24  ;;  %v3075_v33 = vrot.slane %v3067_v23, %v6443_v61  ;;  %v3082_v35 = vrot.slane %v3068_v17, %v6443_v61 }
 0xb49   :  { %v4085_v6 = vpack.c.bf16 %v4077_v26, %v4077_v26  ;;  %v2985_v9 = vrot.slane %v2971_v32, %v6439_v55  ;;  %v3083_v14 = vcombine.low %v3051_v49, %v3066_v12  ;;  %v3084_v52 = vcombine.high %v3051_v49, %v3066_v12 }
 0xb4a   :  { %v3110_v19 = vrot.slane %v3103_v31, %v6439_v55  ;;  %v3118_v37 = vrot.slane %v5401_v11, %v6439_v55  ;;  %v3128_v38 = vcombine.low %v3075_v33, %v3082_v35  ;;  %v5402_v40 = vcombine.high %v3075_v33, %v3082_v35 }
 0xb4b   :  { %v3017_v15 = vcombine.low %v2985_v9, %v3000_v13  ;;  %v3018_v25 = vcombine.high %v2985_v9, %v3000_v13  ;;  %v3091_v36 = vrot.slane %v3083_v14, %v6443_v61  ;;  %v3098_v24 = vrot.slane %v3084_v52, %v6443_v61 }
 0xb4c   :  { %v3119_v30 = vcombine.low %v3110_v19, %v3118_v37  ;;  %v3135_v41 = vrot.slane %v3128_v38, %v6439_v55  ;;  %v3143_v42 = vrot.slane %v5402_v40, %v6439_v55 }
 0xb4d   :  { %v3025_v23 = vrot.slane %v3017_v15, %v6443_v61  ;;  %v3032_v17 = vrot.slane %v3018_v25, %v6443_v61  ;;  %v3178_v31 = vcombine.low %v3091_v36, %v3098_v24  ;;  %v5404_v11 = vcombine.high %v3091_v36, %v3098_v24  ;;  %v5999_v25 = vld [vmem:[#allocation8 + $0x1c] ss:$40 sps:$4 sm:$0xff]   ;;  %v6000_v36 = vld [vmem:[#allocation8 + $0x6c] ss:$40 sps:$4 sm:$0xff]  }
 0xb4e   :  { %v3126_v44 = vrot.slane %v3119_v30, %v6443_v61  ;;  %v3144_v48 = vcombine.low %v3135_v41, %v3143_v42  ;;  %v6001_v24 = vld [vmem:[#allocation8 + $0xbc] ss:$40 sps:$4 sm:$0xff]  }
 0xb4f   :  { %v3153_v33 = vcombine.low %v3025_v23, %v3032_v17  ;;  %v5403_v35 = vcombine.high %v3025_v23, %v3032_v17  ;;  %v3185_v37 = vrot.slane %v3178_v31, %v6439_v55  ;;  %v3193_v38 = vrot.slane %v5404_v11, %v6439_v55  ;;  %v6003_v23 = vld [vmem:[#allocation8 + $0x15c] ss:$40 sps:$4 sm:$0xff]   ;;  %v6004_v17 = vld [vmem:[#allocation8 + $0x1ac] ss:$40 sps:$4 sm:$0xff]  }
 0xb50   :  { %v3127_v50 = vcombine.high %v3126_v44, %v6276_v0  ;;  %v3151_v45 = vrot.slane %v3144_v48, %v6443_v61  ;;  %v3206_v22 = vshrl.u32 %v3126_v44, 16 }
 0xb51   :  { %v3160_v40 = vrot.slane %v3153_v33, %v6439_v55  ;;  %v3168_v30 = vrot.slane %v5403_v35, %v6439_v55  ;;  %v3194_v41 = vcombine.low %v3185_v37, %v3193_v38 }
 0xb52   :  { %v3205_v20 = vpack.i.b16 %v3151_v45, %v3126_v44  ;;  %v3207_v39 = vshrl.u32 %v3151_v45, 16  ;;  %v3152_v63 = vcombine.high %v3151_v45, %v6276_v0  ;;  %v3212_v2 = vshrl.u32 %v3127_v50, 16 }
 0xb53   :  { %v3169_v42 = vcombine.low %v3160_v40, %v3168_v30  ;;  %v3201_v47 = vrot.slane %v3194_v41, %v6443_v61 }
 0xb54   :  { %v4096_v4 = vsel %vm1689_vm3, %v3205_v20, 0  ;;  %v3208_v5 = vpack.i.b16 %v3207_v39, %v3206_v22  ;;  %v3211_v8 = vpack.i.b16 %v3152_v63, %v3127_v50  ;;  %v3213_v10 = vshrl.u32 %v3152_v63, 16 }
 0xb55   :  { %5811 = vmatpush3.bf16.msra.mxu0 %v4096_v4  ;;  %v3176_v50 = vrot.slane %v3169_v42, %v6443_v61  ;;  %v3219_v26 = vshrl.u32 %v3201_v47, 16 }
 0xb56   :  { %v4142_v28 = vsel %vm1689_vm3, %v3208_v5, 0  ;;  %5822 = vmatprep.subr.bf16.mxu0 %v6277_v21  ;;  %v3214_v34 = vpack.i.b16 %v3213_v10, %v3212_v2  ;;  %v4188_v16 = vsel %vm1689_vm3, %v3211_v8, 0  ;;  %v3202_v8 = vcombine.high %v3201_v47, %v6276_v0 }
 0xb57   :  { %5817 = vmatpush3.bf16.msra.mxu1 %v4142_v28  ;;  %v3217_v20 = vpack.i.b16 %v3201_v47, %v3176_v50  ;;  %v3218_v2 = vshrl.u32 %v3176_v50, 16  ;;  %v3177_v3 = vcombine.high %v3176_v50, %v6276_v0 }
 0xb58   :  { %5813 = vmatmul.mubr.msk.bf16.vlgmr.msra.gmra.mrb[44].mxu0 %vm1589_vm2, %v4084_v62  ;;  %5828 = vmatprep.subr.bf16.mxu1 %v6277_v21  ;;  %v4234_v51 = vsel %vm1689_vm3, %v3214_v34, 0  ;;  %v3225_v12 = vshrl.u32 %v3202_v8, 16 }
 0xb59   :  { %5823 = vmatpush3.bf16.msra.mxu0 %v4188_v16  ;;  %5824 = vmatprep.mubr.msk.bf16.mxu0 %vm6280_vm0, %v6277_v21  ;;  %v4280_v63 = vsel %vm1689_vm3, %v3217_v20, 0  ;;  %v3220_v5 = vpack.i.b16 %v3219_v26, %v3218_v2  ;;  %v3223_v32 = vpack.i.b16 %v3202_v8, %v3177_v3 }
 0xb5a   :  { %5819 = vmatmul.mubr.msk.bf16.vlgmr.msra.gmra.mrb[72].mxu1 %vm1589_vm2, %v4085_v6  ;;  %5834 = vmatprep.subr.bf16.mxu0 %v6277_v21  ;;  %v3224_v6 = vshrl.u32 %v3177_v3, 16 }
 0xb5b   :  { %5829 = vmatpush3.bf16.msra.mxu1 %v4234_v51  ;;  %5830 = vmatprep.mubr.msk.bf16.mxu1 %vm6280_vm0, %v6277_v21  ;;  %v4326_v34 = vsel %vm1689_vm3, %v3220_v5, 0 }
 0xb5c   :  { %5840 = vmatprep.subr.bf16.mxu1 %v6277_v21  ;;  %v3226_v13 = vpack.i.b16 %v3225_v12, %v3224_v6 }
 0xb5e   :  { %v4418_v14 = vsel %vm1689_vm3, %v3226_v13, 0 }
 0xb68   :  { %v4052_v19 = vpop.xlane.xlu1 %4051 }
 0xb69   :  { %6103 = vrcp.f32 %v4052_v19 }
 0xb6c   :  { %v4061_v48 = vpop.xlane.xlu1 %4060 }
 0xb70   :  { %v4055_v44 = vpop.xlane.xlu0 %4054  ;;  %v4067_v7 = vpop.xlane.xlu1 %4066 }
 0xb71   :  { %6105 = vrcp.f32 %v4055_v44 }
 0xb72   :  { %6107 = vrcp.f32 %v4061_v48 }
 0xb73   :  { %v6104_v46 = vpop.eup %6103 }
 0xb74   :  { %v4078_v45 = vmul.f32 %v6104_v46, %v7015_v57  ;;  %v4058_v58 = vpop.xlane.xlu0 %4057 }
 0xb75   :  { %6109 = vrcp.f32 %v4058_v58 }
 0xb76   :  { %v4086_v22 = vpack.c.bf16 %v4078_v45, %v4078_v45 }
 0xb78   :  { %v4064_v39 = vpop.xlane.xlu0 %4063  ;;  %5825 = vmatmul.mubr.msk.bf16.vlgmr.msra.gmra.mrb[48].mxu0 %vm1589_vm2, %v4086_v22 }
 0xb79   :  { %6111 = vrcp.f32 %v4064_v39  ;;  %5835 = vmatpush3.bf16.msra.mxu0 %v4280_v63  ;;  %5836 = vmatprep.mubr.msk.bf16.mxu0 %vm6280_vm0, %v6277_v21 }
 0xb7a   :  { %5846 = vmatprep.subr.bf16.mxu0 %v6277_v21  ;;  %6113 = vrcp.f32 %v4067_v7 }
 0xb7b   :  { %v6106_v57 = vpop.eup %6105 }
 0xb7c   :  { %v4079_v4 = vmul.f32 %v6106_v57, %v7021_v43  ;;  %v6108_v10 = vpop.eup %6107 }
 0xb7d   :  { %v4081_v43 = vmul.f32 %v6108_v10, %v7019_v59 }
 0xb7e   :  { %v4087_v53 = vpack.c.bf16 %v4079_v4, %v4079_v4 }
 0xb7f   :  { %v6110_v28 = vpop.eup %6109  ;;  %v4089_v9 = vpack.c.bf16 %v4081_v43, %v4081_v43 }
 0xb80   :  { %v4080_v62 = vmul.f32 %v6110_v28, %v7031_v1  ;;  %5831 = vmatmul.mubr.msk.bf16.vlgmr.msra.gmra.mrb[76].mxu1 %vm1589_vm2, %v4087_v53  ;;  %v4372_v1 = vsel %vm1689_vm3, %v3223_v32, 0 }
 0xb81   :  { %5841 = vmatpush3.bf16.msra.mxu1 %v4326_v34  ;;  %5842 = vmatprep.mubr.msk.bf16.mxu1 %vm6280_vm0, %v6277_v21 }
 0xb82   :  { %v4088_v16 = vpack.c.bf16 %v4080_v62, %v4080_v62  ;;  %5852 = vmatprep.subr.bf16.mxu1 %v6277_v21 }
 0xb83   :  { %v6112_v49 = vpop.eup %6111 }
 0xb84   :  { %5837 = vmatmul.mubr.msk.bf16.vlgmr.msra.gmra.mrb[52].mxu0 %vm1589_vm2, %v4088_v16  ;;  %v4082_v51 = vmul.f32 %v6112_v49, %v7035_v18  ;;  %v6114_v59 = vpop.eup %6113 }
 0xb85   :  { %5847 = vmatpush3.bf16.msra.mxu0 %v4372_v1  ;;  %5848 = vmatprep.mubr.msk.bf16.mxu0 %vm6280_vm0, %v6277_v21  ;;  %v4083_v52 = vmul.f32 %v6114_v59, %v7025_v60  ;;  %v6002_v60 = vld [vmem:[#allocation8 + $0x10c] ss:$40 sps:$4 sm:$0xff]  }
 0xb86   :  { %5858 = vmatprep.subr.bf16.mxu0 %v6277_v21  ;;  %v4090_v15 = vpack.c.bf16 %v4082_v51, %v4082_v51 }
 0xb87   :  { %v4091_v18 = vpack.c.bf16 %v4083_v52, %v4083_v52 }
 0xb88   :  { %5843 = vmatmul.mubr.msk.bf16.vlgmr.msra.gmra.mrb[80].mxu1 %vm1589_vm2, %v4089_v9 }
 0xb89   :  { %5853 = vmatpush3.bf16.msra.mxu1 %v4418_v14  ;;  %5854 = vmatprep.mubr.msk.bf16.mxu1 %vm6280_vm0, %v6277_v21 }
 0xb8c   :  { %5849 = vmatmul.mubr.msk.bf16.vlgmr.msra.gmra.mrb[56].mxu0 %vm1589_vm2, %v4090_v15 }
 0xb8d   :  { %5874 = vmatprep.mubr.msk.bf16.mxu0 %vm6280_vm0, %v6277_v21  ;;  %5859 = vmatpush3.bf16.msra.mxu0 %v5999_v25 }
 0xb8e   :  { %5860 = vmatprep.subr.bf16.mxu0 %v6277_v21 }
 0xb90   :  { %5855 = vmatmul.mubr.msk.bf16.vlgmr.msra.gmra.mrb[84].mxu1 %vm1589_vm2, %v4091_v18 }
 0xb91   :  { %5058 = vmatprep.mubr.bf16.mxu1 %v6276_v0  ;;  %5861 = vmatpush3.bf16.msra.mxu0 %v6000_v36 }
 0xb92   :  { %5862 = vmatprep.subr.bf16.mxu0 %v6277_v21 }
 0xb95   :  { %5863 = vmatpush3.bf16.msra.mxu0 %v6001_v24 }
 0xb96   :  { %5864 = vmatprep.subr.bf16.mxu0 %v6277_v21 }
 0xb99   :  { %5865 = vmatpush3.bf16.msra.mxu0 %v6002_v60 }
 0xb9a   :  { %5866 = vmatprep.subr.bf16.mxu0 %v6277_v21 }
 0xb9d   :  { %5867 = vmatpush3.bf16.msra.mxu0 %v6003_v23 }
 0xb9e   :  { %5868 = vmatprep.subr.bf16.mxu0 %v6277_v21 }
 0xba1   :  { %5869 = vmatpush3.bf16.msra.mxu0 %v6004_v17 }
 0xba2   :  { %5870 = vmatprep.subr.bf16.mxu0 %v6277_v21 }
 0xc2b   :  { %v4132_v0 = vpop.f32.mrb[44].mxu0 }
 0xc2c   :  { %v5814_v31 = vpop.f32.mrb[45].mxu0 }
 0xc2d   :  { %v4135_v11 = vpop.f32.mrb[46].mxu0  ;;  %v4178_v33 = vpop.f32.mrb[72].mxu1 }
 0xc2e   :  { %v5815_v35 = vpop.f32.mrb[47].mxu0  ;;  %v5820_v19 = vpop.f32.mrb[73].mxu1 }
 0xc2f   :  { %v4181_v37 = vpop.f32.mrb[74].mxu1 }
 0xc30   :  { %v5821_v38 = vpop.f32.mrb[75].mxu1 }
 0xc4b   :  { %v4224_v40 = vpop.f32.mrb[48].mxu0 }
 0xc4c   :  { %v4460_v30 = vcombine.low %v4132_v0, %v4224_v40  ;;  %v4461_v41 = vcombine.high %v4132_v0, %v4224_v40  ;;  %v5826_v42 = vpop.f32.mrb[49].mxu0 }
 0xc4d   :  { %v4227_v44 = vpop.f32.mrb[50].mxu0 }
 0xc4e   :  { %v5827_v47 = vpop.f32.mrb[51].mxu0  ;;  %v4468_v20 = vrot.slane %v4460_v30, %v6439_v55  ;;  %v4475_v22 = vrot.slane %v4461_v41, %v6439_v55 }
 0xc53   :  { %v4270_v48 = vpop.f32.mrb[76].mxu1 }
 0xc54   :  { %v4476_v50 = vcombine.low %v4178_v33, %v4270_v48  ;;  %v4477_v46 = vcombine.high %v4178_v33, %v4270_v48  ;;  %v5832_v45 = vpop.f32.mrb[77].mxu1 }
 0xc55   :  { %v4273_v58 = vpop.f32.mrb[78].mxu1 }
 0xc56   :  { %v4484_v39 = vrot.slane %v4476_v50, %v6439_v55  ;;  %v4491_v63 = vrot.slane %v4477_v46, %v6439_v55  ;;  %v5833_v26 = vpop.f32.mrb[79].mxu1 }
 0xc57   :  { %v4316_v7 = vpop.f32.mrb[52].mxu0 }
 0xc58   :  { %v4492_v2 = vcombine.low %v4468_v20, %v4484_v39  ;;  %v4493_v57 = vcombine.high %v4468_v20, %v4484_v39  ;;  %v4508_v4 = vcombine.low %v4475_v22, %v4491_v63  ;;  %v4509_v5 = vcombine.high %v4475_v22, %v4491_v63  ;;  %v5838_v8 = vpop.f32.mrb[53].mxu0 }
 0xc59   :  { %v4319_v10 = vpop.f32.mrb[54].mxu0 }
 0xc5a   :  { %v4500_v53 = vrot.slane %v4492_v2, %v6443_v61  ;;  %v4507_v3 = vrot.slane %v4493_v57, %v6443_v61  ;;  %v4516_v28 = vrot.slane %v4508_v4, %v6443_v61  ;;  %v4523_v62 = vrot.slane %v4509_v5, %v6443_v61  ;;  %v5839_v34 = vpop.f32.mrb[55].mxu0 }
 0xc5b   :  { %v4362_v32 = vpop.f32.mrb[80].mxu1 }
 0xc5c   :  { %v4596_v12 = vcombine.low %v4500_v53, %v4507_v3  ;;  %v5434_v43 = vcombine.high %v4500_v53, %v4507_v3  ;;  %v4612_v16 = vcombine.low %v4516_v28, %v4523_v62  ;;  %v5435_v6 = vcombine.high %v4516_v28, %v4523_v62  ;;  %v5844_v49 = vpop.f32.mrb[81].mxu1  ;;  %v6005_v53 = vld [vmem:[#allocation8 + $0x1fc] ss:$40 sps:$4 sm:$0xff]  }
 0xc5d   :  { %v4365_v1 = vpop.f32.mrb[82].mxu1  ;;  %5871 = vmatpush3.bf16.msra.mxu0 %v6005_v53  ;;  %v6021_v53 = vld [vmem:[#allocation8 + $0x164] ss:$40 sps:$4 sm:$0xff]  }
 0xc5e   :  { %v5845_v13 = vpop.f32.mrb[83].mxu1  ;;  %v4603_v51 = vrot.slane %v4596_v12, %v6439_v55  ;;  %v4611_v9 = vrot.slane %v5434_v43, %v6439_v55  ;;  %v4619_v59 = vrot.slane %v4612_v16, %v6439_v55  ;;  %v4627_v14 = vrot.slane %v5435_v6, %v6439_v55  ;;  %5872 = vmatprep.subr.bf16.mxu0 %v6277_v21 }
 0xc5f   :  { %v4408_v52 = vpop.f32.mrb[56].mxu0 }
 0xc60   :  { %v4528_v15 = vcombine.low %v4316_v7, %v4408_v52  ;;  %v4529_v18 = vcombine.high %v4316_v7, %v4408_v52  ;;  %v5850_v25 = vpop.f32.mrb[57].mxu0  ;;  %v4629_v36 = vcombine.high %v4603_v51, %v4611_v9  ;;  %v4645_v24 = vcombine.high %v4619_v59, %v4627_v14 }
 0xc61   :  { %v4411_v60 = vpop.f32.mrb[58].mxu0  ;;  %v4628_v23 = vcombine.low %v4603_v51, %v4611_v9  ;;  %v4644_v17 = vcombine.low %v4619_v59, %v4627_v14  ;;  %v6006_v51 = vld [vmem:[#allocation8 + $0x24c] ss:$40 sps:$4 sm:$0xff]  }
 0xc62   :  { %v5851_v0 = vpop.f32.mrb[59].mxu0  ;;  %v4643_v31 = vrot.slane %v4629_v36, %v6443_v61  ;;  %v4659_v11 = vrot.slane %v4645_v24, %v6443_v61  ;;  %v4536_v48 = vrot.slane %v4528_v15, %v6439_v55  ;;  %v4543_v50 = vrot.slane %v4529_v18, %v6439_v55  ;;  %5873 = vmatpush3.bf16.msra.mxu0 %v6006_v51  ;;  %v6036_v51 = vld [vmem:[#allocation10 + $0x10] sm:$0xff]  }
 0xc63   :  { %v4454_v33 = vpop.f32.mrb[84].mxu1  ;;  %v4636_v35 = vrot.slane %v4628_v23, %v6443_v61  ;;  %v4652_v19 = vrot.slane %v4644_v17, %v6443_v61 }
 0xc64   :  { %v4544_v37 = vcombine.low %v4362_v32, %v4454_v33  ;;  %v4545_v38 = vcombine.high %v4362_v32, %v4454_v33  ;;  %v5856_v40 = vpop.f32.mrb[85].mxu1  ;;  %v4662_v30 = vcombine.low %v4643_v31, %v4659_v11  ;;  %v4663_v41 = vcombine.high %v4643_v31, %v4659_v11 }
 0xc65   :  { %v4457_v42 = vpop.f32.mrb[86].mxu1  ;;  %v4660_v44 = vcombine.low %v4636_v35, %v4652_v19  ;;  %v4661_v47 = vcombine.high %v4636_v35, %v4652_v19  ;;  %v5438_v40 = vld [vmem:[%s7225_s5 + $0x9] ss:$0 sm:$0xff] }
 0xc66   :  { %v4552_v46 = vrot.slane %v4544_v37, %v6439_v55  ;;  %v4559_v45 = vrot.slane %v4545_v38, %v6439_v55  ;;  %v5857_v58 = vpop.f32.mrb[87].mxu1 }
 0xc67   :  { %v6009_v58 = vld [vmem:[#allocation8 + $0x24] ss:$40 sps:$4 sm:$0xff]  }
 0xc68   :  { %v4560_v20 = vcombine.low %v4536_v48, %v4552_v46  ;;  %v4561_v22 = vcombine.high %v4536_v48, %v4552_v46  ;;  %v4576_v39 = vcombine.low %v4543_v50, %v4559_v45  ;;  %v4577_v63 = vcombine.high %v4543_v50, %v4559_v45  ;;  %v6007_v45 = vld [vmem:[#allocation8 + $0x20] ss:$40 sps:$4 sm:$0xff]   ;;  %5026 = vmatprep.subr.bf16.mxu1 %v6009_v58 }
 0xc69   :  { %5027 = vmatpush1.bf16.msra.mxu1 %v6007_v45 }
 0xc6a   :  { %v4568_v26 = vrot.slane %v4560_v20, %v6443_v61  ;;  %v4575_v7 = vrot.slane %v4561_v22, %v6443_v61  ;;  %v4584_v2 = vrot.slane %v4576_v39, %v6443_v61  ;;  %v4591_v57 = vrot.slane %v4577_v63, %v6443_v61  ;;  %v6012_v20 = vld [vmem:[#allocation8 + $0x74] ss:$40 sps:$4 sm:$0xff]   ;;  %v6010_v22 = vld [vmem:[#allocation8 + $0x70] ss:$40 sps:$4 sm:$0xff]  }
 0xc6b   :  { %5028 = vmatprep.subr.bf16.mxu1 %v6012_v20 }
 0xc6c   :  { %v4664_v4 = vcombine.low %v4568_v26, %v4575_v7  ;;  %v5436_v5 = vcombine.high %v4568_v26, %v4575_v7  ;;  %v4680_v8 = vcombine.low %v4584_v2, %v4591_v57  ;;  %v5437_v10 = vcombine.high %v4584_v2, %v4591_v57 }
 0xc6d   :  { %5029 = vmatpush1.bf16.msra.mxu1 %v6010_v22 }
 0xc6e   :  { %v4671_v3 = vrot.slane %v4664_v4, %v6439_v55  ;;  %v4679_v28 = vrot.slane %v5436_v5, %v6439_v55  ;;  %v4687_v62 = vrot.slane %v4680_v8, %v6439_v55  ;;  %v4695_v34 = vrot.slane %v5437_v10, %v6439_v55  ;;  %v6015_v4 = vld [vmem:[#allocation8 + $0xc4] ss:$40 sps:$4 sm:$0xff]   ;;  %v6013_v5 = vld [vmem:[#allocation8 + $0xc0] ss:$40 sps:$4 sm:$0xff]   ;;  %v6018_v8 = vld [vmem:[#allocation8 + $0x114] ss:$40 sps:$4 sm:$0xff]  }
 0xc6f   :  { %5030 = vmatprep.subr.bf16.mxu1 %v6015_v4  ;;  %v6016_v10 = vld [vmem:[#allocation8 + $0x110] ss:$40 sps:$4 sm:$0xff]  }
 0xc70   :  { %v4697_v32 = vcombine.high %v4671_v3, %v4679_v28  ;;  %v4713_v12 = vcombine.high %v4687_v62, %v4695_v34  ;;  %v4696_v43 = vcombine.low %v4671_v3, %v4679_v28  ;;  %v4712_v16 = vcombine.low %v4687_v62, %v4695_v34  ;;  %v6019_v3 = vld [vmem:[#allocation8 + $0x160] ss:$40 sps:$4 sm:$0xff]   ;;  %v6024_v28 = vld [vmem:[#allocation8 + $0x1b4] ss:$40 sps:$4 sm:$0xff]   ;;  %v6022_v62 = vld [vmem:[#allocation8 + $0x1b0] ss:$40 sps:$4 sm:$0xff]  }
 0xc71   :  { %5031 = vmatpush1.bf16.msra.mxu1 %v6013_v5  ;;  %v6027_v34 = vld [vmem:[#allocation8 + $0x204] ss:$40 sps:$4 sm:$0xff]  }
 0xc72   :  { %v4711_v6 = vrot.slane %v4697_v32, %v6443_v61  ;;  %v4727_v49 = vrot.slane %v4713_v12, %v6443_v61  ;;  %v4704_v1 = vrot.slane %v4696_v43, %v6443_v61  ;;  %v4720_v13 = vrot.slane %v4712_v16, %v6443_v61  ;;  %5032 = vmatprep.subr.bf16.mxu1 %v6018_v8  ;;  %v6025_v32 = vld [vmem:[#allocation8 + $0x200] ss:$40 sps:$4 sm:$0xff]   ;;  %v6030_v12 = vld [vmem:[#allocation8 + $0x254] ss:$40 sps:$4 sm:$0xff]  }
 0xc73   :  { %v6031_v43 = vld [vmem:[#allocation10 + $0x40] sm:$0xff]  }
 0xc74   :  { %v4730_v9 = vcombine.low %v4711_v6, %v4727_v49  ;;  %v4729_v59 = vcombine.high %v4704_v1, %v4720_v13  ;;  %v4728_v14 = vcombine.low %v4704_v1, %v4720_v13  ;;  %v4731_v55 = vcombine.high %v4711_v6, %v4727_v49  ;;  %v6032_v16 = vld [vmem:[#allocation10] sm:$0xff]   ;;  %v6033_v6 = vld [vmem:[#allocation10 + $0x48] sm:$0xff]   ;;  %v6028_v49 = vld [vmem:[#allocation8 + $0x250] ss:$40 sps:$4 sm:$0xff]   ;;  %5584 = vmatprep.subr.bf16.mxu0 %v6031_v43 }
 0xc75   :  { %5033 = vmatpush1.bf16.msra.mxu1 %v6016_v10  ;;  %v6034_v1 = vld [vmem:[#allocation10 + $0x8] sm:$0xff]   ;;  %v6035_v13 = vld [vmem:[#allocation10 + $0x50] sm:$0xff]  }
 0xc76   :  { %v5917_v52 = vpack.i.bf16 %v4730_v9, %v4662_v30  ;;  %v5912_v15 = vpack.i.bf16 %v4729_v59, %v4661_v47  ;;  %v5922_v18 = vpack.i.bf16 %v4731_v55, %v4663_v41  ;;  %5034 = vmatprep.subr.bf16.mxu1 %v6021_v53  ;;  %v6037_v9 = vld [vmem:[#allocation10 + $0x58] sm:$0xff]   ;;  %v6040_v55 = vld [vmem:[#allocation10 + $0x20] sm:$0xff]  }
 0xc77   :  { %v6038_v59 = vld [vmem:[#allocation10 + $0x18] sm:$0xff]  }
 0xc78   :  { %5918 = vrot.lane.b32.xlu1 %v5917_v52, %s6274_s2  ;;  %5913 = vrot.lane.b32.xlu0 %v5912_v15, %s6278_s14  ;;  %v6041_v52 = vld [vmem:[#allocation10 + $0x68] sm:$0xff]   ;;  %s5300_s14 = sshll.u32 %s6283_s24, 4  ;;  %s5301_s14 = int_to_ptr.vmem [resolvable:$true] %s5300_s14 }
 0xc79   :  { %5035 = vmatpush1.bf16.msra.mxu1 %v6019_v3  ;;  %p6240_p13 = scmp.lt.s32.totalorder %s5301_s14, %s5301_s14 }
 0xc7a   :  { %5036 = vmatprep.subr.bf16.mxu1 %v6024_v28 }
 0xc7c   :  { %5923 = vrot.lane.b32.xlu1 %v5922_v18, %s6279_s15  ;;  %s6235_s15 = scalar_lea.vmem %s5301_s14, 256 }
 0xc7d   :  { %5037 = vmatpush1.bf16.msra.mxu1 %v6022_v62  ;;  %p6236_p12 = scmp.ne.s32.totalorder %s5301_s14, %s6235_s15  ;;  %p6241_p0 = scmp.lt.s32.totalorder %s6235_s15, %s6235_s15 }
 0xc7e   :  { %5038 = vmatprep.subr.bf16.mxu1 %v6027_v34 }
 0xc7f   :  { %p6242_p1 = por %p6241_p0, %p6240_p13 }
 0xc81   :  { %5039 = vmatpush1.bf16.msra.mxu1 %v6025_v32  ;;  %p6243_p2 = pnand %p6242_p1, %p6236_p12 }
 0xc82   :  { %5040 = vmatprep.subr.bf16.mxu1 %v6030_v12 }
 0xc85   :  { %5041 = vmatpush1.bf16.msra.mxu1 %v6028_v49 }
 0xcea   :  { %v5919_v21 = vpop.permute.xlu1 %5918  ;;  %v5914_v25 = vpop.permute.xlu0 %5913 }
 0xceb   :  { %v5916_v36 = vunpack.i.h.bf16 %v5914_v25  ;;  %v5915_v24 = vunpack.i.l.bf16 %v5914_v25  ;;  %v5921_v61 = vunpack.i.h.bf16 %v5919_v21  ;;  %v5920_v60 = vunpack.i.l.bf16 %v5919_v21 }
 0xced   :  { %v4756_v23 = vsel %vm1204_vm1, %v4660_v44, %v5915_v24  ;;  %v4757_v17 = vsel %vm1204_vm1, %v4728_v14, %v5916_v36  ;;  %v6039_v14 = vld [vmem:[#allocation10 + $0x60] sm:$0xff]  }
 0xcee   :  { %v5924_v0 = vpop.permute.xlu1 %5923  ;;  %v4758_v33 = vsel %vm2353_vm4, %v4756_v23, %v5920_v60  ;;  %v4759_v35 = vsel %vm2353_vm4, %v4757_v17, %v5921_v61  ;;  %v5447_v23 = vld [vmem:[%s7225_s5 + $0xa] ss:$0 sm:$0xff] }
 0xcef   :  { %v5926_v31 = vunpack.i.h.bf16 %v5924_v0  ;;  %v5925_v11 = vunpack.i.l.bf16 %v5924_v0 }
 0xcf1   :  { %v4760_v19 = vsel %vm2356_vm5, %v4758_v33, %v5925_v11  ;;  %v4761_v37 = vsel %vm2356_vm5, %v4759_v35, %v5926_v31  ;;  %v5448_v11 = vld [vmem:[%s7225_s5 + $0xb] ss:$0 sm:$0xff] }
 0xcf2   :  { %v4778_v38 = vpack.c.bf16 %v4761_v37, %v4760_v19 }
 0xcf4   :  { %5875 = vmatmul.mubr.bf16.vlgmr.msra.gmra.mrb[60].mxu0 %v4778_v38  ;;  %v6042_v38 = vld [vmem:[#allocation10 + $0x28] sm:$0xff]  }
 0xcf5   :  { %5585 = vmatpush3.bf16.msra.mxu0 %v6032_v16 }
 0xcf6   :  { %5586 = vmatprep.subr.bf16.mxu0 %v6033_v6 }
 0xcf9   :  { %5587 = vmatpush3.bf16.msra.mxu0 %v6034_v1 }
 0xcfa   :  { %5588 = vmatprep.subr.bf16.mxu0 %v6035_v13 }
 0xcfd   :  { %5589 = vmatpush3.bf16.msra.mxu0 %v6036_v51 }
 0xcfe   :  { %5590 = vmatprep.subr.bf16.mxu0 %v6037_v9 }
 0xd01   :  { %5591 = vmatpush3.bf16.msra.mxu0 %v6038_v59 }
 0xd02   :  { %5592 = vmatprep.subr.bf16.mxu0 %v6039_v14 }
 0xd05   :  { %5593 = vmatpush3.bf16.msra.mxu0 %v6040_v55 }
 0xd06   :  { %5594 = vmatprep.subr.bf16.mxu0 %v6041_v52 }
 0xd09   :  { %5595 = vmatpush3.bf16.msra.mxu0 %v6042_v38 }
 0xdc7   :  { %v4868_v30 = vpop.f32.mrb[60].mxu0 }
 0xdc8   :  { %v4869_v41 = vadd.f32 %v5438_v40, %v4868_v30  ;;  %v5876_v42 = vpop.f32.mrb[61].mxu0  ;;  %v6044_v30 = vld [vmem:[#allocation10 + $0x30] sm:$0xff]  }
 0xdc9   :  { %v4871_v44 = vpop.f32.mrb[62].mxu0  ;;  %v6046_v42 = vld [vmem:[#allocation10 + $0x38] sm:$0xff]  }
 0xdca   :  { %v4872_v47 = vadd.f32 %v5438_v40, %v4871_v44  ;;  %v5877_v48 = vpop.f32.mrb[63].mxu0  ;;  %v4875_v50 = vadd.f32 %v4869_v41, %v6825_v54  ;;  %v6043_v40 = vld [vmem:[#allocation10 + $0x70] sm:$0xff]   ;;  %v6045_v41 = vld [vmem:[#allocation10 + $0x78] sm:$0xff]   ;;  %v4934_v44 = vld [vmem:[%s7225_s5 + $0xc] sm:$0x3] }
 0xdcb   :  { %5596 = vmatprep.subr.bf16.mxu0 %v6043_v40  ;;  %v4943_v48 = vrot.slane %v4934_v44, %v6411_v29 }
 0xdcc   :  { %4879 = vadd.xlane.f32.xlu0 %v4875_v50  ;;  %v4876_v46 = vadd.f32 %v4872_v47, %v6827_v56  ;;  %5597 = vmatpush3.bf16.msra.mxu0 %v6044_v30  ;;  %v4939_v47 = vrot.slane %v4934_v44, %v6403_v27  ;;  %v5465_v27 = vld [vmem:[%s7225_s5 + $0xe] ss:$0 sm:$0xff] }
 0xdcd   :  { %5598 = vmatprep.subr.bf16.mxu0 %v6045_v41 }
 0xdce   :  { %4881 = vadd.xlane.f32.xlu1 %v4876_v46 }
 0xdd0   :  { %5599 = vmatpush3.bf16.msra.mxu0 %v6046_v42 }
 0xe59   :  { %v4880_v39 = vpop.xlane.xlu0 %4879 }
 0xe5a   :  { %v4883_v63 = vmul.f32 0.0078125, %v4880_v39 }
 0xe5b   :  { %v4882_v26 = vpop.xlane.xlu1 %4881 }
 0xe5c   :  { %v4885_v7 = vsub.f32 %v4875_v50, %v4883_v63  ;;  %v4884_v2 = vmul.f32 0.0078125, %v4882_v26 }
 0xe5e   :  { %v7180_v57 = vsub.f32 %v4876_v46, %v4884_v2  ;;  %v4887_v54 = vmul.f32 %v4885_v7, %v4885_v7 }
 0xe60   :  { %4889 = vadd.xlane.f32.xlu0 %v4887_v54  ;;  %v4888_v56 = vmul.f32 %v7180_v57, %v7180_v57 }
 0xe64   :  { %4891 = vadd.xlane.f32.xlu0 %v4888_v56 }
 0xeed   :  { %v4890_v15 = vpop.xlane.xlu0 %4889 }
 0xeee   :  { %v4893_v18 = vmul.f32 0.0078125, %v4890_v15 }
 0xef0   :  { %v4895_v21 = vadd.f32 1e-05, %v4893_v18  ;;  %v5482_v18 = vld [vmem:[%s7225_s5 + $0xf] ss:$0 sm:$0xff] }
 0xef1   :  { %v4892_v25 = vpop.xlane.xlu0 %4891 }
 0xef2   :  { %6115 = vrsqrt.f32 %v4895_v21  ;;  %v4894_v36 = vmul.f32 0.0078125, %v4892_v25 }
 0xef4   :  { %v4896_v24 = vadd.f32 1e-05, %v4894_v36  ;;  %v5483_v36 = vld [vmem:[%s7225_s5 + $0x10] ss:$0 sm:$0xff] }
 0xef6   :  { %6117 = vrsqrt.f32 %v4896_v24 }
 0xefc   :  { %v6116_v61 = vpop.eup %6115 }
 0xefd   :  { %v4899_v60 = vmul.f32 %v6116_v61, %v4885_v7 }
 0xeff   :  { %v4907_v31 = vmul.f32 %v5447_v23, %v4899_v60 }
 0xf00   :  { %v6118_v17 = vpop.eup %6117 }
 0xf01   :  { %v4900_v0 = vmul.f32 %v6118_v17, %v7180_v57  ;;  %v4915_v35 = vadd.f32 %v5448_v11, %v4907_v31 }
 0xf03   :  { %v4908_v33 = vmul.f32 %v5447_v23, %v4900_v0 }
 0xf05   :  { %v4916_v19 = vadd.f32 %v5448_v11, %v4908_v33 }
 0xf07   :  { %v4933_v37 = vpack.c.bf16 %v4916_v19, %v4915_v35 }
 0xf09   :  { %5059 = vmatmul.mubr.bf16.vlgmr.msra.gmra.mrb[88].mxu1 %v4933_v37 }
 0xfdc   :  { %v5060_v50 = vpop.f32.mrb[88].mxu1 }
 0xfdd   :  { %v5061_v46 = vadd.f32 %v5060_v50, %v4939_v47  ;;  %v5062_v45 = vpop.f32.mrb[89].mxu1 }
 0xfde   :  { %v5063_v58 = vadd.f32 %v5062_v45, %v4943_v48  ;;  %v5064_v20 = vpop.f32.mrb[90].mxu1 }
 0xfdf   :  { %v5065_v22 = vadd.f32 %v5064_v20, %v4939_v47  ;;  %v5066_v39 = vpop.f32.mrb[91].mxu1  ;;  %v5069_v26 = vmax.f32 %v5061_v46, 0.0 }
 0xfe0   :  { %v5067_v63 = vadd.f32 %v5066_v39, %v4943_v48  ;;  %v5070_v2 = vmax.f32 %v5063_v58, 0.0 }
 0xfe1   :  { %v5071_v7 = vmax.f32 %v5065_v22, 0.0 }
 0xfe2   :  { %v5072_v57 = vmax.f32 %v5067_v63, 0.0 }
 0xfe3   :  { %v5105_v54 = vpack.c.bf16 %v5071_v7, %v5069_v26 }
 0xfe4   :  { %v5106_v56 = vpack.c.bf16 %v5072_v57, %v5070_v2 }
 0xfe6   :  { %5242 = vmatprep.mubr.bf16.mxu0 %v5106_v56 }
 0xfe7   :  { %5243 = vmatmul.mubr.bf16.vlgmr.msra.gmra.mrb[64].mxu0 %v5105_v54 }
0x10ba   :  { %v5600_v4 = vpop.f32.mrb[64].mxu0 }
0x10bb   :  { %v5601_v29 = vpop.f32.mrb[65].mxu0 }
0x10bc   :  { %v5602_v5 = vadd.f32 %v5601_v29, %v5600_v4  ;;  %v5603_v8 = vpop.f32.mrb[66].mxu0 }
0x10bd   :  { %v5604_v10 = vpop.f32.mrb[67].mxu0 }
0x10be   :  { %v5245_v53 = vadd.f32 %v5602_v5, %v5465_v27  ;;  %v5605_v3 = vadd.f32 %v5604_v10, %v5603_v8 }
0x10c0   :  { %v5248_v28 = vadd.f32 %v5605_v3, %v5465_v27  ;;  %v5251_v62 = vadd.f32 %v5245_v53, %v4915_v35 }
0x10c2   :  { %5255 = vadd.xlane.f32.xlu1 %v5251_v62  ;;  %v5252_v34 = vadd.f32 %v5248_v28, %v4916_v19 }
0x10c4   :  { %5257 = vadd.xlane.f32.xlu0 %v5252_v34 }
0x114f   :  { %v5256_v32 = vpop.xlane.xlu1 %5255 }
0x1150   :  { %v5259_v12 = vmul.f32 0.0078125, %v5256_v32 }
0x1151   :  { %v5258_v43 = vpop.xlane.xlu0 %5257 }
0x1152   :  { %v5261_v16 = vsub.f32 %v5251_v62, %v5259_v12  ;;  %v5260_v6 = vmul.f32 0.0078125, %v5258_v43 }
0x1154   :  { %v5262_v49 = vsub.f32 %v5252_v34, %v5260_v6  ;;  %v5263_v1 = vmul.f32 %v5261_v16, %v5261_v16 }
0x1156   :  { %5265 = vadd.xlane.f32.xlu1 %v5263_v1  ;;  %v5264_v13 = vmul.f32 %v5262_v49, %v5262_v49 }
0x1158   :  { %5267 = vadd.xlane.f32.xlu0 %v5264_v13 }
0x11e3   :  { %v5266_v51 = vpop.xlane.xlu1 %5265 }
0x11e4   :  { %v5269_v9 = vmul.f32 0.0078125, %v5266_v51 }
0x11e5   :  { %v5268_v59 = vpop.xlane.xlu0 %5267 }
0x11e6   :  { %v5271_v14 = vadd.f32 1e-05, %v5269_v9  ;;  %v5270_v55 = vmul.f32 0.0078125, %v5268_v59 }
0x11e8   :  { %6119 = vrsqrt.f32 %v5271_v14  ;;  %v5272_v52 = vadd.f32 1e-05, %v5270_v55 }
0x11ea   :  { %6121 = vrsqrt.f32 %v5272_v52 }
0x11f2   :  { %v6120_v15 = vpop.eup %6119 }
0x11f3   :  { %v5275_v21 = vmul.f32 %v6120_v15, %v5261_v16 }
0x11f4   :  { %v6122_v25 = vpop.eup %6121 }
0x11f5   :  { %v5276_v24 = vmul.f32 %v6122_v25, %v5262_v49  ;;  %v5283_v61 = vmul.f32 %v5482_v18, %v5275_v21 }
0x11f7   :  { %v5284_v60 = vmul.f32 %v5482_v18, %v5276_v24  ;;  %v5291_v23 = vadd.f32 %v5483_v36, %v5283_v61 }
0x11f9   :  { %v5292_v17 = vadd.f32 %v5483_v36, %v5284_v60  ;;  %5293 = vst [vmem:[#allocation11] sm:$0xff] %v5291_v23 }
0x11fb   :  { %5294 = vst [vmem:[#allocation11 + $0x8] sm:$0xff] %v5292_v17 }
0x11fc   :  { %6246 = shalt.err (!%p6243_p2)
}
0x11fd   :  { %s6247_s5 = scalar_lea.hbm %s7226_s6, 256 }
0x11fe   :  { %p6248_p3 = scmp.ne.s32.totalorder %s7226_s6, %s6247_s5  ;;  %p6251_p4 = scmp.lt.u32.totalorder %s6247_s5, %s7226_s6 }
0x1200   :  { %p6253_p5 = pnand %p6251_p4, %p6248_p3 }
0x1202   :  { %6256 = shalt.err (!%p6253_p5)
}
0x1203   :  { %5306 = dma.vmem_to_hbm [thread:$0]  %s5301_s14, 256, %s7226_s6, [#allocation4], %s6267_s9, %s6267_s9, %s6268_s10  }
0x1204   :  { %6263 = dma.done.wait [#allocation4], 256  }
0x1205   :  { %6264 = vsyncadd [#allocation4], 4294967040 }
0x1206   :  { %5310 = vsyncpa [#allocation3], 1 }
0x1207   :  { %5311 = vsyncpa [#allocation6], 1 }
0x1208   :  { %5312 = vsyncpa [#allocation9], 1 }
0x1209   :  { %5313 = vsyncpa [#allocation4], 1 }

</bundles_post_ra>
